<compile_context>
chip_gen: v7x
topology: tpu7x:2x2x1
jax: 0.10.0
libtpu: 0.0.40
codegen_flags: <defaults>
</compile_context>

<pallas_src>
import functools

import jax
import jax.numpy as jnp
from jax.experimental import pallas as pl
from jax.experimental.pallas import tpu as pltpu

_LANE = 128


def _round_up(x, m):
    return (x + m - 1) // m * m


def _pick_divisor(total, target, align=1):
    """Largest divisor of `total` that is <= target (and a multiple of `align`
    unless it equals `total`)."""
    if total <= target:
        return total
    for d in range(target, 0, -1):
        if total % d == 0 and (align == 1 or d % align == 0):
            return d
    return total


def _vmem_limit_bytes():
    """Generation-aware scoped-VMEM limit (~100 MiB on 128 MiB chips, ~56 MiB
    on v7x's 64 MiB), with a safe fallback."""
    try:
        info = pltpu.get_tpu_info()
        cap = getattr(info, "vmem_capacity_bytes", None)
        if cap is None:
            cap = getattr(info, "vmem_bytes", None)
        if cap is None:
            raise AttributeError("no vmem capacity attribute")
        return int(max(32 * 1024 * 1024,
                       min(100 * 1024 * 1024, int(cap) - 8 * 1024 * 1024)))
    except Exception:
        return 48 * 1024 * 1024


def _hswish(z):
    return z * jnp.clip(z + 3.0, 0.0, 6.0) * (1.0 / 6.0)


def _hsigmoid(z):
    return jnp.clip(z + 3.0, 0.0, 6.0) * (1.0 / 6.0)


def _fold_bn(gamma, beta, mean, var, eps):
    scale = gamma / jnp.sqrt(var + eps)
    bias = beta - mean * scale
    return scale, bias


# ----------------------------------------------------------------------------
# Kernel 1: fused [1x1 expand conv + BN + act] + zero-pad + kxk depthwise conv
#           + BN (+act when inp==hidden) + SE global-average-pool partials.
# Grid = (N, Ho / th).  The whole (small) padded input image is VMEM-resident
# per batch element; the expanded hidden tile lives only in VMEM scratch.
# ----------------------------------------------------------------------------
def _make_fused_expand_dw_kernel(*, expand, k, stride, th, Wo, W, pad, in_th,
                                 Wpp, use_hs, act_after_dw, n_row_tiles,
                                 bottom_pad):
    Whalf = Wpp // 2

    def kernel(*refs):
        if expand:
            x_ref, w1_ref, b1_ref, wdw_ref, bdw_ref = refs[:5]
            rest = refs[5:]
        else:
            x_ref, wdw_ref, bdw_ref = refs[:3]
            rest = refs[3:]
        y_ref, pool_ref, hid_ref = rest[:3]
        halves = rest[3:]

        Chp = hid_ref.shape[-1]
        r = pl.program_id(1)
        row0 = pl.multiple_of(r * (th * stride), th * stride)

        # ---- stage 1: 1x1 expand conv + BN + act into VMEM scratch ---------
        xw = x_ref[0, pl.ds(row0, in_th), :, :]            # (in_th, Wpp, C1p) bf16
        if expand:
            c1p = xw.shape[-1]
            z = jnp.dot(xw.reshape(in_th * Wpp, c1p), w1_ref[...],
                        preferred_element_type=jnp.float32)
            z = z + b1_ref[...]
            z = _hswish(z) if use_hs else jnp.maximum(z, 0.0)
            hid_ref[...] = z.reshape(in_th, Wpp, Chp).astype(hid_ref.dtype)
            # The depthwise conv zero-pads the *expanded* activation, but the
            # padded input pixels became act(bias) above: zero them back out.
            if pad > 0:
                hid_ref[:, pl.ds(0, pad), :] = jnp.zeros(
                    (in_th, pad, Chp), hid_ref.dtype)
                rpad = Wpp - (W + pad)
                hid_ref[:, pl.ds(W + pad, rpad), :] = jnp.zeros(
                    (in_th, rpad, Chp), hid_ref.dtype)

                @pl.when(r == 0)
                def _():
                    hid_ref[pl.ds(0, pad), :, :] = jnp.zeros(
                        (pad, Wpp, Chp), hid_ref.dtype)

                if bottom_pad > 0:
                    @pl.when(r == n_row_tiles - 1)
                    def _():
                        hid_ref[pl.ds(in_th - bottom_pad, bottom_pad), :, :] = (
                            jnp.zeros((bottom_pad, Wpp, Chp), hid_ref.dtype))
        else:
            # inp == hidden: the depthwise conv reads x directly (spatial pad
            # already holds true zeros, no pre-activation on this path).
            hid_ref[...] = xw

        # ---- stride-2: de-interleave columns once (avoids k*k sublane-
        #      strided taps; per-tap row strides stay on the major axis) ------
        if stride == 2:
            he_ref, ho_ref = halves
            he_ref[...] = hid_ref[:, pl.ds(0, Whalf, 2), :]
            ho_ref[...] = hid_ref[:, pl.ds(1, Whalf, 2), :]

        # ---- stage 2: kxk depthwise conv + folded-BN bias -------------------
        acc = jnp.zeros((th, Wo, Chp), jnp.float32)
        for kh in range(k):
            for kw in range(k):
                w = wdw_ref[pl.ds(kh * k + kw, 1), :]      # (1, Chp) f32
                if stride == 1:
                    tap = hid_ref[pl.ds(kh, th), pl.ds(kw, Wo), :]
                else:
                    src = he_ref if (kw % 2 == 0) else ho_ref
                    tap = src[pl.ds(kh, th, 2), pl.ds(kw // 2, Wo), :]
                acc = acc + tap.astype(jnp.float32) * w
        acc = acc + bdw_ref[...]
        if act_after_dw:
            acc = _hswish(acc) if use_hs else jnp.maximum(acc, 0.0)
        y_ref[0] = acc.astype(y_ref.dtype)

        # ---- fused SE global-average-pool partial (per row tile) -----------
        part = jnp.sum(acc, axis=0)                        # (Wo, Chp)
        part = jnp.sum(part, axis=0, keepdims=True)        # (1, Chp)
        pool_ref[...] = jnp.broadcast_to(part, (1, 1, 8, Chp)).astype(
            pool_ref.dtype)

    return kernel


# ----------------------------------------------------------------------------
# Kernel 2 (tail): SE scale (+ act) + 1x1 projection matmul + BN (+ residual)
# ----------------------------------------------------------------------------
def _make_tail_kernel(*, use_hs, use_se, apply_act, has_residual):
    def kernel(*refs):
        idx = 0
        h_ref = refs[idx]; idx += 1
        se_ref = None
        if use_se:
            se_ref = refs[idx]; idx += 1
        w_ref = refs[idx]
        b_ref = refs[idx + 1]
        idx += 2
        r_ref = None
        if has_residual:
            r_ref = refs[idx]; idx += 1
        o_ref = refs[idx]

        z = h_ref[0].astype(jnp.float32)                    # (tmo, Chp)
        if use_se:
            z = z * se_ref[0]                               # (1, Chp) broadcast
        if apply_act:
            z = _hswish(z) if use_hs else jnp.maximum(z, 0.0)
        y = jnp.dot(z.astype(jnp.bfloat16), w_ref[...],
                    preferred_element_type=jnp.float32)     # (tmo, C2p)
        y = y + b_ref[...]
        if has_residual:
            y = y + r_ref[0].astype(jnp.float32)
        o_ref[0] = y.astype(o_ref.dtype)

    return kernel


# ----------------------------------------------------------------------------
# Full MobileNet_Block forward
# ----------------------------------------------------------------------------
def mobilenet_block_forward(
        x_nchw,
        pw1_w, bn1_g, bn1_b, bn1_m, bn1_v,            # expand 1x1 (None if inp==hidden)
        dw_w, bn_dw_g, bn_dw_b, bn_dw_m, bn_dw_v,     # depthwise kxk
        se_fc1_w, se_fc1_b, se_fc2_w, se_fc2_b,       # SE (None if not use_se)
        pw2_w, bn2_g, bn2_b, bn2_m, bn2_v,            # project 1x1
        *, kernel_size=3, stride=1, use_se=True, use_hs=True,
        eps=1e-5, tile_rows=16, tile_m=1024):
    assert stride in (1, 2)
    N, C1, H, W = x_nchw.shape
    hidden = dw_w.shape[0]
    oup = pw2_w.shape[0]
    expand = pw1_w is not None
    if not expand:
        assert C1 == hidden, "inp must equal hidden_dim when pw1_w is None"
    identity = (stride == 1) and (C1 == oup)
    pad = (kernel_size - 1) // 2
    Ho = (H + 2 * pad - kernel_size) // stride + 1
    Wo = (W + 2 * pad - kernel_size) // stride + 1

    C1p = _round_up(C1, _LANE)
    Chp = _round_up(hidden, _LANE)
    C2p = _round_up(oup, _LANE)
    Hp = H + 2 * pad
    Wp = W + 2 * pad
    Wpp = _round_up(Wp, 8)

    # Spatial row tiling of the fused expand+depthwise kernel (th | Ho).
    th = _pick_divisor(Ho, tile_rows)
    if Ho // th > 1 and th * stride < pad:
        th = Ho
    R = Ho // th
    in_th = (th - 1) * stride + kernel_size
    bottom_pad = max(0, (Ho - 1) * stride + kernel_size - pad - H)

    vmem_limit = _vmem_limit_bytes()

    # ---- layout glue: NCHW -> NHWC bf16, lane-pad channels, spatial pad x ---
    x_nhwc = jnp.transpose(x_nchw, (0, 2, 3, 1)).astype(jnp.bfloat16)
    x_c = jnp.pad(x_nhwc, ((0, 0), (0, 0), (0, 0), (0, C1p - C1)))
    x_pad = jnp.pad(x_c, ((0, 0), (pad, pad), (pad, pad + Wpp - Wp), (0, 0)))

    # ---- folded-BN weights ---------------------------------------------------
    kk = kernel_size * kernel_size
    sdw, bdw = _fold_bn(bn_dw_g, bn_dw_b, bn_dw_m, bn_dw_v, eps)
    wdw = jnp.transpose(dw_w.reshape(hidden, kk), (1, 0)) * sdw[None, :]
    wdw = jnp.pad(wdw, ((0, 0), (0, Chp - hidden))).astype(jnp.float32)
    bdw = jnp.pad(bdw, (0, Chp - hidden)).reshape(1, Chp).astype(jnp.float32)

    inputs = [x_pad]
    in_specs = [pl.BlockSpec((1, Hp, Wpp, C1p), lambda n, r: (n, 0, 0, 0))]
    if expand:
        s1, b1 = _fold_bn(bn1_g, bn1_b, bn1_m, bn1_v, eps)
        w1 = jnp.transpose(pw1_w.reshape(hidden, C1), (1, 0)) * s1[None, :]
        w1 = jnp.pad(w1, ((0, C1p - C1), (0, Chp - hidden))).astype(jnp.bfloat16)
        b1 = jnp.pad(b1, (0, Chp - hidden)).reshape(1, Chp).astype(jnp.float32)
        inputs += [w1, b1]
        in_specs += [pl.BlockSpec((C1p, Chp), lambda n, r: (0, 0)),
                     pl.BlockSpec((1, Chp), lambda n, r: (0, 0))]
    inputs += [wdw, bdw]
    in_specs += [pl.BlockSpec((kk, Chp), lambda n, r: (0, 0)),
                 pl.BlockSpec((1, Chp), lambda n, r: (0, 0))]

    scratch = [pltpu.VMEM((in_th, Wpp, Chp), jnp.bfloat16)]
    if stride == 2:
        scratch += [pltpu.VMEM((in_th, Wpp // 2, Chp), jnp.bfloat16),
                    pltpu.VMEM((in_th, Wpp // 2, Chp), jnp.bfloat16)]

    fused_flops = 2 * N * Ho * Wo * Chp * kk
    if expand:
        fused_flops += 2 * N * R * in_th * Wpp * C1p * Chp
    fused_bytes = (N * Hp * Wpp * C1p * 2 + kk * Chp * 4 + Chp * 4
                   + (C1p * Chp * 2 + Chp * 4 if expand else 0)
                   + N * Ho * Wo * Chp * 2 + N * R * 8 * Chp * 4)

    dw_out, pool_part = pl.pallas_call(
        _make_fused_expand_dw_kernel(
            expand=expand, k=kernel_size, stride=stride, th=th, Wo=Wo, W=W,
            pad=pad, in_th=in_th, Wpp=Wpp, use_hs=use_hs,
            act_after_dw=not expand, n_row_tiles=R, bottom_pad=bottom_pad),
        out_shape=(jax.ShapeDtypeStruct((N, Ho, Wo, Chp), jnp.bfloat16),
                   jax.ShapeDtypeStruct((N, R, 8, Chp), jnp.float32)),
        grid_spec=pltpu.PrefetchScalarGridSpec(
            num_scalar_prefetch=0, grid=(N, R),
            in_specs=in_specs,
            out_specs=(pl.BlockSpec((1, th, Wo, Chp), lambda n, r: (n, r, 0, 0)),
                       pl.BlockSpec((1, 1, 8, Chp), lambda n, r: (n, r, 0, 0))),
            scratch_shapes=scratch),
        compiler_params=pltpu.CompilerParams(
            dimension_semantics=("parallel", "parallel"),
            vmem_limit_bytes=vmem_limit),
        cost_estimate=pl.CostEstimate(flops=int(fused_flops), transcendentals=0,
                                      bytes_accessed=int(fused_bytes)),
    )(*inputs)

    # ---- SE squeeze MLP ------------------------------------------------------
    # TODO(synk): the SE squeeze MLP ((N,C)->(N,C/4)->(N,C)) is left in plain
    # JAX; it is a few hundred FLOPs, far below Pallas (8,128) tile granularity.
    # The pool itself is fused in kernel 1, the re-scale is fused in kernel 2.
    if use_se:
        pooled = pool_part[:, :, 0, :hidden].sum(axis=1) * (1.0 / (Ho * Wo))
        t = jnp.maximum(pooled @ se_fc1_w.T + se_fc1_b, 0.0)
        s = _hsigmoid(t @ se_fc2_w.T + se_fc2_b)                    # (N, hidden)
        se_scale = jnp.pad(s, ((0, 0), (0, Chp - hidden)))
        se_scale = se_scale.reshape(N, 1, Chp).astype(jnp.float32)

    # ---- tail: SE scale (+act) + 1x1 project + BN (+ residual) --------------
    s2, b2 = _fold_bn(bn2_g, bn2_b, bn2_m, bn2_v, eps)
    w2 = jnp.transpose(pw2_w.reshape(oup, hidden), (1, 0)) * s2[None, :]
    w2 = jnp.pad(w2, ((0, Chp - hidden), (0, C2p - oup))).astype(jnp.bfloat16)
    b2 = jnp.pad(b2, (0, C2p - oup)).reshape(1, C2p).astype(jnp.float32)

    Mo = Ho * Wo
    tmo = _pick_divisor(Mo, tile_m, align=8)
    nr = Mo // tmo
    dw3 = dw_out.reshape(N, Mo, Chp)                       # free (metadata) reshape

    tail_inputs = [dw3]
    tail_specs = [pl.BlockSpec((1, tmo, Chp), lambda n, r: (n, r, 0))]
    if use_se:
        tail_inputs.append(se_scale)
        tail_specs.append(pl.BlockSpec((1, 1, Chp), lambda n, r: (n, 0, 0)))
    tail_inputs += [w2, b2]
    tail_specs += [pl.BlockSpec((Chp, C2p), lambda n, r: (0, 0)),
                   pl.BlockSpec((1, C2p), lambda n, r: (0, 0))]
    if identity:
        res = x_c.reshape(N, H * W, C1p)                   # bf16 residual stream
        tail_inputs.append(res)
        tail_specs.append(pl.BlockSpec((1, tmo, C2p), lambda n, r: (n, r, 0)))

    tail_bytes = (N * Mo * Chp * 2 + Chp * C2p * 2 + C2p * 4
                  + (N * Chp * 4 if use_se else 0)
                  + N * Mo * C2p * 2 * (2 if identity else 1))
    out3 = pl.pallas_call(
        _make_tail_kernel(use_hs=use_hs, use_se=use_se, apply_act=expand,
                          has_residual=identity),
        out_shape=jax.ShapeDtypeStruct((N, Mo, C2p), jnp.bfloat16),
        grid_spec=pltpu.PrefetchScalarGridSpec(
            num_scalar_prefetch=0, grid=(N, nr),
            in_specs=tail_specs,
            out_specs=pl.BlockSpec((1, tmo, C2p), lambda n, r: (n, r, 0))),
        compiler_params=pltpu.CompilerParams(
            dimension_semantics=("parallel", "parallel"),
            vmem_limit_bytes=vmem_limit),
        cost_estimate=pl.CostEstimate(flops=int(2 * N * Mo * Chp * C2p),
                                      transcendentals=0,
                                      bytes_accessed=int(tail_bytes)),
    )(*tail_inputs)

    # TODO(synk): keep the padded-NHWC bf16 layout as the inter-block format so
    # this slice + NCHW transpose disappears when blocks are chained.
    out = out3[:, :, :oup].reshape(N, Ho, Wo, oup)
    return jnp.transpose(out, (0, 3, 1, 2)).astype(jnp.float32)   # NCHW


# ----------------------------------------------------------------------------
# Pure-JAX reference (f32, true module semantics)
# ----------------------------------------------------------------------------
def _reference(x, pw1_w, bn1_g, bn1_b, bn1_m, bn1_v,
               dw_w, bn_dw_g, bn_dw_b, bn_dw_m, bn_dw_v,
               se_fc1_w, se_fc1_b, se_fc2_w, se_fc2_b,
               pw2_w, bn2_g, bn2_b, bn2_m, bn2_v,
               kernel_size, stride, use_se, use_hs, eps=1e-5):
    dn = ('NCHW', 'OIHW', 'NCHW')
    hi = jax.lax.Precision.HIGHEST
    hidden, oup, inp = dw_w.shape[0], pw2_w.shape[0], x.shape[1]
    pad = (kernel_size - 1) // 2
    act = _hswish if use_hs else (lambda z: jnp.maximum(z, 0.0))

    def bn(z, g, b, m, v):
        inv = g / jnp.sqrt(v + eps)
        return z * inv[None, :, None, None] + (b - m * inv)[None, :, None, None]

    def se(z):
        p = jnp.mean(z, axis=(2, 3))
        t = jnp.maximum(p @ se_fc1_w.T + se_fc1_b, 0.0)
        s = _hsigmoid(t @ se_fc2_w.T + se_fc2_b)
        return z * s[:, :, None, None]

    y = x
    expand = pw1_w is not None
    if expand:
        y = jax.lax.conv_general_dilated(y, pw1_w, (1, 1), 'VALID',
                                         dimension_numbers=dn, precision=hi)
        y = act(bn(y, bn1_g, bn1_b, bn1_m, bn1_v))
    y = jax.lax.conv_general_dilated(y, dw_w, (stride, stride),
                                     ((pad, pad), (pad, pad)),
                                     dimension_numbers=dn,
                                     feature_group_count=hidden, precision=hi)
    y = bn(y, bn_dw_g, bn_dw_b, bn_dw_m, bn_dw_v)
    if expand:
        if use_se:
            y = se(y)
        y = act(y)
    else:
        y = act(y)
        if use_se:
            y = se(y)
    y = jax.lax.conv_general_dilated(y, pw2_w, (1, 1), 'VALID',
                                     dimension_numbers=dn, precision=hi)
    y = bn(y, bn2_g, bn2_b, bn2_m, bn2_v)
    if stride == 1 and inp == oup:
        y = x + y
    return y


# ----------------------------------------------------------------------------
# Test harness
# ----------------------------------------------------------------------------
def _run_case(name, key, *, N, inp, hidden, oup, H, W, k, stride,
              use_se, use_hs, tile_rows, tile_m):
    keys = jax.random.split(key, 24)
    expand = inp != hidden

    def rn(i, shape, scale=0.1):
        return jax.random.normal(keys[i], shape, jnp.float32) * scale

    def ru(i, shape):
        return jax.random.uniform(keys[i], shape, jnp.float32, 0.5, 1.5)

    x = jax.random.normal(keys[0], (N, inp, H, W), jnp.float32)
    if expand:
        pw1_w = rn(1, (hidden, inp, 1, 1))
        bn1 = (ru(2, (hidden,)), rn(3, (hidden,)), rn(4, (hidden,)),
               ru(5, (hidden,)))
    else:
        pw1_w = None
        bn1 = (None, None, None, None)
    dw_w = rn(6, (hidden, 1, k, k))
    bndw = (ru(7, (hidden,)), rn(8, (hidden,)), rn(9, (hidden,)),
            ru(10, (hidden,)))
    if use_se:
        se = (rn(11, (hidden // 4, hidden), 0.3), rn(12, (hidden // 4,)),
              rn(13, (hidden, hidden // 4), 0.3), rn(14, (hidden,)))
    else:
        se = (None, None, None, None)
    pw2_w = rn(15, (oup, hidden, 1, 1))
    bn2 = (ru(16, (oup,)), rn(17, (oup,)), rn(18, (oup,)), ru(19, (oup,)))

    fwd = jax.jit(functools.partial(
        mobilenet_block_forward,
        kernel_size=k, stride=stride, use_se=use_se, use_hs=use_hs,
        tile_rows=tile_rows, tile_m=tile_m))
    out = fwd(x, pw1_w, *bn1, dw_w, *bndw, *se, pw2_w, *bn2)
    out = jax.block_until_ready(out)

    ref = _reference(x, pw1_w, *bn1, dw_w, *bndw, *se, pw2_w, *bn2,
                     kernel_size=k, stride=stride, use_se=use_se,
                     use_hs=use_hs)
    assert out.shape == ref.shape, (name, out.shape, ref.shape)
    err = float(jnp.max(jnp.abs(out - ref)))
    scale = max(1.0, float(jnp.max(jnp.abs(ref))))
    # bf16 matmul inputs / bf16 activations & output with f32 accumulation
    assert err < 5e-2 * scale, (name, err, scale)
    return err


if __name__ == "__main__":
    key = jax.random.PRNGKey(0)
    k1, k2, k3 = jax.random.split(key, 3)

    # A: expand path, stride 1, SE, h-swish, identity residual, multi row-tile
    _run_case("expand_s1_se_hs_id", k1, N=2, inp=8, hidden=16, oup=8,
              H=16, W=16, k=3, stride=1, use_se=True, use_hs=True,
              tile_rows=8, tile_m=128)
    # B: inp == hidden (no expand), stride 2, SE, ReLU
    _run_case("noexpand_s2_se_relu", k2, N=2, inp=16, hidden=16, oup=24,
              H=16, W=16, k=3, stride=2, use_se=True, use_hs=False,
              tile_rows=4, tile_m=1024)
    # C: expand path, kernel 5, stride 2, no SE, h-swish
    _run_case("expand_k5_s2_nose_hs", k3, N=2, inp=8, hidden=24, oup=16,
              H=16, W=16, k=5, stride=2, use_se=False, use_hs=True,
              tile_rows=4, tile_m=1024)

    print("KERNEL_OK")
</pallas_src>

<mosaic_0001>
module attributes {stable_mosaic.version = 11 : i64} {
  func.func @kernel(%arg0: i32, %arg1: i32, %arg2: memref<1x18x24x128xbf16, #tpu.memory_space<vmem>>, %arg3: memref<128x128xbf16, #tpu.memory_space<vmem>>, %arg4: memref<1x128xf32, #tpu.memory_space<vmem>>, %arg5: memref<9x128xf32, #tpu.memory_space<vmem>>, %arg6: memref<1x128xf32, #tpu.memory_space<vmem>>, %arg7: memref<1x8x16x128xbf16, #tpu.memory_space<vmem>>, %arg8: memref<1x1x8x128xf32, #tpu.memory_space<vmem>>, %arg9: memref<10x24x128xbf16, #tpu.memory_space<vmem>>) attributes {dimension_semantics = [#tpu.dimension_semantics<parallel>, #tpu.dimension_semantics<parallel>], iteration_bounds = array<i64: 2, 2>, scalar_prefetch = 0 : i64, scratch_operands = 1 : i64, tpu.core_type = #tpu.core_type<tc>, window_params = [{transform_indices = @transform_0, window_bounds = array<i64: 1, 18, 24, 128>}, {pipeline_mode = #tpu.pipeline_mode<synchronous>, transform_indices = @transform_1, window_bounds = array<i64: 128, 128>}, {pipeline_mode = #tpu.pipeline_mode<synchronous>, transform_indices = @transform_2, window_bounds = array<i64: 1, 128>}, {pipeline_mode = #tpu.pipeline_mode<synchronous>, transform_indices = @transform_3, window_bounds = array<i64: 9, 128>}, {pipeline_mode = #tpu.pipeline_mode<synchronous>, transform_indices = @transform_4, window_bounds = array<i64: 1, 128>}, {transform_indices = @transform_5, window_bounds = array<i64: 1, 8, 16, 128>}, {transform_indices = @transform_6, window_bounds = array<i64: 1, 1, 8, 128>}]} {
    %c8_i32 = arith.constant 8 : i32
    %0 = arith.muli %arg1, %c8_i32 : i32
    %1 = tpu.assume_multiple %0, 8 : i32
    %c0 = arith.constant 0 : index
    %2 = arith.index_cast %1 : i32 to index
    %c0_0 = arith.constant 0 : index
    %c0_1 = arith.constant 0 : index
    %3 = vector.load %arg2[%c0, %2, %c0_0, %c0_1] : memref<1x18x24x128xbf16, #tpu.memory_space<vmem>>, vector<1x10x24x128xbf16>
    %4 = vector.shape_cast %3 : vector<1x10x24x128xbf16> to vector<10x24x128xbf16>
    %5 = vector.shape_cast %4 : vector<10x24x128xbf16> to vector<240x128xbf16>
    %c0_2 = arith.constant 0 : index
    %c0_3 = arith.constant 0 : index
    %6 = vector.load %arg3[%c0_2, %c0_3] : memref<128x128xbf16, #tpu.memory_space<vmem>>, vector<128x128xbf16>
    %cst = arith.constant dense<0.000000e+00> : vector<240x128xf32>
    %7 = tpu.matmul %5, %6, %cst {dimension_numbers = #tpu.dot_dimension_numbers<[1], [0], [0], [1], [0, 0, 1, 1], [], []>} : vector<240x128xbf16>, vector<128x128xbf16>, vector<240x128xf32> -> vector<240x128xf32>
    %c0_4 = arith.constant 0 : index
    %c0_5 = arith.constant 0 : index
    %8 = vector.load %arg4[%c0_4, %c0_5] : memref<1x128xf32, #tpu.memory_space<vmem>>, vector<1x128xf32>
    %9 = vector.broadcast %8 : vector<1x128xf32> to vector<240x128xf32>
    %10 = arith.addf %7, %9 : vector<240x128xf32>
    %cst_6 = arith.constant 3.000000e+00 : f32
    %11 = vector.broadcast %cst_6 : f32 to vector<240x128xf32>
    %12 = arith.addf %10, %11 : vector<240x128xf32>
    %cst_7 = arith.constant 0.000000e+00 : f32
    %cst_8 = arith.constant 6.000000e+00 : f32
    %13 = vector.broadcast %cst_7 : f32 to vector<240x128xf32>
    %14 = arith.maximumf %13, %12 : vector<240x128xf32>
    %15 = vector.broadcast %cst_8 : f32 to vector<240x128xf32>
    %16 = arith.minimumf %15, %14 : vector<240x128xf32>
    %17 = arith.mulf %10, %16 : vector<240x128xf32>
    %cst_9 = arith.constant 0.166666672 : f32
    %18 = vector.broadcast %cst_9 : f32 to vector<240x128xf32>
    %19 = arith.mulf %17, %18 : vector<240x128xf32>
    %20 = vector.shape_cast %19 : vector<240x128xf32> to vector<10x24x128xf32>
    %21 = arith.truncf %20 : vector<10x24x128xf32> to vector<10x24x128xbf16>
    %c0_10 = arith.constant 0 : index
    %c0_11 = arith.constant 0 : index
    %c0_12 = arith.constant 0 : index
    %22 = vector.load %arg9[%c0_10, %c0_11, %c0_12] : memref<10x24x128xbf16, #tpu.memory_space<vmem>>, vector<10x24x128xbf16>
    tpu.vector_store %arg9[%c0_10, %c0_11, %c0_12], %21 {strides = array<i32>} : memref<10x24x128xbf16, #tpu.memory_space<vmem>>, vector<10x24x128xbf16>,
    %cst_13 = arith.constant 0.000000e+00 : bf16
    %23 = vector.broadcast %cst_13 : bf16 to vector<10x1x128xbf16>
    %c0_14 = arith.constant 0 : index
    %c0_15 = arith.constant 0 : index
    %c0_16 = arith.constant 0 : index
    %24 = vector.load %arg9[%c0_14, %c0_15, %c0_16] : memref<10x24x128xbf16, #tpu.memory_space<vmem>>, vector<10x1x128xbf16>
    tpu.vector_store %arg9[%c0_14, %c0_15, %c0_16], %23 {strides = array<i32>} : memref<10x24x128xbf16, #tpu.memory_space<vmem>>, vector<10x1x128xbf16>,
    %cst_17 = arith.constant 0.000000e+00 : bf16
    %25 = vector.broadcast %cst_17 : bf16 to vector<10x7x128xbf16>
    %c0_18 = arith.constant 0 : index
    %c17 = arith.constant 17 : index
    %c0_19 = arith.constant 0 : index
    %26 = vector.load %arg9[%c0_18, %c17, %c0_19] : memref<10x24x128xbf16, #tpu.memory_space<vmem>>, vector<10x7x128xbf16>
    tpu.vector_store %arg9[%c0_18, %c17, %c0_19], %25 {strides = array<i32>} : memref<10x24x128xbf16, #tpu.memory_space<vmem>>, vector<10x7x128xbf16>,
    %c0_i32 = arith.constant 0 : i32
    %27 = arith.cmpi eq, %arg1, %c0_i32 : i32
    %28 = arith.extui %27 : i1 to i32
    %c0_i32_20 = arith.constant 0 : i32
    %29 = arith.cmpi ne, %28, %c0_i32_20 : i32
    scf.if %29 {
      %cst_72 = arith.constant 0.000000e+00 : bf16
      %111 = vector.broadcast %cst_72 : bf16 to vector<1x24x128xbf16>
      %c0_73 = arith.constant 0 : index
      %c0_74 = arith.constant 0 : index
      %c0_75 = arith.constant 0 : index
      %112 = vector.load %arg9[%c0_73, %c0_74, %c0_75] : memref<10x24x128xbf16, #tpu.memory_space<vmem>>, vector<1x24x128xbf16>
      tpu.vector_store %arg9[%c0_73, %c0_74, %c0_75], %111 {strides = array<i32>} : memref<10x24x128xbf16, #tpu.memory_space<vmem>>, vector<1x24x128xbf16>,
    } else {
    }
    %c1_i32 = arith.constant 1 : i32
    %30 = arith.cmpi eq, %arg1, %c1_i32 : i32
    %31 = arith.extui %30 : i1 to i32
    %c0_i32_21 = arith.constant 0 : i32
    %32 = arith.cmpi ne, %31, %c0_i32_21 : i32
    scf.if %32 {
      %cst_72 = arith.constant 0.000000e+00 : bf16
      %111 = vector.broadcast %cst_72 : bf16 to vector<1x24x128xbf16>
      %c9 = arith.constant 9 : index
      %c0_73 = arith.constant 0 : index
      %c0_74 = arith.constant 0 : index
      %112 = vector.load %arg9[%c9, %c0_73, %c0_74] : memref<10x24x128xbf16, #tpu.memory_space<vmem>>, vector<1x24x128xbf16>
      tpu.vector_store %arg9[%c9, %c0_73, %c0_74], %111 {strides = array<i32>} : memref<10x24x128xbf16, #tpu.memory_space<vmem>>, vector<1x24x128xbf16>,
    } else {
    }
    %cst_22 = arith.constant 0.000000e+00 : f32
    %33 = vector.broadcast %cst_22 : f32 to vector<8x16x128xf32>
    %c0_23 = arith.constant 0 : index
    %c0_24 = arith.constant 0 : index
    %34 = vector.load %arg5[%c0_23, %c0_24] : memref<9x128xf32, #tpu.memory_space<vmem>>, vector<1x128xf32>
    %c0_25 = arith.constant 0 : index
    %c0_26 = arith.constant 0 : index
    %c0_27 = arith.constant 0 : index
    %35 = vector.load %arg9[%c0_25, %c0_26, %c0_27] : memref<10x24x128xbf16, #tpu.memory_space<vmem>>, vector<8x16x128xbf16>
    %36 = arith.extf %35 : vector<8x16x128xbf16> to vector<8x16x128xf32>
    %37 = vector.shape_cast %34 : vector<1x128xf32> to vector<1x1x128xf32>
    %38 = vector.broadcast %37 : vector<1x1x128xf32> to vector<8x16x128xf32>
    %39 = arith.mulf %36, %38 : vector<8x16x128xf32>
    %40 = arith.addf %33, %39 : vector<8x16x128xf32>
    %c1 = arith.constant 1 : index
    %c0_28 = arith.constant 0 : index
    %41 = vector.load %arg5[%c1, %c0_28] : memref<9x128xf32, #tpu.memory_space<vmem>>, vector<1x128xf32>
    %c0_29 = arith.constant 0 : index
    %c1_30 = arith.constant 1 : index
    %c0_31 = arith.constant 0 : index
    %42 = vector.load %arg9[%c0_29, %c1_30, %c0_31] : memref<10x24x128xbf16, #tpu.memory_space<vmem>>, vector<8x16x128xbf16>
    %43 = arith.extf %42 : vector<8x16x128xbf16> to vector<8x16x128xf32>
    %44 = vector.shape_cast %41 : vector<1x128xf32> to vector<1x1x128xf32>
    %45 = vector.broadcast %44 : vector<1x1x128xf32> to vector<8x16x128xf32>
    %46 = arith.mulf %43, %45 : vector<8x16x128xf32>
    %47 = arith.addf %40, %46 : vector<8x16x128xf32>
    %c2 = arith.constant 2 : index
    %c0_32 = arith.constant 0 : index
    %48 = vector.load %arg5[%c2, %c0_32] : memref<9x128xf32, #tpu.memory_space<vmem>>, vector<1x128xf32>
    %c0_33 = arith.constant 0 : index
    %c2_34 = arith.constant 2 : index
    %c0_35 = arith.constant 0 : index
    %49 = vector.load %arg9[%c0_33, %c2_34, %c0_35] : memref<10x24x128xbf16, #tpu.memory_space<vmem>>, vector<8x16x128xbf16>
    %50 = arith.extf %49 : vector<8x16x128xbf16> to vector<8x16x128xf32>
    %51 = vector.shape_cast %48 : vector<1x128xf32> to vector<1x1x128xf32>
    %52 = vector.broadcast %51 : vector<1x1x128xf32> to vector<8x16x128xf32>
    %53 = arith.mulf %50, %52 : vector<8x16x128xf32>
    %54 = arith.addf %47, %53 : vector<8x16x128xf32>
    %c3 = arith.constant 3 : index
    %c0_36 = arith.constant 0 : index
    %55 = vector.load %arg5[%c3, %c0_36] : memref<9x128xf32, #tpu.memory_space<vmem>>, vector<1x128xf32>
    %c1_37 = arith.constant 1 : index
    %c0_38 = arith.constant 0 : index
    %c0_39 = arith.constant 0 : index
    %56 = vector.load %arg9[%c1_37, %c0_38, %c0_39] : memref<10x24x128xbf16, #tpu.memory_space<vmem>>, vector<8x16x128xbf16>
    %57 = arith.extf %56 : vector<8x16x128xbf16> to vector<8x16x128xf32>
    %58 = vector.shape_cast %55 : vector<1x128xf32> to vector<1x1x128xf32>
    %59 = vector.broadcast %58 : vector<1x1x128xf32> to vector<8x16x128xf32>
    %60 = arith.mulf %57, %59 : vector<8x16x128xf32>
    %61 = arith.addf %54, %60 : vector<8x16x128xf32>
    %c4 = arith.constant 4 : index
    %c0_40 = arith.constant 0 : index
    %62 = vector.load %arg5[%c4, %c0_40] : memref<9x128xf32, #tpu.memory_space<vmem>>, vector<1x128xf32>
    %c1_41 = arith.constant 1 : index
    %c1_42 = arith.constant 1 : index
    %c0_43 = arith.constant 0 : index
    %63 = vector.load %arg9[%c1_41, %c1_42, %c0_43] : memref<10x24x128xbf16, #tpu.memory_space<vmem>>, vector<8x16x128xbf16>
    %64 = arith.extf %63 : vector<8x16x128xbf16> to vector<8x16x128xf32>
    %65 = vector.shape_cast %62 : vector<1x128xf32> to vector<1x1x128xf32>
    %66 = vector.broadcast %65 : vector<1x1x128xf32> to vector<8x16x128xf32>
    %67 = arith.mulf %64, %66 : vector<8x16x128xf32>
    %68 = arith.addf %61, %67 : vector<8x16x128xf32>
    %c5 = arith.constant 5 : index
    %c0_44 = arith.constant 0 : index
    %69 = vector.load %arg5[%c5, %c0_44] : memref<9x128xf32, #tpu.memory_space<vmem>>, vector<1x128xf32>
    %c1_45 = arith.constant 1 : index
    %c2_46 = arith.constant 2 : index
    %c0_47 = arith.constant 0 : index
    %70 = vector.load %arg9[%c1_45, %c2_46, %c0_47] : memref<10x24x128xbf16, #tpu.memory_space<vmem>>, vector<8x16x128xbf16>
    %71 = arith.extf %70 : vector<8x16x128xbf16> to vector<8x16x128xf32>
    %72 = vector.shape_cast %69 : vector<1x128xf32> to vector<1x1x128xf32>
    %73 = vector.broadcast %72 : vector<1x1x128xf32> to vector<8x16x128xf32>
    %74 = arith.mulf %71, %73 : vector<8x16x128xf32>
    %75 = arith.addf %68, %74 : vector<8x16x128xf32>
    %c6 = arith.constant 6 : index
    %c0_48 = arith.constant 0 : index
    %76 = vector.load %arg5[%c6, %c0_48] : memref<9x128xf32, #tpu.memory_space<vmem>>, vector<1x128xf32>
    %c2_49 = arith.constant 2 : index
    %c0_50 = arith.constant 0 : index
    %c0_51 = arith.constant 0 : index
    %77 = vector.load %arg9[%c2_49, %c0_50, %c0_51] : memref<10x24x128xbf16, #tpu.memory_space<vmem>>, vector<8x16x128xbf16>
    %78 = arith.extf %77 : vector<8x16x128xbf16> to vector<8x16x128xf32>
    %79 = vector.shape_cast %76 : vector<1x128xf32> to vector<1x1x128xf32>
    %80 = vector.broadcast %79 : vector<1x1x128xf32> to vector<8x16x128xf32>
    %81 = arith.mulf %78, %80 : vector<8x16x128xf32>
    %82 = arith.addf %75, %81 : vector<8x16x128xf32>
    %c7 = arith.constant 7 : index
    %c0_52 = arith.constant 0 : index
    %83 = vector.load %arg5[%c7, %c0_52] : memref<9x128xf32, #tpu.memory_space<vmem>>, vector<1x128xf32>
    %c2_53 = arith.constant 2 : index
    %c1_54 = arith.constant 1 : index
    %c0_55 = arith.constant 0 : index
    %84 = vector.load %arg9[%c2_53, %c1_54, %c0_55] : memref<10x24x128xbf16, #tpu.memory_space<vmem>>, vector<8x16x128xbf16>
    %85 = arith.extf %84 : vector<8x16x128xbf16> to vector<8x16x128xf32>
    %86 = vector.shape_cast %83 : vector<1x128xf32> to vector<1x1x128xf32>
    %87 = vector.broadcast %86 : vector<1x1x128xf32> to vector<8x16x128xf32>
    %88 = arith.mulf %85, %87 : vector<8x16x128xf32>
    %89 = arith.addf %82, %88 : vector<8x16x128xf32>
    %c8 = arith.constant 8 : index
    %c0_56 = arith.constant 0 : index
    %90 = vector.load %arg5[%c8, %c0_56] : memref<9x128xf32, #tpu.memory_space<vmem>>, vector<1x128xf32>
    %c2_57 = arith.constant 2 : index
    %c2_58 = arith.constant 2 : index
    %c0_59 = arith.constant 0 : index
    %91 = vector.load %arg9[%c2_57, %c2_58, %c0_59] : memref<10x24x128xbf16, #tpu.memory_space<vmem>>, vector<8x16x128xbf16>
    %92 = arith.extf %91 : vector<8x16x128xbf16> to vector<8x16x128xf32>
    %93 = vector.shape_cast %90 : vector<1x128xf32> to vector<1x1x128xf32>
    %94 = vector.broadcast %93 : vector<1x1x128xf32> to vector<8x16x128xf32>
    %95 = arith.mulf %92, %94 : vector<8x16x128xf32>
    %96 = arith.addf %89, %95 : vector<8x16x128xf32>
    %c0_60 = arith.constant 0 : index
    %c0_61 = arith.constant 0 : index
    %97 = vector.load %arg6[%c0_60, %c0_61] : memref<1x128xf32, #tpu.memory_space<vmem>>, vector<1x128xf32>
    %98 = vector.shape_cast %97 : vector<1x128xf32> to vector<1x1x128xf32>
    %99 = vector.broadcast %98 : vector<1x1x128xf32> to vector<8x16x128xf32>
    %100 = arith.addf %96, %99 : vector<8x16x128xf32>
    %101 = arith.truncf %100 : vector<8x16x128xf32> to vector<8x16x128xbf16>
    %c0_62 = arith.constant 0 : index
    %c0_63 = arith.constant 0 : index
    %c0_64 = arith.constant 0 : index
    %c0_65 = arith.constant 0 : index
    %102 = vector.load %arg7[%c0_62, %c0_63, %c0_64, %c0_65] : memref<1x8x16x128xbf16, #tpu.memory_space<vmem>>, vector<1x8x16x128xbf16>
    %103 = vector.shape_cast %102 : vector<1x8x16x128xbf16> to vector<8x16x128xbf16>
    %104 = vector.shape_cast %101 : vector<8x16x128xbf16> to vector<1x8x16x128xbf16>
    tpu.vector_store %arg7[%c0_62, %c0_63, %c0_64, %c0_65], %104 {strides = array<i32>} : memref<1x8x16x128xbf16, #tpu.memory_space<vmem>>, vector<1x8x16x128xbf16>,
    %cst_66 = arith.constant dense<0.000000e+00> : vector<16x128xf32>
    %105 = vector.multi_reduction <add>, %100, %cst_66 [0] : vector<8x16x128xf32> to vector<16x128xf32>
    %cst_67 = arith.constant dense<0.000000e+00> : vector<128xf32>
    %106 = vector.multi_reduction <add>, %105, %cst_67 [0] : vector<16x128xf32> to vector<128xf32>
    %107 = vector.shape_cast %106 : vector<128xf32> to vector<1x128xf32>
    %108 = vector.shape_cast %107 : vector<1x128xf32> to vector<1x1x1x128xf32>
    %109 = vector.broadcast %108 : vector<1x1x1x128xf32> to vector<1x1x8x128xf32>
    %c0_68 = arith.constant 0 : index
    %c0_69 = arith.constant 0 : index
    %c0_70 = arith.constant 0 : index
    %c0_71 = arith.constant 0 : index
    %110 = vector.load %arg8[%c0_68, %c0_69, %c0_70, %c0_71] : memref<1x1x8x128xf32, #tpu.memory_space<vmem>>, vector<1x1x8x128xf32>
    tpu.vector_store %arg8[%c0_68, %c0_69, %c0_70, %c0_71], %109 {strides = array<i32>} : memref<1x1x8x128xf32, #tpu.memory_space<vmem>>, vector<1x1x8x128xf32>,
    return
  }
  func.func @transform_0(%arg0: i32, %arg1: i32) -> (i32, i32, i32, i32) {
    %c0_i32 = arith.constant 0 : i32
    %c0_i32_0 = arith.constant 0 : i32
    %c0_i32_1 = arith.constant 0 : i32
    %c0_i32_2 = arith.constant 0 : i32
    return %arg0, %c0_i32, %c0_i32_0, %c0_i32_1 : i32, i32, i32, i32
  }
  func.func @transform_1(%arg0: i32, %arg1: i32) -> (i32, i32) {
    %c0_i32 = arith.constant 0 : i32
    %c0_i32_0 = arith.constant 0 : i32
    %c0_i32_1 = arith.constant 0 : i32
    return %c0_i32, %c0_i32_0 : i32, i32
  }
  func.func @transform_2(%arg0: i32, %arg1: i32) -> (i32, i32) {
    %c0_i32 = arith.constant 0 : i32
    %c0_i32_0 = arith.constant 0 : i32
    %c0_i32_1 = arith.constant 0 : i32
    return %c0_i32, %c0_i32_0 : i32, i32
  }
  func.func @transform_3(%arg0: i32, %arg1: i32) -> (i32, i32) {
    %c0_i32 = arith.constant 0 : i32
    %c0_i32_0 = arith.constant 0 : i32
    %c0_i32_1 = arith.constant 0 : i32
    return %c0_i32, %c0_i32_0 : i32, i32
  }
  func.func @transform_4(%arg0: i32, %arg1: i32) -> (i32, i32) {
    %c0_i32 = arith.constant 0 : i32
    %c0_i32_0 = arith.constant 0 : i32
    %c0_i32_1 = arith.constant 0 : i32
    return %c0_i32, %c0_i32_0 : i32, i32
  }
  func.func @transform_5(%arg0: i32, %arg1: i32) -> (i32, i32, i32, i32) {
    %c0_i32 = arith.constant 0 : i32
    %c0_i32_0 = arith.constant 0 : i32
    %c0_i32_1 = arith.constant 0 : i32
    return %arg0, %arg1, %c0_i32, %c0_i32_0 : i32, i32, i32, i32
  }
  func.func @transform_6(%arg0: i32, %arg1: i32) -> (i32, i32, i32, i32) {
    %c0_i32 = arith.constant 0 : i32
    %c0_i32_0 = arith.constant 0 : i32
    %c0_i32_1 = arith.constant 0 : i32
    return %arg0, %arg1, %c0_i32, %c0_i32_0 : i32, i32, i32, i32
  }
}

module attributes {stable_mosaic.version = 11 : i64} {
  func.func @kernel(%arg0: i32, %arg1: i32, %arg2: memref<1x128x128xbf16, #tpu.memory_space<vmem>>, %arg3: memref<1x1x128xf32, #tpu.memory_space<vmem>>, %arg4: memref<128x128xbf16, #tpu.memory_space<vmem>>, %arg5: memref<1x128xf32, #tpu.memory_space<vmem>>, %arg6: memref<1x128x128xbf16, #tpu.memory_space<vmem>>, %arg7: memref<1x128x128xbf16, #tpu.memory_space<vmem>>) attributes {dimension_semantics = [#tpu.dimension_semantics<parallel>, #tpu.dimension_semantics<parallel>], iteration_bounds = array<i64: 2, 2>, scalar_prefetch = 0 : i64, scratch_operands = 0 : i64, tpu.core_type = #tpu.core_type<tc>, window_params = [{transform_indices = @transform_0, window_bounds = array<i64: 1, 128, 128>}, {transform_indices = @transform_1, window_bounds = array<i64: 1, 1, 128>}, {pipeline_mode = #tpu.pipeline_mode<synchronous>, transform_indices = @transform_2, window_bounds = array<i64: 128, 128>}, {pipeline_mode = #tpu.pipeline_mode<synchronous>, transform_indices = @transform_3, window_bounds = array<i64: 1, 128>}, {transform_indices = @transform_4, window_bounds = array<i64: 1, 128, 128>}, {transform_indices = @transform_5, window_bounds = array<i64: 1, 128, 128>}]} {
    %c0 = arith.constant 0 : index
    %c0_0 = arith.constant 0 : index
    %c0_1 = arith.constant 0 : index
    %0 = vector.load %arg2[%c0, %c0_0, %c0_1] : memref<1x128x128xbf16, #tpu.memory_space<vmem>>, vector<1x128x128xbf16>
    %1 = vector.shape_cast %0 : vector<1x128x128xbf16> to vector<128x128xbf16>
    %2 = arith.extf %1 : vector<128x128xbf16> to vector<128x128xf32>
    %c0_2 = arith.constant 0 : index
    %c0_3 = arith.constant 0 : index
    %c0_4 = arith.constant 0 : index
    %3 = vector.load %arg3[%c0_2, %c0_3, %c0_4] : memref<1x1x128xf32, #tpu.memory_space<vmem>>, vector<1x1x128xf32>
    %4 = vector.shape_cast %3 : vector<1x1x128xf32> to vector<1x128xf32>
    %5 = vector.broadcast %4 : vector<1x128xf32> to vector<128x128xf32>
    %6 = arith.mulf %2, %5 : vector<128x128xf32>
    %cst = arith.constant 3.000000e+00 : f32
    %7 = vector.broadcast %cst : f32 to vector<128x128xf32>
    %8 = arith.addf %6, %7 : vector<128x128xf32>
    %cst_5 = arith.constant 0.000000e+00 : f32
    %cst_6 = arith.constant 6.000000e+00 : f32
    %9 = vector.broadcast %cst_5 : f32 to vector<128x128xf32>
    %10 = arith.maximumf %9, %8 : vector<128x128xf32>
    %11 = vector.broadcast %cst_6 : f32 to vector<128x128xf32>
    %12 = arith.minimumf %11, %10 : vector<128x128xf32>
    %13 = arith.mulf %6, %12 : vector<128x128xf32>
    %cst_7 = arith.constant 0.166666672 : f32
    %14 = vector.broadcast %cst_7 : f32 to vector<128x128xf32>
    %15 = arith.mulf %13, %14 : vector<128x128xf32>
    %16 = arith.truncf %15 : vector<128x128xf32> to vector<128x128xbf16>
    %c0_8 = arith.constant 0 : index
    %c0_9 = arith.constant 0 : index
    %17 = vector.load %arg4[%c0_8, %c0_9] : memref<128x128xbf16, #tpu.memory_space<vmem>>, vector<128x128xbf16>
    %cst_10 = arith.constant dense<0.000000e+00> : vector<128x128xf32>
    %18 = tpu.matmul %16, %17, %cst_10 {dimension_numbers = #tpu.dot_dimension_numbers<[1], [0], [0], [1], [0, 0, 1, 1], [], []>} : vector<128x128xbf16>, vector<128x128xbf16>, vector<128x128xf32> -> vector<128x128xf32>
    %c0_11 = arith.constant 0 : index
    %c0_12 = arith.constant 0 : index
    %19 = vector.load %arg5[%c0_11, %c0_12] : memref<1x128xf32, #tpu.memory_space<vmem>>, vector<1x128xf32>
    %20 = vector.broadcast %19 : vector<1x128xf32> to vector<128x128xf32>
    %21 = arith.addf %18, %20 : vector<128x128xf32>
    %c0_13 = arith.constant 0 : index
    %c0_14 = arith.constant 0 : index
    %c0_15 = arith.constant 0 : index
    %22 = vector.load %arg6[%c0_13, %c0_14, %c0_15] : memref<1x128x128xbf16, #tpu.memory_space<vmem>>, vector<1x128x128xbf16>
    %23 = vector.shape_cast %22 : vector<1x128x128xbf16> to vector<128x128xbf16>
    %24 = arith.extf %23 : vector<128x128xbf16> to vector<128x128xf32>
    %25 = arith.addf %21, %24 : vector<128x128xf32>
    %26 = arith.truncf %25 : vector<128x128xf32> to vector<128x128xbf16>
    %c0_16 = arith.constant 0 : index
    %c0_17 = arith.constant 0 : index
    %c0_18 = arith.constant 0 : index
    %27 = vector.load %arg7[%c0_16, %c0_17, %c0_18] : memref<1x128x128xbf16, #tpu.memory_space<vmem>>, vector<1x128x128xbf16>
    %28 = vector.shape_cast %27 : vector<1x128x128xbf16> to vector<128x128xbf16>
    %29 = vector.shape_cast %26 : vector<128x128xbf16> to vector<1x128x128xbf16>
    tpu.vector_store %arg7[%c0_16, %c0_17, %c0_18], %29 {strides = array<i32>} : memref<1x128x128xbf16, #tpu.memory_space<vmem>>, vector<1x128x128xbf16>,
    return
  }
  func.func @transform_0(%arg0: i32, %arg1: i32) -> (i32, i32, i32) {
    %c0_i32 = arith.constant 0 : i32
    %c0_i32_0 = arith.constant 0 : i32
    return %arg0, %arg1, %c0_i32 : i32, i32, i32
  }
  func.func @transform_1(%arg0: i32, %arg1: i32) -> (i32, i32, i32) {
    %c0_i32 = arith.constant 0 : i32
    %c0_i32_0 = arith.constant 0 : i32
    %c0_i32_1 = arith.constant 0 : i32
    return %arg0, %c0_i32, %c0_i32_0 : i32, i32, i32
  }
  func.func @transform_2(%arg0: i32, %arg1: i32) -> (i32, i32) {
    %c0_i32 = arith.constant 0 : i32
    %c0_i32_0 = arith.constant 0 : i32
    %c0_i32_1 = arith.constant 0 : i32
    return %c0_i32, %c0_i32_0 : i32, i32
  }
  func.func @transform_3(%arg0: i32, %arg1: i32) -> (i32, i32) {
    %c0_i32 = arith.constant 0 : i32
    %c0_i32_0 = arith.constant 0 : i32
    %c0_i32_1 = arith.constant 0 : i32
    return %c0_i32, %c0_i32_0 : i32, i32
  }
  func.func @transform_4(%arg0: i32, %arg1: i32) -> (i32, i32, i32) {
    %c0_i32 = arith.constant 0 : i32
    %c0_i32_0 = arith.constant 0 : i32
    return %arg0, %arg1, %c0_i32 : i32, i32, i32
  }
  func.func @transform_5(%arg0: i32, %arg1: i32) -> (i32, i32, i32) {
    %c0_i32 = arith.constant 0 : i32
    %c0_i32_0 = arith.constant 0 : i32
    return %arg0, %arg1, %c0_i32 : i32, i32, i32
  }
}

</mosaic_0001>

<bundles_post_ra>
// kernel: mobilenet_block_forward.3
= control target key start
LH: loop header
LB: loop body
LE: loop exit
PB: predicated region body
PF: predicated region fallthrough
CT: control target
= control target key end

     0   :  { %s1236_s18 = smov 0   ;;  %s1238_s19 = smov 0   ;;  %s1400_s0 = inlined_call_operand.vmem [shape: bf16[2,256,128], index: 0, kind: input, shape index: {}]   ;;  %s1401_s1 = inlined_call_operand.vmem [shape: f32[2,1,128], index: 1, kind: input, shape index: {}]   ;;  %s1402_s2 = inlined_call_operand.vmem [shape: bf16[128,128], index: 2, kind: input, shape index: {}]   ;;  %s1403_s3 = inlined_call_operand.vmem [shape: f32[1,128], index: 3, kind: input, shape index: {}]   ;;  %s1404_s4 = inlined_call_operand.vmem [shape: bf16[2,256,128], index: 4, kind: input, shape index: {}]   ;;  %s1405_s5 = inlined_call_operand.vmem [shape: bf16[2,256,128], index: 5, kind: output, shape index: {}]  }
   0x1   :  { %s1240_s20 = smov 0   ;;  %s1242_s21 = smov 0  }
   0x2   :  { %s1244_s22 = smov 0  }
   0x3 LB: > { %s24_s23 = sadd.s32 1, %s1196_s20  ;;  %s27_s24 = sadd.s32 1, %s1200_s21  ;;  %s1204_s22 = sphi %s1244_s22, %s15_s22   ;;  %s1200_s21 = sphi %s1242_s21, %s1409_s21   ;;  %s1196_s20 = sphi %s1240_s20, %s1408_s20   ;;  %s1192_s19 = sphi %s1238_s19, %s1407_s19   ;;  %s1188_s18 = sphi %s1236_s18, %s1406_s18  }
   0x4   : > { %p25_p0 = scmp.ge.s32.totalorder %s24_s23, 2  ;;  %p875_p1 = scmp.ge.s32.totalorder %s1204_s22, 1 }
   0x5   : > { %p233_p2 = scmp.lt.s32.totalorder %s1204_s22, 5 }
   0x6   : > { %s1411_s23 = smov (%p25_p0, %s24_s23), 0  ;;  %s1413_s24 = smov (!%p25_p0, %s27_s24), %s1200_s21 }
   0x7   : > { %p234_p3 = pnand %p875_p1, %p233_p2  ;;  %p29_p4 = scmp.ge.s32.totalorder %s1413_s24, 2 }
   0x8   : > { %v1158_v0 = vld [vmem:[%s1402_s2] sm:$0xff] (!%p234_p3)   ;;  %s876_s27 = sshll.u32 (!%p234_p3), %s1188_s18, 4  ;;  %v1159_v1 = vld [vmem:[%s1402_s2 + $0x8] sm:$0xff] (!%p234_p3)   ;;  %p282_p5 = scmp.lt.s32.totalorder (!%p234_p3), %s1192_s19, 1  ;;  %v1160_v2 = vld [vmem:[%s1402_s2 + $0x10] sm:$0xff] (!%p234_p3)  }
   0x9   : > { %s1415_s24 = smov (%p29_p4, %s1413_s24), 0  ;;  %237 = sbr.rel (%p234_p3) target bundleno = 278 (0x116), region = 40 }
   0xa   : > { %1070 = vmatprep.subr.bf16.mxu0 (!%p234_p3), %v1158_v0  ;;  %1102 = vmatprep.subr.bf16.mxu1 (!%p234_p3), %v1158_v0  ;;  %p284_p6 = scmp.lt.s32.totalorder (!%p234_p3), %s876_s27, 31  ;;  %v1161_v3 = vld [vmem:[%s1402_s2 + $0x18] sm:$0xff] (!%p234_p3)   ;;  %v1162_v18 = vld [vmem:[%s1402_s2 + $0x20] sm:$0xff] (!%p234_p3)   ;;  %v1163_v35 = vld [vmem:[%s1402_s2 + $0x28] sm:$0xff] (!%p234_p3)  }
   0xb   : > { %1071 = vmatpush3.bf16.msra.mxu0 (!%p234_p3), %v1158_v0  ;;  %1110 = vmatpush3.bf16.msra.mxu1 (!%p234_p3), %v1158_v0  ;;  %v1164_v52 = vld [vmem:[%s1402_s2 + $0x30] sm:$0xff] (!%p234_p3)  }
   0xc   : > { %1072 = vmatprep.subr.bf16.mxu0 (!%p234_p3), %v1159_v1  ;;  %1103 = vmatprep.subr.bf16.mxu1 (!%p234_p3), %v1159_v1 }
   0xf   : > { %1073 = vmatpush3.bf16.msra.mxu0 (!%p234_p3), %v1159_v1  ;;  %1111 = vmatpush3.bf16.msra.mxu1 (!%p234_p3), %v1159_v1 }
  0x10   : > { %s1417_s19 = smov (!%p282_p5, %s1192_s19), 1  ;;  %s1419_s27 = smov (!%p284_p6, %s876_s27), 31  ;;  %1074 = vmatprep.subr.bf16.mxu0 %v1160_v2  ;;  %1104 = vmatprep.subr.bf16.mxu1 %v1160_v2 }
  0x11   : > { %s877_s7 = sshll.u32 %s1417_s19, 5  ;;  %s293_s10 = scalar_lea.vmem %s1401_s1, %s1417_s19 }
  0x12   : > { %s287_s11 = sadd.s32 %s877_s7, %s1419_s27  ;;  %v1292_v4 = vld [vmem:[%s293_s10] ss:$0 sm:$0xff] }
  0x13   : > { %s1281_s12 = sshll.u32 %s287_s11, 2  ;;  %1075 = vmatpush3.bf16.msra.mxu0 %v1160_v2  ;;  %1112 = vmatpush3.bf16.msra.mxu1 %v1160_v2 }
  0x14   : > { %s1290_s17 = scalar_lea.vmem %s1400_s0, %s1281_s12  ;;  %1076 = vmatprep.subr.bf16.mxu0 %v1161_v3  ;;  %1105 = vmatprep.subr.bf16.mxu1 %v1161_v3  ;;  %s1340_s8 = scalar_lea.vmem %s1404_s4, %s1281_s12 }
  0x15   : > { %v930_v5 = vld [vmem:[%s1290_s17] sm:$0xff]   ;;  %v1033_v7 = vld [vmem:[%s1290_s17 + $0x8] sm:$0xff]   ;;  %v1299_v13 = vld [vmem:[%s1290_s17 + $0x10] sm:$0xff]   ;;  %s1363_s14 = scalar_lea.vmem %s1405_s5, %s1281_s12 }
  0x16   : > { %v1036_v6 = vld [vmem:[%s1290_s17 + $0x20] sm:$0xff]   ;;  %v931_v8 = vunpack.c.l.bf16 %v930_v5  ;;  %v932_v9 = vunpack.c.h.bf16 %v930_v5  ;;  %v1037_v12 = vld [vmem:[%s1290_s17 + $0x28] sm:$0xff]   ;;  %v935_v14 = vunpack.c.l.bf16 %v1033_v7  ;;  %v936_v15 = vunpack.c.h.bf16 %v1033_v7  ;;  %v1038_v61 = vld [vmem:[%s1290_s17 + $0x30] sm:$0xff]  }
  0x17   : > { %v947_v10 = vunpack.c.l.bf16 %v1036_v6  ;;  %v948_v11 = vunpack.c.h.bf16 %v1036_v6  ;;  %v951_v16 = vunpack.c.l.bf16 %v1037_v12  ;;  %v952_v17 = vunpack.c.h.bf16 %v1037_v12  ;;  %1077 = vmatpush3.bf16.msra.mxu0 %v1161_v3  ;;  %1113 = vmatpush3.bf16.msra.mxu1 %v1161_v3  ;;  %v1035_v62 = vld [vmem:[%s1290_s17 + $0x18] sm:$0xff]  }
  0x18   : > { %v354_v19 = vmul.f32 %v931_v8, %v1292_v4  ;;  %v355_v20 = vmul.f32 %v932_v9, %v1292_v4  ;;  %v939_v22 = vunpack.c.l.bf16 %v1299_v13  ;;  %v356_v24 = vmul.f32 %v935_v14, %v1292_v4  ;;  %1078 = vmatprep.subr.bf16.mxu0 %v1162_v18  ;;  %1106 = vmatprep.subr.bf16.mxu1 %v1162_v18  ;;  %v1165_v8 = vld [vmem:[%s1402_s2 + $0x38] sm:$0xff]  }
  0x19   : > { %v362_v21 = vmul.f32 %v947_v10, %v1292_v4  ;;  %v363_v23 = vmul.f32 %v948_v11, %v1292_v4  ;;  %v357_v25 = vmul.f32 %v936_v15, %v1292_v4  ;;  %v364_v26 = vmul.f32 %v951_v16, %v1292_v4  ;;  %v1039_v14 = vld [vmem:[%s1290_s17 + $0x38] sm:$0xff]  }
  0x1a   : > { %v370_v27 = vadd.f32 3.0, %v354_v19  ;;  %v371_v28 = vadd.f32 3.0, %v355_v20  ;;  %v365_v30 = vmul.f32 %v952_v17, %v1292_v4  ;;  %v372_v32 = vadd.f32 3.0, %v356_v24 }
  0x1b   : > { %v378_v29 = vadd.f32 3.0, %v362_v21  ;;  %v379_v31 = vadd.f32 3.0, %v363_v23  ;;  %v373_v33 = vadd.f32 3.0, %v357_v25  ;;  %v380_v34 = vadd.f32 3.0, %v364_v26  ;;  %1079 = vmatpush3.bf16.msra.mxu0 %v1162_v18  ;;  %1114 = vmatpush3.bf16.msra.mxu1 %v1162_v18 }
  0x1c   : > { %v386_v36 = vmax.f32 %v370_v27, 0.0  ;;  %v387_v37 = vmax.f32 %v371_v28, 0.0  ;;  %v381_v39 = vadd.f32 3.0, %v365_v30  ;;  %v388_v41 = vmax.f32 %v372_v32, 0.0  ;;  %1080 = vmatprep.subr.bf16.mxu0 %v1163_v35  ;;  %1107 = vmatprep.subr.bf16.mxu1 %v1163_v35 }
  0x1d   : > { %v394_v38 = vmax.f32 %v378_v29, 0.0  ;;  %v395_v40 = vmax.f32 %v379_v31, 0.0  ;;  %v389_v42 = vmax.f32 %v373_v33, 0.0  ;;  %v396_v43 = vmax.f32 %v380_v34, 0.0 }
  0x1e   : > { %v402_v44 = vmin.f32 %v386_v36, 6.0  ;;  %v403_v45 = vmin.f32 %v387_v37, 6.0  ;;  %v397_v47 = vmax.f32 %v381_v39, 0.0  ;;  %v404_v49 = vmin.f32 %v388_v41, 6.0 }
  0x1f   : > { %v410_v46 = vmin.f32 %v394_v38, 6.0  ;;  %v411_v48 = vmin.f32 %v395_v40, 6.0  ;;  %v405_v50 = vmin.f32 %v389_v42, 6.0  ;;  %v412_v51 = vmin.f32 %v396_v43, 6.0  ;;  %1081 = vmatpush3.bf16.msra.mxu0 %v1163_v35  ;;  %1115 = vmatpush3.bf16.msra.mxu1 %v1163_v35 }
  0x20   : > { %v418_v53 = vmul.f32 %v402_v44, %v354_v19  ;;  %v419_v54 = vmul.f32 %v403_v45, %v355_v20  ;;  %v413_v56 = vmin.f32 %v397_v47, 6.0  ;;  %v420_v58 = vmul.f32 %v404_v49, %v356_v24  ;;  %1082 = vmatprep.subr.bf16.mxu0 %v1164_v52  ;;  %1108 = vmatprep.subr.bf16.mxu1 %v1164_v52 }
  0x21   : > { %v426_v55 = vmul.f32 %v410_v46, %v362_v21  ;;  %v427_v57 = vmul.f32 %v411_v48, %v363_v23  ;;  %v421_v59 = vmul.f32 %v405_v50, %v357_v25  ;;  %v428_v60 = vmul.f32 %v412_v51, %v364_v26 }
  0x22   : > { %v434_v63 = vmul.f32 0.16666667, %v418_v53  ;;  %v435_v0 = vmul.f32 0.16666667, %v419_v54  ;;  %v429_v2 = vmul.f32 %v413_v56, %v365_v30  ;;  %v436_v5 = vmul.f32 0.16666667, %v420_v58 }
  0x23   : > { %v442_v1 = vmul.f32 0.16666667, %v426_v55  ;;  %v443_v3 = vmul.f32 0.16666667, %v427_v57  ;;  %v437_v6 = vmul.f32 0.16666667, %v421_v59  ;;  %v940_v7 = vunpack.c.h.bf16 %v1299_v13  ;;  %1083 = vmatpush3.bf16.msra.mxu0 %v1164_v52  ;;  %1116 = vmatpush3.bf16.msra.mxu1 %v1164_v52 }
  0x24   : > { %v450_v9 = vpack.c.bf16 %v435_v0, %v434_v63  ;;  %v444_v10 = vmul.f32 0.16666667, %v428_v60  ;;  %v445_v11 = vmul.f32 0.16666667, %v429_v2  ;;  %v358_v12 = vmul.f32 %v939_v22, %v1292_v4  ;;  %1084 = vmatprep.subr.bf16.mxu0 %v1165_v8  ;;  %1109 = vmatprep.subr.bf16.mxu1 %v1165_v8 }
  0x25   : > { %v454_v15 = vpack.c.bf16 %v443_v3, %v442_v1  ;;  %v451_v16 = vpack.c.bf16 %v437_v6, %v436_v5  ;;  %v359_v17 = vmul.f32 %v940_v7, %v1292_v4  ;;  %v955_v18 = vunpack.c.l.bf16 %v1038_v61 }
  0x26   : > { %1086 = vmatprep.mubr.bf16.mxu0 %v450_v9  ;;  %v455_v19 = vpack.c.bf16 %v445_v11, %v444_v10  ;;  %v374_v20 = vadd.f32 3.0, %v358_v12  ;;  %v956_v21 = vunpack.c.h.bf16 %v1038_v61  ;;  %v943_v23 = vunpack.c.l.bf16 %v1035_v62  ;;  %v1040_v10 = vld [vmem:[%s1340_s8 + $0x8] sm:$0xff]  }
  0x27   : > { %v375_v24 = vadd.f32 3.0, %v359_v17  ;;  %v366_v25 = vmul.f32 %v955_v18, %v1292_v4  ;;  %v944_v26 = vunpack.c.h.bf16 %v1035_v62  ;;  %v959_v27 = vunpack.c.l.bf16 %v1039_v14  ;;  %1094 = vmatprep.mubr.bf16.mxu1 %v454_v15  ;;  %1085 = vmatpush3.bf16.msra.mxu0 %v1165_v8  ;;  %v1044_v11 = vld [vmem:[%s1340_s8 + $0x28] sm:$0xff]   ;;  %v1349_v15 = vld [vmem:[%s1403_s3] ss:$0 sm:$0xff] }
  0x28   : > { %v390_v13 = vmax.f32 %v374_v20, 0.0  ;;  %v367_v22 = vmul.f32 %v956_v21, %v1292_v4  ;;  %v360_v28 = vmul.f32 %v943_v23, %v1292_v4  ;;  %v960_v29 = vunpack.c.h.bf16 %v1039_v14  ;;  %1117 = vmatpush3.bf16.msra.mxu1 %v1165_v8  ;;  %v1043_v14 = vld [vmem:[%s1340_s8 + $0x20] sm:$0xff]  }
  0x29   : > { %v391_v30 = vmax.f32 %v375_v24, 0.0  ;;  %v382_v31 = vadd.f32 3.0, %v366_v25  ;;  %v361_v32 = vmul.f32 %v944_v26, %v1292_v4  ;;  %v368_v33 = vmul.f32 %v959_v27, %v1292_v4 }
  0x2a   : > { %v406_v34 = vmin.f32 %v390_v13, 6.0  ;;  %v383_v35 = vadd.f32 3.0, %v367_v22  ;;  %v376_v36 = vadd.f32 3.0, %v360_v28  ;;  %v369_v37 = vmul.f32 %v960_v29, %v1292_v4  ;;  %1087 = vmatmul.mubr.bf16.vlgmr.msra.gmra.mrb[0].mxu0 %v451_v16 }
  0x2b   : > { %v407_v38 = vmin.f32 %v391_v30, 6.0  ;;  %v398_v39 = vmax.f32 %v382_v31, 0.0  ;;  %v377_v40 = vadd.f32 3.0, %v361_v32  ;;  %v384_v41 = vadd.f32 3.0, %v368_v33  ;;  %1095 = vmatmul.mubr.bf16.vlgmr.msra.gmra.mrb[0].mxu1 %v455_v19 }
  0x2c   : > { %v422_v42 = vmul.f32 %v406_v34, %v358_v12  ;;  %v399_v43 = vmax.f32 %v383_v35, 0.0  ;;  %v392_v44 = vmax.f32 %v376_v36, 0.0  ;;  %v385_v45 = vadd.f32 3.0, %v369_v37  ;;  %v962_v12 = vld [vmem:[%s1340_s8] sm:$0xff]  }
  0x2d   : > { %v423_v46 = vmul.f32 %v407_v38, %v359_v17  ;;  %v414_v47 = vmin.f32 %v398_v39, 6.0  ;;  %v393_v48 = vmax.f32 %v377_v40, 0.0  ;;  %v400_v49 = vmax.f32 %v384_v41, 0.0 }
  0x2e   : > { %v438_v50 = vmul.f32 0.16666667, %v422_v42  ;;  %v415_v51 = vmin.f32 %v399_v43, 6.0  ;;  %v408_v52 = vmin.f32 %v392_v44, 6.0  ;;  %v401_v4 = vmax.f32 %v385_v45, 0.0 }
  0x2f   : > { %v439_v53 = vmul.f32 0.16666667, %v423_v46  ;;  %v430_v54 = vmul.f32 %v414_v47, %v366_v25  ;;  %v409_v55 = vmin.f32 %v393_v48, 6.0  ;;  %v416_v56 = vmin.f32 %v400_v49, 6.0  ;;  %v1042_v47 = vld [vmem:[%s1340_s8 + $0x18] sm:$0xff]  }
  0x30   : > { %v431_v57 = vmul.f32 %v415_v51, %v367_v22  ;;  %v424_v58 = vmul.f32 %v408_v52, %v360_v28  ;;  %v417_v59 = vmin.f32 %v401_v4, 6.0  ;;  %v967_v17 = vunpack.c.l.bf16 %v1040_v10  ;;  %v1041_v51 = vld [vmem:[%s1340_s8 + $0x10] sm:$0xff]  }
  0x31   : > { %v452_v60 = vpack.c.bf16 %v439_v53, %v438_v50  ;;  %v446_v61 = vmul.f32 0.16666667, %v430_v54  ;;  %v425_v62 = vmul.f32 %v409_v55, %v361_v32  ;;  %v432_v63 = vmul.f32 %v416_v56, %v368_v33  ;;  %v1046_v50 = vld [vmem:[%s1340_s8 + $0x38] sm:$0xff]   ;;  %v1045_v55 = vld [vmem:[%s1340_s8 + $0x30] sm:$0xff]  }
  0x32   : > { %v447_v0 = vmul.f32 0.16666667, %v431_v57  ;;  %v440_v1 = vmul.f32 0.16666667, %v424_v58  ;;  %v433_v2 = vmul.f32 %v417_v59, %v369_v37  ;;  %v983_v19 = vunpack.c.l.bf16 %v1044_v11 }
  0x33   : > { %1090 = vmatprep.mubr.bf16.mxu0 %v452_v60  ;;  %v441_v3 = vmul.f32 0.16666667, %v425_v62  ;;  %v448_v5 = vmul.f32 0.16666667, %v432_v63  ;;  %v963_v20 = vunpack.c.l.bf16 %v962_v12  ;;  %v979_v21 = vunpack.c.l.bf16 %v1043_v14 }
  0x34   : > { %v456_v6 = vpack.c.bf16 %v447_v0, %v446_v61  ;;  %v449_v7 = vmul.f32 0.16666667, %v433_v2  ;;  %v968_v27 = vunpack.c.h.bf16 %v1040_v10  ;;  %v984_v13 = vunpack.c.h.bf16 %v1044_v11 }
  0x35   : > { %v453_v8 = vpack.c.bf16 %v441_v3, %v440_v1  ;;  %v964_v31 = vunpack.c.h.bf16 %v962_v12  ;;  %v980_v32 = vunpack.c.h.bf16 %v1043_v14  ;;  %v975_v54 = vunpack.c.l.bf16 %v1042_v47 }
  0x36   : > { %1098 = vmatprep.mubr.bf16.mxu1 %v456_v6  ;;  %v457_v9 = vpack.c.bf16 %v449_v7, %v448_v5  ;;  %v991_v58 = vunpack.c.l.bf16 %v1046_v50  ;;  %v971_v60 = vunpack.c.l.bf16 %v1041_v51  ;;  %v976_v61 = vunpack.c.h.bf16 %v1042_v47 }
  0x37   : > { %1091 = vmatmul.mubr.bf16.gmra.mrb[4].mxu0 %v453_v8  ;;  %v992_v2 = vunpack.c.h.bf16 %v1046_v50  ;;  %v972_v3 = vunpack.c.h.bf16 %v1041_v51  ;;  %v987_v6 = vunpack.c.l.bf16 %v1045_v55  ;;  %v988_v10 = vunpack.c.h.bf16 %v1045_v55 }
  0x38   : > { %1099 = vmatmul.mubr.bf16.gmra.mrb[4].mxu1 %v457_v9 }
  0xfd   : > { %v1088_v16 = vpop.f32.mrb[0].mxu0 }
  0xfe   : > { %v1096_v18 = vpop.f32.mrb[0].mxu1  ;;  %v572_v23 = vadd.f32 %v1088_v16, %v1349_v15  ;;  %v563_v25 = vpop.f32.mrb[1].mxu0 }
  0xff   : > { %v604_v24 = vadd.f32 %v1096_v18, %v1349_v15  ;;  %v595_v26 = vpop.f32.mrb[1].mxu1  ;;  %v564_v22 = vadd.f32 %v1349_v15, %v563_v25  ;;  %v1089_v29 = vpop.f32.mrb[2].mxu0 }
 0x100   : > { %v596_v28 = vadd.f32 %v1349_v15, %v595_v26  ;;  %v1097_v30 = vpop.f32.mrb[2].mxu1  ;;  %v575_v33 = vadd.f32 %v1089_v29, %v1349_v15  ;;  %v566_v35 = vpop.f32.mrb[3].mxu0  ;;  %v660_v39 = vadd.f32 %v967_v17, %v572_v23 }
 0x101   : > { %v607_v34 = vadd.f32 %v1097_v30, %v1349_v15  ;;  %v598_v36 = vpop.f32.mrb[3].mxu1  ;;  %v567_v37 = vadd.f32 %v1349_v15, %v566_v35  ;;  %v668_v40 = vadd.f32 %v983_v19, %v604_v24  ;;  %v658_v43 = vadd.f32 %v963_v20, %v564_v22 }
 0x102   : > { %v599_v38 = vadd.f32 %v1349_v15, %v598_v36  ;;  %v661_v41 = vadd.f32 %v968_v27, %v575_v33  ;;  %v666_v44 = vadd.f32 %v979_v21, %v596_v28 }
 0x103   : > { %v669_v42 = vadd.f32 %v984_v13, %v607_v34  ;;  %v659_v45 = vadd.f32 %v964_v31, %v567_v37 }
 0x104   : > { %v667_v46 = vadd.f32 %v980_v32, %v599_v38  ;;  %v1001_v48 = vpack.c.bf16 %v661_v41, %v660_v39 }
 0x105   : > { %v1021_v49 = vpack.c.bf16 %v669_v42, %v668_v40  ;;  %v996_v52 = vpack.c.bf16 %v659_v45, %v658_v43 }
 0x106   : > { %v1016_v4 = vpack.c.bf16 %v667_v46, %v666_v44  ;;  %1047 = vst [vmem:[%s1363_s14 + $0x8] sm:$0xff] %v1001_v48  }
 0x107   : > { %1051 = vst [vmem:[%s1363_s14 + $0x28] sm:$0xff] %v1021_v49   ;;  %997 = vst [vmem:[%s1363_s14] sm:$0xff] %v996_v52  }
 0x108   : > { %1050 = vst [vmem:[%s1363_s14 + $0x20] sm:$0xff] %v1016_v4  }
 0x10a   : > { %v1092_v53 = vpop.f32.mrb[4].mxu0 }
 0x10b   : > { %v588_v56 = vadd.f32 %v1092_v53, %v1349_v15  ;;  %v1100_v57 = vpop.f32.mrb[4].mxu1  ;;  %v579_v59 = vpop.f32.mrb[5].mxu0 }
 0x10c   : > { %v620_v62 = vadd.f32 %v1100_v57, %v1349_v15  ;;  %v580_v63 = vadd.f32 %v1349_v15, %v579_v59  ;;  %v611_v0 = vpop.f32.mrb[5].mxu1  ;;  %v1093_v1 = vpop.f32.mrb[6].mxu0 }
 0x10d   : > { %v612_v5 = vadd.f32 %v1349_v15, %v611_v0  ;;  %v591_v7 = vadd.f32 %v1093_v1, %v1349_v15  ;;  %v1101_v8 = vpop.f32.mrb[6].mxu1  ;;  %v582_v9 = vpop.f32.mrb[7].mxu0  ;;  %v664_v16 = vadd.f32 %v975_v54, %v588_v56 }
 0x10e   : > { %v623_v11 = vadd.f32 %v1101_v8, %v1349_v15  ;;  %v583_v12 = vadd.f32 %v1349_v15, %v582_v9  ;;  %v614_v14 = vpop.f32.mrb[7].mxu1  ;;  %v672_v19 = vadd.f32 %v991_v58, %v620_v62  ;;  %v662_v20 = vadd.f32 %v971_v60, %v580_v63 }
 0x10f   : > { %v665_v17 = vadd.f32 %v976_v61, %v591_v7  ;;  %v615_v18 = vadd.f32 %v1349_v15, %v614_v14  ;;  %v670_v24 = vadd.f32 %v987_v6, %v612_v5 }
 0x110   : > { %v673_v21 = vadd.f32 %v992_v2, %v623_v11  ;;  %v663_v23 = vadd.f32 %v972_v3, %v583_v12 }
 0x111   : > { %v1011_v25 = vpack.c.bf16 %v665_v17, %v664_v16  ;;  %v671_v26 = vadd.f32 %v988_v10, %v615_v18 }
 0x112   : > { %v1031_v27 = vpack.c.bf16 %v673_v21, %v672_v19  ;;  %v1006_v13 = vpack.c.bf16 %v663_v23, %v662_v20 }
 0x113   : > { %1049 = vst [vmem:[%s1363_s14 + $0x18] sm:$0xff] %v1011_v25   ;;  %v1026_v22 = vpack.c.bf16 %v671_v26, %v670_v24 }
 0x114   : > { %1053 = vst [vmem:[%s1363_s14 + $0x38] sm:$0xff] %v1031_v27   ;;  %1048 = vst [vmem:[%s1363_s14 + $0x10] sm:$0xff] %v1006_v13  }
 0x115   : > { %1052 = vst [vmem:[%s1363_s14 + $0x30] sm:$0xff] %v1026_v22  }
 0x116 PF: > { %s15_s22 = sadd.s32 1, %s1204_s22   ;;  %s1406_s18 = smov %s1196_s20 }
 0x117   : > { %p12_p7 = scmp.ge.s32.totalorder %s15_s22, 6   ;;  %s1407_s19 = smov %s1200_s21 }
 0x118   : > { %s1408_s20 = smov %s1411_s23  ;;  %s1409_s21 = smov %s1415_s24 }
 0x119   :  { %14 = sbr.rel (!%p12_p7) target bundleno = 3 (0x3), region = 76 }

// kernel: mobilenet_block_forward.2
= control target key start
LH: loop header
LB: loop body
LE: loop exit
PB: predicated region body
PF: predicated region fallthrough
CT: control target
= control target key end

     0   :  { %s2961_s21 = smov 0   ;;  %s2963_s22 = smov 0   ;;  %s3993_s0 = inlined_call_operand.vmem [shape: bf16[2,18,24,128], index: 0, kind: input, shape index: {}]   ;;  %s3994_s1 = inlined_call_operand.vmem [shape: bf16[128,128], index: 1, kind: input, shape index: {}]   ;;  %s3995_s2 = inlined_call_operand.vmem [shape: f32[1,128], index: 2, kind: input, shape index: {}]   ;;  %s3996_s3 = inlined_call_operand.vmem [shape: f32[9,128], index: 3, kind: input, shape index: {}]   ;;  %s3997_s4 = inlined_call_operand.vmem [shape: f32[1,128], index: 4, kind: input, shape index: {}]   ;;  %s3998_s5 = inlined_call_operand.vmem [shape: bf16[2,16,16,128], index: 5, kind: output, shape index: {0}]   ;;  %s3999_s6 = inlined_call_operand.vmem [shape: f32[2,2,8,128], index: 6, kind: output, shape index: {1}]  }
   0x1   :  { %s2965_s23 = smov 0   ;;  %s2967_s24 = smov 0  }
   0x2   :  { %s2969_s25 = smov 0  }
   0x3 LB: > { %s26_s26 = sadd.s32 1, %s2912_s23  ;;  %s29_s27 = sadd.s32 1, %s2916_s24  ;;  %s2920_s25 = sphi %s2969_s25, %s17_s25   ;;  %s2916_s24 = sphi %s2967_s24, %s4147_s24   ;;  %s2912_s23 = sphi %s2965_s23, %s4146_s23   ;;  %s2908_s22 = sphi %s2963_s22, %s4145_s22   ;;  %s2904_s21 = sphi %s2961_s21, %s4144_s21  }
   0x4   : > { %p27_p0 = scmp.ge.s32.totalorder %s26_s26, 2  ;;  %p2363_p1 = scmp.ge.s32.totalorder %s2920_s25, 1 }
   0x5   : > { %p231_p2 = scmp.lt.s32.totalorder %s2920_s25, 5 }
   0x6   : > { %s4149_s26 = smov (%p27_p0, %s26_s26), 0  ;;  %s4151_s27 = smov (!%p27_p0, %s29_s27), %s2916_s24 }
   0x7   : > { %p232_p3 = pnand %p2363_p1, %p231_p2  ;;  %p31_p4 = scmp.ge.s32.totalorder %s4151_s27, 2 }
   0x9   : > { %s4153_s27 = smov (%p31_p4, %s4151_s27), 0  ;;  %235 = sbr.rel (%p232_p3) target bundleno = 557 (0x22d), region = 40 }
  0x10   : > { %v2859_v0 = vld [vmem:[%s3994_s1] sm:$0xff]   ;;  %v2922_v1 = vmov 0.0   ;;  %v2860_v2 = vld [vmem:[%s3994_s1 + $0x8] sm:$0xff]   ;;  %p274_p5 = scmp.lt.s32.totalorder %s2908_s22, 1  ;;  %s2365_s8 = sshll.u32 %s2904_s21, 3  ;;  %vm2923_vm0 = vmmov 0  }
  0x11   : > { %2722 = vmatprep.subr.bf16.mxu0 %v2922_v1  ;;  %2798 = vmatprep.subr.bf16.mxu1 %v2922_v1  ;;  %p282_p6 = scmp.lt.s32.totalorder %s2365_s8, 15  ;;  %v2861_v3 = vld [vmem:[%s3994_s1 + $0x10] sm:$0xff]   ;;  %p292_p7 = scmp.lt.s32.totalorder %s2904_s21, 1  ;;  %v2862_v4 = vld [vmem:[%s3994_s1 + $0x18] sm:$0xff]   ;;  %v2863_v5 = vld [vmem:[%s3994_s1 + $0x20] sm:$0xff]   ;;  %vm957_vm1 = vcmask 1040384  }
  0x12   : > { %2723 = vmatpush3.bf16.msra.mxu0 %v2859_v0  ;;  %2806 = vmatpush3.bf16.msra.mxu1 %v2859_v0  ;;  %s4155_s22 = smov (!%p274_p5, %s2908_s22), 1  ;;  %s2458_s28 = smul.u32 96, %s2904_s21  ;;  %v2864_v6 = vld [vmem:[%s3994_s1 + $0x28] sm:$0xff]   ;;  %v2865_v7 = vld [vmem:[%s3994_s1 + $0x30] sm:$0xff]   ;;  %v2866_v8 = vld [vmem:[%s3994_s1 + $0x38] sm:$0xff]   ;;  %vm990_vm3 = vcmask 1043456  }
  0x13   : > { %2724 = vmatprep.subr.bf16.mxu0 %v2922_v1  ;;  %2799 = vmatprep.subr.bf16.mxu1 %v2922_v1  ;;  %s2814_s11 = smul.u32 216, %s4155_s22  ;;  %s4157_s8 = smov (!%p282_p6, %s2365_s8), 15  ;;  %v3105_v24 = vld [vmem:[%s3995_s2] ss:$0 sm:$0xff]  ;;  %vm958_vm2 = vsmask.f32 256 }
  0x14   : > { %2738 = vmatprep.mubr.msk.bf16.mxu0 %vm2923_vm0, %v2922_v1  ;;  %2770 = vmatprep.mubr.msk.bf16.mxu1 %vm2923_vm0, %v2922_v1  ;;  %s2367_s12 = sshll.u32 %s4155_s22, 5  ;;  %s2366_s13 = sshll.u32 %s4157_s8, 1  ;;  %vm991_vm4 = vsmask.f32 7938  ;;  %vm3121_vm5 = vmand %vm957_vm1, %vm958_vm2 }
  0x15   : > { %s278_s18 = scalar_lea.vmem %s3993_s0, %s2814_s11  ;;  %s286_s19 = sadd.s32 %s2367_s12, %s2366_s13  ;;  %vm3127_vm6 = vmand %vm990_vm3, %vm991_vm4 }
  0x16   : > { %2725 = vmatpush3.bf16.msra.mxu0 %v2860_v2  ;;  %2807 = vmatpush3.bf16.msra.mxu1 %v2860_v2  ;;  %s2368_s20 = sshll.u32 %s286_s19, 2  ;;  %s2369_s8 = sshll.u32 %s4155_s22, 1 }
  0x17   : > { %2726 = vmatprep.subr.bf16.mxu0 %v2922_v1  ;;  %2800 = vmatprep.subr.bf16.mxu1 %v2922_v1  ;;  %s3030_s7 = scalar_lea.vmem %s3998_s5, %s2368_s20  ;;  %s3037_s11 = scalar_lea.vmem %s278_s18, %s2458_s28 }
  0x18   : > { %s293_s9 = scalar_select %p292_p7, %s2904_s21, 1  ;;  %v2867_v9 = vld [vmem:[%s3037_s11] sm:$0xff]   ;;  %v2869_v11 = vld [vmem:[%s3037_s11 + $0x8] sm:$0xff]   ;;  %v2871_v13 = vld [vmem:[%s3037_s11 + $0x10] sm:$0xff]  }
  0x19   : > { %v2868_v10 = vld [vmem:[%s3037_s11 + $0x40] sm:$0xff]   ;;  %v2870_v12 = vld [vmem:[%s3037_s11 + $0x48] sm:$0xff]   ;;  %v2872_v14 = vld [vmem:[%s3037_s11 + $0x50] sm:$0xff]   ;;  %p2428_p8 = scmp.ne.s32.totalorder %s2904_s21, 0 }
  0x1a   : > { %2727 = vmatpush3.bf16.msra.mxu0 %v2861_v3  ;;  %2808 = vmatpush3.bf16.msra.mxu1 %v2861_v3  ;;  %s295_s12 = sadd.s32 %s2369_s8, %s293_s9  ;;  %v2873_v15 = vld [vmem:[%s3037_s11 + $0x18] sm:$0xff]   ;;  %v2875_v17 = vld [vmem:[%s3037_s11 + $0x20] sm:$0xff]   ;;  %v2877_v19 = vld [vmem:[%s3037_s11 + $0x28] sm:$0xff]  }
  0x1b   : > { %2728 = vmatprep.subr.bf16.mxu0 %v2922_v1  ;;  %2801 = vmatprep.subr.bf16.mxu1 %v2922_v1  ;;  %s2370_s13 = sshll.u32 %s295_s12, 3  ;;  %v2874_v16 = vld [vmem:[%s3037_s11 + $0x58] sm:$0xff]   ;;  %v2876_v18 = vld [vmem:[%s3037_s11 + $0x60] sm:$0xff]   ;;  %v2878_v20 = vld [vmem:[%s3037_s11 + $0x68] sm:$0xff]  }
  0x1c   : > { %s3044_s17 = scalar_lea.vmem %s3999_s6, %s2370_s13  ;;  %v2879_v21 = vld [vmem:[%s3037_s11 + $0x30] sm:$0xff]   ;;  %v2881_v23 = vld [vmem:[%s3037_s11 + $0x38] sm:$0xff]  }
  0x1d   : > { %v2880_v22 = vld [vmem:[%s3037_s11 + $0x70] sm:$0xff]  }
  0x1e   : > { %2729 = vmatpush3.bf16.msra.mxu0 %v2862_v4  ;;  %2809 = vmatpush3.bf16.msra.mxu1 %v2862_v4 }
  0x1f   : > { %2730 = vmatprep.subr.bf16.mxu0 %v2922_v1  ;;  %2802 = vmatprep.subr.bf16.mxu1 %v2922_v1 }
  0x22   : > { %2731 = vmatpush3.bf16.msra.mxu0 %v2863_v5  ;;  %2810 = vmatpush3.bf16.msra.mxu1 %v2863_v5 }
  0x23   : > { %2732 = vmatprep.subr.bf16.mxu0 %v2922_v1  ;;  %2803 = vmatprep.subr.bf16.mxu1 %v2922_v1 }
  0x26   : > { %2733 = vmatpush3.bf16.msra.mxu0 %v2864_v6  ;;  %2811 = vmatpush3.bf16.msra.mxu1 %v2864_v6 }
  0x27   : > { %2734 = vmatprep.subr.bf16.mxu0 %v2922_v1  ;;  %2804 = vmatprep.subr.bf16.mxu1 %v2922_v1 }
  0x2a   : > { %2735 = vmatpush3.bf16.msra.mxu0 %v2865_v7  ;;  %2812 = vmatpush3.bf16.msra.mxu1 %v2865_v7 }
  0x2b   : > { %2736 = vmatprep.subr.bf16.mxu0 %v2922_v1  ;;  %2805 = vmatprep.subr.bf16.mxu1 %v2922_v1 }
  0x2e   : > { %2737 = vmatpush3.bf16.msra.mxu0 %v2866_v8  ;;  %2813 = vmatpush3.bf16.msra.mxu1 %v2866_v8 }
  0x31   : > { %2739 = vmatmul.mubr.bf16.vlgmr.msra.gmra.mrb[0].mxu0 %v2867_v9  ;;  %2771 = vmatmul.mubr.bf16.vlgmr.msra.gmra.mrb[0].mxu1 %v2868_v10 }
  0x32   : > { %2742 = vmatprep.mubr.msk.bf16.mxu0 %vm2923_vm0, %v2922_v1  ;;  %2774 = vmatprep.mubr.msk.bf16.mxu1 %vm2923_vm0, %v2922_v1 }
  0x39   : > { %2743 = vmatmul.mubr.bf16.gmra.mrb[4].mxu0 %v2869_v11  ;;  %2775 = vmatmul.mubr.bf16.gmra.mrb[4].mxu1 %v2870_v12 }
  0x3a   : > { %2746 = vmatprep.mubr.msk.bf16.mxu0 %vm2923_vm0, %v2922_v1  ;;  %2778 = vmatprep.mubr.msk.bf16.mxu1 %vm2923_vm0, %v2922_v1 }
  0x41   : > { %2747 = vmatmul.mubr.bf16.gmra.mrb[8].mxu0 %v2871_v13  ;;  %2779 = vmatmul.mubr.bf16.gmra.mrb[8].mxu1 %v2872_v14 }
  0x42   : > { %2750 = vmatprep.mubr.msk.bf16.mxu0 %vm2923_vm0, %v2922_v1  ;;  %2782 = vmatprep.mubr.msk.bf16.mxu1 %vm2923_vm0, %v2922_v1 }
  0x49   : > { %2751 = vmatmul.mubr.bf16.gmra.mrb[12].mxu0 %v2873_v15  ;;  %2783 = vmatmul.mubr.bf16.gmra.mrb[12].mxu1 %v2874_v16 }
  0x4a   : > { %2754 = vmatprep.mubr.msk.bf16.mxu0 %vm2923_vm0, %v2922_v1  ;;  %2786 = vmatprep.mubr.msk.bf16.mxu1 %vm2923_vm0, %v2922_v1 }
  0x51   : > { %2755 = vmatmul.mubr.bf16.gmra.mrb[16].mxu0 %v2875_v17  ;;  %2787 = vmatmul.mubr.bf16.gmra.mrb[16].mxu1 %v2876_v18 }
  0x52   : > { %2758 = vmatprep.mubr.msk.bf16.mxu0 %vm2923_vm0, %v2922_v1  ;;  %2790 = vmatprep.mubr.msk.bf16.mxu1 %vm2923_vm0, %v2922_v1 }
  0x59   : > { %2759 = vmatmul.mubr.bf16.gmra.mrb[20].mxu0 %v2877_v19  ;;  %2791 = vmatmul.mubr.bf16.gmra.mrb[20].mxu1 %v2878_v20 }
  0x5a   : > { %2762 = vmatprep.mubr.msk.bf16.mxu0 %vm2923_vm0, %v2922_v1  ;;  %2794 = vmatprep.mubr.msk.bf16.mxu1 %vm2923_vm0, %v2922_v1 }
  0x61   : > { %2763 = vmatmul.mubr.bf16.gmra.mrb[24].mxu0 %v2879_v21  ;;  %2795 = vmatmul.mubr.bf16.gmra.mrb[24].mxu1 %v2880_v22 }
  0x62   : > { %2766 = vmatprep.mubr.msk.bf16.mxu0 %vm2923_vm0, %v2922_v1 }
  0x69   : > { %2767 = vmatmul.mubr.bf16.gmra.mrb[28].mxu0 %v2881_v23 }
 0x104   : > { %v528_v25 = vpop.f32.mrb[0].mxu0  ;;  %v592_v26 = vpop.f32.mrb[0].mxu1 }
 0x105   : > { %v529_v27 = vadd.f32 %v3105_v24, %v528_v25  ;;  %v593_v28 = vadd.f32 %v3105_v24, %v592_v26  ;;  %v2740_v29 = vpop.f32.mrb[1].mxu0  ;;  %v2772_v30 = vpop.f32.mrb[1].mxu1 }
 0x106   : > { %v531_v31 = vpop.f32.mrb[2].mxu0  ;;  %v595_v32 = vpop.f32.mrb[2].mxu1 }
 0x107   : > { %v647_v33 = vadd.f32 3.0, %v529_v27  ;;  %v663_v34 = vadd.f32 3.0, %v593_v28  ;;  %v532_v35 = vadd.f32 %v3105_v24, %v531_v31  ;;  %v596_v36 = vadd.f32 %v3105_v24, %v595_v32  ;;  %v2741_v37 = vpop.f32.mrb[3].mxu0  ;;  %v2773_v38 = vpop.f32.mrb[3].mxu1 }
 0x109   : > { %v677_v39 = vmax.f32 %v647_v33, 0.0  ;;  %v693_v40 = vmax.f32 %v663_v34, 0.0  ;;  %v648_v41 = vadd.f32 3.0, %v532_v35  ;;  %v664_v42 = vadd.f32 3.0, %v596_v36 }
 0x10b   : > { %v707_v43 = vmin.f32 %v677_v39, 6.0  ;;  %v723_v44 = vmin.f32 %v693_v40, 6.0  ;;  %v678_v45 = vmax.f32 %v648_v41, 0.0  ;;  %v694_v46 = vmax.f32 %v664_v42, 0.0 }
 0x10c   : > { %v536_v47 = vpop.f32.mrb[4].mxu0  ;;  %v600_v48 = vpop.f32.mrb[4].mxu1 }
 0x10d   : > { %v737_v49 = vmul.f32 %v707_v43, %v529_v27  ;;  %v753_v50 = vmul.f32 %v723_v44, %v593_v28  ;;  %v708_v51 = vmin.f32 %v678_v45, 6.0  ;;  %v724_v52 = vmin.f32 %v694_v46, 6.0  ;;  %v2744_v53 = vpop.f32.mrb[5].mxu0  ;;  %v2776_v54 = vpop.f32.mrb[5].mxu1 }
 0x10e   : > { %v537_v55 = vadd.f32 %v3105_v24, %v536_v47  ;;  %v601_v56 = vadd.f32 %v3105_v24, %v600_v48  ;;  %v539_v57 = vpop.f32.mrb[6].mxu0  ;;  %v603_v58 = vpop.f32.mrb[6].mxu1 }
 0x10f   : > { %v783_v59 = vmul.f32 0.16666667, %v753_v50  ;;  %v738_v60 = vmul.f32 %v708_v51, %v532_v35  ;;  %v754_v61 = vmul.f32 %v724_v52, %v596_v36  ;;  %v2745_v62 = vpop.f32.mrb[7].mxu0  ;;  %v2777_v63 = vpop.f32.mrb[7].mxu1  ;;  %v540_v2 = vadd.f32 %v3105_v24, %v539_v57 }
 0x110   : > { %v649_v0 = vadd.f32 3.0, %v537_v55  ;;  %v665_v1 = vadd.f32 3.0, %v601_v56  ;;  %v604_v3 = vadd.f32 %v3105_v24, %v603_v58  ;;  %v767_v4 = vmul.f32 0.16666667, %v737_v49 }
 0x111   : > { %v768_v5 = vmul.f32 0.16666667, %v738_v60  ;;  %v784_v6 = vmul.f32 0.16666667, %v754_v61  ;;  %v650_v9 = vadd.f32 3.0, %v540_v2 }
 0x112   : > { %v679_v7 = vmax.f32 %v649_v0, 0.0  ;;  %v695_v8 = vmax.f32 %v665_v1, 0.0  ;;  %v666_v10 = vadd.f32 3.0, %v604_v3 }
 0x113   : > { %v2508_v11 = vpack.c.bf16 %v768_v5, %v767_v4  ;;  %v2548_v12 = vpack.c.bf16 %v784_v6, %v783_v59  ;;  %v680_v15 = vmax.f32 %v650_v9, 0.0 }
 0x114   : > { %v709_v13 = vmin.f32 %v679_v7, 6.0  ;;  %v725_v14 = vmin.f32 %v695_v8, 6.0  ;;  %v696_v16 = vmax.f32 %v666_v10, 0.0  ;;  %v544_v17 = vpop.f32.mrb[8].mxu0  ;;  %v608_v18 = vpop.f32.mrb[8].mxu1 }
 0x115   : > { %2509 = vst [vmem:[#allocation2] sm:$0xff] %v2508_v11   ;;  %2675 = vst [vmem:[#allocation2 + $0x40] sm:$0xff] %v2548_v12   ;;  %v545_v19 = vadd.f32 %v3105_v24, %v544_v17  ;;  %v609_v20 = vadd.f32 %v3105_v24, %v608_v18  ;;  %v2748_v21 = vpop.f32.mrb[9].mxu0  ;;  %v2780_v22 = vpop.f32.mrb[9].mxu1  ;;  %v710_v26 = vmin.f32 %v680_v15, 6.0 }
 0x116   : > { %v739_v23 = vmul.f32 %v709_v13, %v537_v55  ;;  %v755_v25 = vmul.f32 %v725_v14, %v601_v56  ;;  %v726_v27 = vmin.f32 %v696_v16, 6.0  ;;  %v547_v28 = vpop.f32.mrb[10].mxu0  ;;  %v611_v29 = vpop.f32.mrb[10].mxu1 }
 0x117   : > { %v651_v30 = vadd.f32 3.0, %v545_v19  ;;  %v667_v31 = vadd.f32 3.0, %v609_v20  ;;  %v548_v32 = vadd.f32 %v3105_v24, %v547_v28  ;;  %v612_v33 = vadd.f32 %v3105_v24, %v611_v29  ;;  %v2749_v34 = vpop.f32.mrb[11].mxu0  ;;  %v2781_v35 = vpop.f32.mrb[11].mxu1 }
 0x118   : > { %v785_v36 = vmul.f32 0.16666667, %v755_v25  ;;  %v740_v37 = vmul.f32 %v710_v26, %v540_v2  ;;  %v756_v38 = vmul.f32 %v726_v27, %v604_v3  ;;  %v769_v45 = vmul.f32 0.16666667, %v739_v23 }
 0x119   : > { %v681_v40 = vmax.f32 %v651_v30, 0.0  ;;  %v697_v41 = vmax.f32 %v667_v31, 0.0  ;;  %v652_v42 = vadd.f32 3.0, %v548_v32  ;;  %v668_v43 = vadd.f32 3.0, %v612_v33 }
 0x11a   : > { %v770_v46 = vmul.f32 0.16666667, %v740_v37  ;;  %v786_v47 = vmul.f32 0.16666667, %v756_v38 }
 0x11b   : > { %v711_v48 = vmin.f32 %v681_v40, 6.0  ;;  %v727_v49 = vmin.f32 %v697_v41, 6.0  ;;  %v682_v50 = vmax.f32 %v652_v42, 0.0  ;;  %v698_v51 = vmax.f32 %v668_v43, 0.0 }
 0x11c   : > { %v960_v52 = vld [vmem:[#allocation2] sm:$0x1]  ;;  %v1008_v53 = vld [vmem:[#allocation2 + $0x44] sm:$0xf]  ;;  %v2513_v54 = vpack.c.bf16 %v770_v46, %v769_v45  ;;  %v2553_v55 = vpack.c.bf16 %v786_v47, %v785_v36  ;;  %v552_v56 = vpop.f32.mrb[12].mxu0  ;;  %v616_v57 = vpop.f32.mrb[12].mxu1 }
 0x11d   : > { %v961_v58 = vsel %vm3121_vm5, 0, %v960_v52  ;;  %v1009_v59 = vsel %vm3127_vm6, 0, %v1008_v53  ;;  %v741_v60 = vmul.f32 %v711_v48, %v545_v19  ;;  %v757_v61 = vmul.f32 %v727_v49, %v609_v20  ;;  %v2752_v62 = vpop.f32.mrb[13].mxu0  ;;  %v2784_v63 = vpop.f32.mrb[13].mxu1 }
 0x11e   : > { %962 = vst [vmem:[#allocation2] sm:$0x1] %v961_v58  ;;  %1010 = vst [vmem:[#allocation2 + $0x44] sm:$0xf] %v1009_v59  ;;  %v712_v0 = vmin.f32 %v682_v50, 6.0  ;;  %v728_v1 = vmin.f32 %v698_v51, 6.0  ;;  %v553_v2 = vadd.f32 %v3105_v24, %v552_v56  ;;  %v617_v3 = vadd.f32 %v3105_v24, %v616_v57 }
 0x11f   : > { %2668 = vst [vmem:[#allocation2 + $0x8] sm:$0xff] %v2513_v54   ;;  %2676 = vst [vmem:[#allocation2 + $0x48] sm:$0xff] %v2553_v55   ;;  %v555_v4 = vpop.f32.mrb[14].mxu0  ;;  %v619_v5 = vpop.f32.mrb[14].mxu1  ;;  %v787_v6 = vmul.f32 0.16666667, %v757_v61 }
 0x120   : > { %v556_v7 = vadd.f32 %v3105_v24, %v555_v4  ;;  %v620_v8 = vadd.f32 %v3105_v24, %v619_v5  ;;  %v2753_v9 = vpop.f32.mrb[15].mxu0  ;;  %v2785_v10 = vpop.f32.mrb[15].mxu1  ;;  %v742_v11 = vmul.f32 %v712_v0, %v548_v32  ;;  %v758_v12 = vmul.f32 %v728_v1, %v612_v33 }
 0x121   : > { %v653_v13 = vadd.f32 3.0, %v553_v2  ;;  %v669_v14 = vadd.f32 3.0, %v617_v3  ;;  %v771_v15 = vmul.f32 0.16666667, %v741_v60 }
 0x122   : > { %v654_v16 = vadd.f32 3.0, %v556_v7  ;;  %v670_v17 = vadd.f32 3.0, %v620_v8  ;;  %v772_v18 = vmul.f32 0.16666667, %v742_v11  ;;  %v788_v19 = vmul.f32 0.16666667, %v758_v12 }
 0x123   : > { %v683_v20 = vmax.f32 %v653_v13, 0.0  ;;  %v699_v21 = vmax.f32 %v669_v14, 0.0 }
 0x124   : > { %v684_v22 = vmax.f32 %v654_v16, 0.0  ;;  %v700_v23 = vmax.f32 %v670_v17, 0.0  ;;  %v2518_v25 = vpack.c.bf16 %v772_v18, %v771_v15  ;;  %v2558_v26 = vpack.c.bf16 %v788_v19, %v787_v6  ;;  %v560_v29 = vpop.f32.mrb[16].mxu0  ;;  %v624_v30 = vpop.f32.mrb[16].mxu1 }
 0x125   : > { %v713_v27 = vmin.f32 %v683_v20, 6.0  ;;  %v729_v28 = vmin.f32 %v699_v21, 6.0  ;;  %v561_v34 = vadd.f32 %v3105_v24, %v560_v29  ;;  %v625_v35 = vadd.f32 %v3105_v24, %v624_v30  ;;  %v2756_v41 = vpop.f32.mrb[17].mxu0  ;;  %v2788_v42 = vpop.f32.mrb[17].mxu1 }
 0x126   : > { %v963_v31 = vld [vmem:[#allocation2 + $0xc] sm:$0x1]  ;;  %v993_v32 = vld [vmem:[#allocation2 + $0x8] sm:$0xf]  ;;  %2669 = vst [vmem:[#allocation2 + $0x10] sm:$0xff] %v2518_v25   ;;  %2677 = vst [vmem:[#allocation2 + $0x50] sm:$0xff] %v2558_v26  }
 0x127   : > { %v978_v33 = vld [vmem:[#allocation2 + $0x48] sm:$0x1]  ;;  %v964_v36 = vsel %vm3121_vm5, 0, %v963_v31  ;;  %v994_v37 = vsel %vm3127_vm6, 0, %v993_v32  ;;  %v743_v40 = vmul.f32 %v713_v27, %v553_v2  ;;  %v759_v43 = vmul.f32 %v729_v28, %v617_v3  ;;  %v563_v48 = vpop.f32.mrb[18].mxu0  ;;  %v627_v49 = vpop.f32.mrb[18].mxu1 }
 0x128   : > { %v979_v38 = vsel %vm3121_vm5, 0, %v978_v33  ;;  %965 = vst [vmem:[#allocation2 + $0xc] sm:$0x1] %v964_v36  ;;  %995 = vst [vmem:[#allocation2 + $0x8] sm:$0xf] %v994_v37  ;;  %v714_v45 = vmin.f32 %v684_v22, 6.0  ;;  %v564_v51 = vadd.f32 %v3105_v24, %v563_v48  ;;  %v628_v52 = vadd.f32 %v3105_v24, %v627_v49 }
 0x129   : > { %980 = vst [vmem:[#allocation2 + $0x48] sm:$0x1] %v979_v38  ;;  %v730_v46 = vmin.f32 %v700_v23, 6.0  ;;  %v655_v47 = vadd.f32 3.0, %v561_v34  ;;  %v671_v50 = vadd.f32 3.0, %v625_v35  ;;  %v2757_v53 = vpop.f32.mrb[19].mxu0 }
 0x12a   : > { %v2789_v54 = vpop.f32.mrb[19].mxu1  ;;  %v789_v55 = vmul.f32 0.16666667, %v759_v43  ;;  %v744_v56 = vmul.f32 %v714_v45, %v556_v7  ;;  %v773_v59 = vmul.f32 0.16666667, %v743_v40  ;;  %v656_v61 = vadd.f32 3.0, %v564_v51 }
 0x12b   : > { %v760_v57 = vmul.f32 %v730_v46, %v620_v8  ;;  %v685_v58 = vmax.f32 %v655_v47, 0.0  ;;  %v701_v60 = vmax.f32 %v671_v50, 0.0  ;;  %v672_v62 = vadd.f32 3.0, %v628_v52 }
 0x12c   : > { %v774_v63 = vmul.f32 0.16666667, %v744_v56  ;;  %v686_v3 = vmax.f32 %v656_v61, 0.0  ;;  %v568_v5 = vpop.f32.mrb[20].mxu0  ;;  %v632_v6 = vpop.f32.mrb[20].mxu1 }
 0x12d   : > { %v790_v0 = vmul.f32 0.16666667, %v760_v57  ;;  %v715_v1 = vmin.f32 %v685_v58, 6.0  ;;  %v731_v2 = vmin.f32 %v701_v60, 6.0  ;;  %v702_v4 = vmax.f32 %v672_v62, 0.0  ;;  %v2760_v18 = vpop.f32.mrb[21].mxu0 }
 0x12e   : > { %v996_v9 = vld [vmem:[#allocation2 + $0x14] sm:$0xf]  ;;  %v1011_v11 = vld [vmem:[#allocation2 + $0x50] sm:$0xf]  ;;  %v2523_v12 = vpack.c.bf16 %v774_v63, %v773_v59  ;;  %v569_v8 = vadd.f32 %v3105_v24, %v568_v5  ;;  %v2792_v19 = vpop.f32.mrb[21].mxu1  ;;  %v716_v20 = vmin.f32 %v686_v3, 6.0  ;;  %v633_v26 = vadd.f32 %v3105_v24, %v632_v6 }
 0x12f   : > { %v981_v10 = vld [vmem:[#allocation2 + $0x54] sm:$0x1]  ;;  %v2563_v13 = vpack.c.bf16 %v790_v0, %v789_v55  ;;  %v745_v7 = vmul.f32 %v715_v1, %v561_v34  ;;  %v997_v14 = vsel %vm3127_vm6, 0, %v996_v9  ;;  %v1012_v16 = vsel %vm3127_vm6, 0, %v1011_v11  ;;  %v571_v23 = vpop.f32.mrb[22].mxu0  ;;  %v635_v28 = vpop.f32.mrb[22].mxu1 }
 0x130   : > { %v982_v15 = vsel %vm3121_vm5, 0, %v981_v10  ;;  %v761_v17 = vmul.f32 %v731_v2, %v625_v35  ;;  %998 = vst [vmem:[#allocation2 + $0x14] sm:$0xf] %v997_v14  ;;  %1013 = vst [vmem:[#allocation2 + $0x50] sm:$0xf] %v1012_v16  ;;  %v732_v21 = vmin.f32 %v702_v4, 6.0  ;;  %v572_v27 = vadd.f32 %v3105_v24, %v571_v23 }
 0x131   : > { %983 = vst [vmem:[#allocation2 + $0x54] sm:$0x1] %v982_v15  ;;  %2670 = vst [vmem:[#allocation2 + $0x18] sm:$0xff] %v2523_v12   ;;  %v657_v22 = vadd.f32 3.0, %v569_v8  ;;  %v2761_v29 = vpop.f32.mrb[23].mxu0  ;;  %v746_v30 = vmul.f32 %v716_v20, %v564_v51  ;;  %v636_v33 = vadd.f32 %v3105_v24, %v635_v28  ;;  %v2793_v34 = vpop.f32.mrb[23].mxu1 }
 0x132   : > { %2678 = vst [vmem:[#allocation2 + $0x58] sm:$0xff] %v2563_v13   ;;  %v791_v25 = vmul.f32 0.16666667, %v761_v17  ;;  %v762_v31 = vmul.f32 %v732_v21, %v628_v52  ;;  %v775_v35 = vmul.f32 0.16666667, %v745_v7  ;;  %v673_v36 = vadd.f32 3.0, %v633_v26 }
 0x133   : > { %v687_v32 = vmax.f32 %v657_v22, 0.0  ;;  %v658_v37 = vadd.f32 3.0, %v572_v27  ;;  %v776_v38 = vmul.f32 0.16666667, %v746_v30  ;;  %v674_v42 = vadd.f32 3.0, %v636_v33 }
 0x134   : > { %v792_v40 = vmul.f32 0.16666667, %v762_v31  ;;  %v703_v43 = vmax.f32 %v673_v36, 0.0  ;;  %v576_v46 = vpop.f32.mrb[24].mxu0  ;;  %v640_v47 = vpop.f32.mrb[24].mxu1 }
 0x135   : > { %v717_v41 = vmin.f32 %v687_v32, 6.0  ;;  %v688_v45 = vmax.f32 %v658_v37, 0.0  ;;  %v2528_v48 = vpack.c.bf16 %v776_v38, %v775_v35  ;;  %v704_v51 = vmax.f32 %v674_v42, 0.0  ;;  %v2764_v52 = vpop.f32.mrb[25].mxu0  ;;  %v2796_v53 = vpop.f32.mrb[25].mxu1 }
 0x136   : > { %v2568_v49 = vpack.c.bf16 %v792_v40, %v791_v25  ;;  %v733_v56 = vmin.f32 %v703_v43, 6.0  ;;  %v577_v58 = vadd.f32 %v3105_v24, %v576_v46  ;;  %v641_v59 = vadd.f32 %v3105_v24, %v640_v47  ;;  %v579_v63 = vpop.f32.mrb[26].mxu0  ;;  %v643_v4 = vpop.f32.mrb[26].mxu1 }
 0x137   : > { %v747_v50 = vmul.f32 %v717_v41, %v569_v8  ;;  %v718_v57 = vmin.f32 %v688_v45, 6.0  ;;  %2671 = vst [vmem:[#allocation2 + $0x20] sm:$0xff] %v2528_v48   ;;  %v734_v62 = vmin.f32 %v704_v51, 6.0  ;;  %v2765_v5 = vpop.f32.mrb[27].mxu0  ;;  %v580_v10 = vadd.f32 %v3105_v24, %v579_v63  ;;  %v2797_v12 = vpop.f32.mrb[27].mxu1 }
 0x138   : > { %v966_v54 = vld [vmem:[#allocation2 + $0x18] sm:$0x1]  ;;  %2679 = vst [vmem:[#allocation2 + $0x60] sm:$0xff] %v2568_v49   ;;  %v763_v0 = vmul.f32 %v733_v56, %v633_v26  ;;  %v659_v2 = vadd.f32 3.0, %v577_v58  ;;  %v675_v3 = vadd.f32 3.0, %v641_v59  ;;  %v644_v11 = vadd.f32 %v3105_v24, %v643_v4 }
 0x139   : > { %v1014_v55 = vld [vmem:[#allocation2 + $0x5c] sm:$0xf]  ;;  %v967_v60 = vsel %vm3121_vm5, 0, %v966_v54  ;;  %v748_v1 = vmul.f32 %v718_v57, %v572_v27  ;;  %v777_v6 = vmul.f32 0.16666667, %v747_v50  ;;  %v764_v9 = vmul.f32 %v734_v62, %v636_v33 }
 0x13a   : > { %v1015_v61 = vsel %vm3127_vm6, 0, %v1014_v55  ;;  %968 = vst [vmem:[#allocation2 + $0x18] sm:$0x1] %v967_v60  ;;  %v793_v13 = vmul.f32 0.16666667, %v763_v0  ;;  %v689_v8 = vmax.f32 %v659_v2, 0.0 }
 0x13b   : > { %1016 = vst [vmem:[#allocation2 + $0x5c] sm:$0xf] %v1015_v61  ;;  %v778_v7 = vmul.f32 0.16666667, %v748_v1  ;;  %v705_v14 = vmax.f32 %v675_v3, 0.0  ;;  %v660_v16 = vadd.f32 3.0, %v580_v10 }
 0x13c   : > { %v794_v15 = vmul.f32 0.16666667, %v764_v9  ;;  %v676_v17 = vadd.f32 3.0, %v644_v11  ;;  %v719_v19 = vmin.f32 %v689_v8, 6.0  ;;  %v584_v21 = vpop.f32.mrb[28].mxu0 }
 0x13d   : > { %v2533_v18 = vpack.c.bf16 %v778_v7, %v777_v6  ;;  %v735_v20 = vmin.f32 %v705_v14, 6.0  ;;  %v690_v23 = vmax.f32 %v660_v16, 0.0  ;;  %v585_v26 = vadd.f32 %v3105_v24, %v584_v21  ;;  %v2768_v27 = vpop.f32.mrb[29].mxu0 }
 0x13e   : > { %v2573_v22 = vpack.c.bf16 %v794_v15, %v793_v13  ;;  %v706_v25 = vmax.f32 %v676_v17, 0.0  ;;  %v969_v28 = vld [vmem:[#allocation2 + $0x24] sm:$0x1]  ;;  %v999_v29 = vld [vmem:[#allocation2 + $0x20] sm:$0xf]  ;;  %v749_v31 = vmul.f32 %v719_v19, %v577_v58  ;;  %v587_v37 = vpop.f32.mrb[30].mxu0 }
 0x13f   : > { %v984_v30 = vld [vmem:[#allocation2 + $0x60] sm:$0x1]  ;;  %2672 = vst [vmem:[#allocation2 + $0x28] sm:$0xff] %v2533_v18   ;;  %v765_v32 = vmul.f32 %v735_v20, %v641_v59  ;;  %v970_v33 = vsel %vm3121_vm5, 0, %v969_v28  ;;  %v1000_v34 = vsel %vm3127_vm6, 0, %v999_v29  ;;  %v720_v36 = vmin.f32 %v690_v23, 6.0 }
 0x140   : > { %v985_v35 = vsel %vm3121_vm5, 0, %v984_v30  ;;  %2680 = vst [vmem:[#allocation2 + $0x68] sm:$0xff] %v2573_v22   ;;  %971 = vst [vmem:[#allocation2 + $0x24] sm:$0x1] %v970_v33  ;;  %v736_v38 = vmin.f32 %v706_v25, 6.0  ;;  %v661_v40 = vadd.f32 3.0, %v585_v26  ;;  %v588_v42 = vadd.f32 %v3105_v24, %v587_v37 }
 0x141   : > { %1001 = vst [vmem:[#allocation2 + $0x20] sm:$0xf] %v1000_v34  ;;  %986 = vst [vmem:[#allocation2 + $0x60] sm:$0x1] %v985_v35  ;;  %v750_v41 = vmul.f32 %v720_v36, %v580_v10  ;;  %v2769_v43 = vpop.f32.mrb[31].mxu0  ;;  %v2924_v13 = vmov (!%p2428_p8), 0  }
 0x142   : > { %v795_v45 = vmul.f32 0.16666667, %v765_v32  ;;  %v766_v46 = vmul.f32 %v736_v38, %v644_v11  ;;  %v691_v47 = vmax.f32 %v661_v40, 0.0  ;;  %v779_v48 = vmul.f32 0.16666667, %v749_v31 }
 0x143   : > { %v780_v49 = vmul.f32 0.16666667, %v750_v41  ;;  %v662_v50 = vadd.f32 3.0, %v588_v42  ;;  %1027 = vst [vmem:[#allocation2] sm:$0xf] (!%p2428_p8), %v2924_v13 }
 0x144   : > { %v796_v51 = vmul.f32 0.16666667, %v766_v46  ;;  %v721_v52 = vmin.f32 %v691_v47, 6.0  ;;  %1028 = vst [vmem:[#allocation2 + $0x4] sm:$0xf] (!%p2428_p8), %v2924_v13 }
 0x145   : > { %v2538_v54 = vpack.c.bf16 %v780_v49, %v779_v48  ;;  %v692_v55 = vmax.f32 %v662_v50, 0.0  ;;  %1029 = vst [vmem:[#allocation2 + $0x8] sm:$0xf] (!%p2428_p8), %v2924_v13 }
 0x146   : > { %v1002_v53 = vld [vmem:[#allocation2 + $0x2c] sm:$0xf]  ;;  %v2578_v59 = vpack.c.bf16 %v796_v51, %v795_v45  ;;  %v751_v61 = vmul.f32 %v721_v52, %v585_v26 }
 0x147   : > { %v1003_v56 = vsel %vm3127_vm6, 0, %v1002_v53  ;;  %v987_v57 = vld [vmem:[#allocation2 + $0x6c] sm:$0x1]  ;;  %v1017_v58 = vld [vmem:[#allocation2 + $0x68] sm:$0xf]  ;;  %2673 = vst [vmem:[#allocation2 + $0x30] sm:$0xff] %v2538_v54  }
 0x148   : > { %1004 = vst [vmem:[#allocation2 + $0x2c] sm:$0xf] %v1003_v56  ;;  %v988_v24 = vsel %vm3121_vm5, 0, %v987_v57  ;;  %v1018_v60 = vsel %vm3127_vm6, 0, %v1017_v58  ;;  %v722_v62 = vmin.f32 %v692_v55, 6.0  ;;  %2681 = vst [vmem:[#allocation2 + $0x70] sm:$0xff] %v2578_v59  }
 0x149   : > { %989 = vst [vmem:[#allocation2 + $0x6c] sm:$0x1] %v988_v24  ;;  %1019 = vst [vmem:[#allocation2 + $0x68] sm:$0xf] %v1018_v60  ;;  %v781_v0 = vmul.f32 0.16666667, %v751_v61 }
 0x14a   : > { %v752_v63 = vmul.f32 %v722_v62, %v588_v42 }
 0x14c   : > { %v782_v1 = vmul.f32 0.16666667, %v752_v63 }
 0x14e   : > { %v2543_v2 = vpack.c.bf16 %v782_v1, %v781_v0  ;;  %v972_v3 = vld [vmem:[#allocation2 + $0x30] sm:$0x1] }
 0x14f   : > { %v973_v4 = vsel %vm3121_vm5, 0, %v972_v3  ;;  %v1020_v5 = vld [vmem:[#allocation2 + $0x74] sm:$0xf] }
 0x150   : > { %2674 = vst [vmem:[#allocation2 + $0x38] sm:$0xff] %v2543_v2   ;;  %974 = vst [vmem:[#allocation2 + $0x30] sm:$0x1] %v973_v4  ;;  %v1021_v6 = vsel %vm3127_vm6, 0, %v1020_v5 }
 0x151   : > { %1022 = vst [vmem:[#allocation2 + $0x74] sm:$0xf] %v1021_v6 }
 0x153   : > { %1026 = sbr.rel (%p2428_p8) target bundleno = 346 (0x15a), region = 44 }
 0x157   : > { %v975_v9 = vld [vmem:[#allocation2 + $0x3c] sm:$0x1]  ;;  %v1005_v10 = vld [vmem:[#allocation2 + $0x38] sm:$0xf] }
 0x158   : > { %v976_v11 = vsel %vm3121_vm5, 0, %v975_v9  ;;  %v1006_v12 = vsel %vm3127_vm6, 0, %v1005_v10 }
 0x159   : > { %977 = vst [vmem:[#allocation2 + $0x3c] sm:$0x1] %v976_v11  ;;  %1007 = vst [vmem:[#allocation2 + $0x38] sm:$0xf] %v1006_v12 }
 0x15a PF: > { %p2429_p9 = scmp.ne.s32.totalorder %s2904_s21, 1 }
 0x15b   : > { %v2925_v7 = vmov (!%p2429_p9), 0  }
 0x15c   : > { %1033 = sbr.rel (%p2429_p9) target bundleno = 355 (0x163), region = 48  ;;  %1035 = vst [vmem:[#allocation2 + $0x6c] sm:$0xf] (!%p2429_p9), %v2925_v7  ;;  %1036 = vst [vmem:[#allocation2 + $0x70] sm:$0xf] (!%p2429_p9), %v2925_v7 }
 0x15d   : > { %1037 = vst [vmem:[#allocation2 + $0x74] sm:$0xf] (!%p2429_p9), %v2925_v7 }
 0x163 PF: > { %v2430_v39 = vld [vmem:[%s3996_s3] ss:$0 sm:$0xff]  ;;  %v1041_v8 = vld [vmem:[#allocation2 + $0xc] sm:$0xff]   ;;  %v2682_v16 = vld [vmem:[#allocation2 + $0x18] sm:$0xff]   ;;  %vm1176_vm7 = vcmask 1046528   ;;  %vm1318_vm8 = vcmask 1045504  }
 0x164   : > { %v2581_v44 = vld [vmem:[#allocation2] sm:$0xff]   ;;  %v2683_v18 = vld [vmem:[#allocation2 + $0x30] sm:$0xff]   ;;  %v1057_v19 = vunpack.c.l.bf16 %v1041_v8  ;;  %v3198_v20 = vunpack.c.h.bf16 %v1041_v8  ;;  %v3200_v21 = vunpack.c.l.bf16 %v2682_v16  ;;  %v3202_v22 = vunpack.c.h.bf16 %v2682_v16  ;;  %v2684_v27 = vld [vmem:[#allocation2 + $0x48] sm:$0xff]  }
 0x165   : > { %v2582_v14 = vunpack.c.l.bf16 %v2581_v44  ;;  %v3194_v15 = vunpack.c.h.bf16 %v2581_v44  ;;  %v3196_v17 = vld [vmem:[#allocation2 + $0x24] sm:$0xff]   ;;  %v3204_v23 = vunpack.c.l.bf16 %v2683_v18  ;;  %v3206_v25 = vunpack.c.h.bf16 %v2683_v18  ;;  %v1049_v26 = vld [vmem:[#allocation2 + $0x3c] sm:$0xff]   ;;  %v3208_v28 = vld [vmem:[#allocation2 + $0x54] sm:$0xff]  }
 0x166   : > { %4063 = vst [vmem:[#allocation3_spill] sm:$0xff] %v3200_v21  ;;  %v3210_v29 = vunpack.c.l.bf16 %v2684_v27  ;;  %v3212_v30 = vunpack.c.h.bf16 %v2684_v27  ;;  %v1061_v31 = vunpack.c.l.bf16 %v3196_v17  ;;  %v3216_v32 = vunpack.c.h.bf16 %v3196_v17  ;;  %v3234_v42 = vld [vmem:[#allocation2 + $0x8] sm:$0x1]  ;;  %v3236_v43 = vld [vmem:[#allocation2 + $0x14] sm:$0x1] }
 0x167   : > { %4064 = vst [vmem:[#allocation4_spill] sm:$0xff] %v3204_v23  ;;  %4065 = vst [vmem:[#allocation5_spill] sm:$0xff] %v3206_v25  ;;  %v1065_v33 = vunpack.c.l.bf16 %v1049_v26  ;;  %v3218_v34 = vunpack.c.h.bf16 %v1049_v26  ;;  %v1069_v35 = vunpack.c.l.bf16 %v3208_v28  ;;  %v3222_v36 = vunpack.c.h.bf16 %v3208_v28  ;;  %v3249_v49 = vld [vmem:[#allocation2 + $0x20] sm:$0x1]  ;;  %v3251_v50 = vld [vmem:[#allocation2 + $0x2c] sm:$0x1] }
 0x168   : > { %4066 = vst [vmem:[#allocation6_spill] sm:$0xff] %v3210_v29  ;;  %4067 = vst [vmem:[#allocation7_spill] sm:$0xff] %v3212_v30  ;;  %v3224_v37 = vmul.f32 %v2582_v14, %v2430_v39  ;;  %v3227_v38 = vmul.f32 %v3194_v15, %v2430_v39  ;;  %v3229_v40 = vmul.f32 %v2430_v39, %v1057_v19  ;;  %v3253_v51 = vld [vmem:[#allocation2 + $0x38] sm:$0x1]  ;;  %v3266_v56 = vld [vmem:[#allocation2 + $0x44] sm:$0x1]  ;;  %v4003_v63 = vunpack.c.l.bf16 %v3234_v42 }
 0x169   : > { %4068 = vst [vmem:[#allocation8_spill] sm:$0xff] %v3218_v34  ;;  %4069 = vst [vmem:[#allocation9_spill] sm:$0xff] %v3222_v36  ;;  %v3232_v41 = vmul.f32 %v2430_v39, %v3198_v20  ;;  %v3239_v45 = vmul.f32 %v3200_v21, %v2430_v39  ;;  %v3242_v46 = vmul.f32 %v3202_v22, %v2430_v39  ;;  %v3268_v57 = vld [vmem:[#allocation2 + $0x50] sm:$0x1]  ;;  %v3270_v58 = vld [vmem:[#allocation2 + $0x5c] sm:$0x1]  ;;  %v4000_v0 = vunpack.c.l.bf16 %v3236_v43 }
 0x16a   : > { %v3244_v47 = vmul.f32 %v2430_v39, %v1061_v31  ;;  %v3247_v48 = vmul.f32 %v2430_v39, %v3216_v32  ;;  %4070 = vst [vmem:[#allocation10_spill] sm:$0xff] %v3251_v50  ;;  %4071 = vst [vmem:[#allocation11_spill] sm:$0xff] %v3253_v51  ;;  %v3256_v52 = vmul.f32 %v3204_v23, %v2430_v39  ;;  %v2431_v62 = vld [vmem:[%s3996_s3 + $0x1] ss:$0 sm:$0xff]  ;;  %v4001_v1 = vunpack.c.l.bf16 %v3249_v49 }
 0x16b   : > { %v3259_v53 = vmul.f32 %v3206_v25, %v2430_v39  ;;  %v3261_v54 = vmul.f32 %v2430_v39, %v1065_v33  ;;  %v3264_v55 = vmul.f32 %v2430_v39, %v3218_v34  ;;  %4072 = vst [vmem:[#allocation12_spill] sm:$0xff] %v3266_v56  ;;  %4073 = vst [vmem:[#allocation13_spill] sm:$0xff] %v3268_v57  ;;  %v4002_v2 = vunpack.c.l.bf16 %v3251_v50 }
 0x16c   : > { %v3273_v59 = vmul.f32 %v3210_v29, %v2430_v39  ;;  %v3276_v24 = vmul.f32 %v3212_v30, %v2430_v39  ;;  %v3278_v60 = vmul.f32 %v2430_v39, %v1069_v35  ;;  %v3281_v61 = vmul.f32 %v2430_v39, %v3222_v36 }
 0x16d   : > { %v4008_v3 = vunpack.c.l.bf16 %v3253_v51  ;;  %v4014_v4 = vunpack.c.l.bf16 %v3266_v56  ;;  %v4021_v5 = vunpack.c.l.bf16 %v3268_v57  ;;  %v1128_v9 = vmul.f32 %v2582_v14, %v2431_v62 }
 0x16e   : > { %v1129_v10 = vmul.f32 %v3194_v15, %v2431_v62  ;;  %v1130_v11 = vmul.f32 %v2431_v62, %v4003_v63  ;;  %v1131_v12 = vmul.f32 %v2431_v62, %v1057_v19  ;;  %v1132_v13 = vmul.f32 %v2431_v62, %v3198_v20 }
 0x16f   : > { %v1133_v7 = vmul.f32 %v2431_v62, %v4000_v0  ;;  %v1134_v39 = vmul.f32 %v3200_v21, %v2431_v62  ;;  %v1135_v44 = vmul.f32 %v3202_v22, %v2431_v62  ;;  %v1136_v8 = vmul.f32 %v2431_v62, %v4001_v1 }
 0x170   : > { %v1137_v16 = vmul.f32 %v2431_v62, %v1061_v31  ;;  %v1138_v14 = vmul.f32 %v2431_v62, %v3216_v32  ;;  %v1139_v17 = vmul.f32 %v2431_v62, %v4002_v2  ;;  %v1140_v18 = vmul.f32 %v3204_v23, %v2431_v62 }
 0x171   : > { %v1141_v19 = vmul.f32 %v3206_v25, %v2431_v62  ;;  %v1142_v26 = vmul.f32 %v2431_v62, %v4008_v3  ;;  %v1143_v27 = vmul.f32 %v2431_v62, %v1065_v33  ;;  %v1144_v28 = vmul.f32 %v2431_v62, %v3218_v34 }
 0x172   : > { %v1145_v0 = vmul.f32 %v2431_v62, %v4014_v4  ;;  %v1146_v31 = vmul.f32 %v3210_v29, %v2431_v62  ;;  %v1147_v1 = vmul.f32 %v3212_v30, %v2431_v62  ;;  %v1148_v2 = vmul.f32 %v2431_v62, %v4021_v5 }
 0x173   : > { %v1149_v63 = vmul.f32 %v2431_v62, %v1069_v35  ;;  %v1150_v6 = vmul.f32 %v2431_v62, %v3222_v36  ;;  %v4074_v23 = vunpack.c.l.bf16 %v3270_v58  ;;  %v1177_v3 = vrot.slane %v1128_v9, 1 }
 0x174   : > { %v1178_v33 = vrot.slane %v1129_v10, 1  ;;  %v1180_v51 = vrot.slane %v1130_v11, 1  ;;  %v1182_v34 = vrot.slane %v1131_v12, 1  ;;  %v1183_v25 = vrot.slane %v1132_v13, 1 }
 0x175   : > { %v1151_v21 = vmul.f32 %v2431_v62, %v4074_v23  ;;  %v1185_v56 = vrot.slane %v1133_v7, 1  ;;  %v1187_v4 = vrot.slane %v1134_v39, 1  ;;  %v1188_v50 = vrot.slane %v1135_v44, 1 }
 0x176   : > { %v1179_v29 = vsel %vm1176_vm7, %v1177_v3, %v1178_v33  ;;  %v1181_v30 = vsel %vm1176_vm7, %v1178_v33, %v1180_v51  ;;  %v1190_v57 = vrot.slane %v1136_v8, 1  ;;  %v1192_v5 = vrot.slane %v1137_v16, 1  ;;  %v1257_v33 = vld [vmem:[#allocation2 + $0x54] sm:$0xe] }
 0x177   : > { %v1184_v35 = vsel %vm1176_vm7, %v1182_v34, %v1183_v25  ;;  %v1186_v36 = vsel %vm1176_vm7, %v1183_v25, %v1185_v56  ;;  %v1189_v23 = vsel %vm1176_vm7, %v1187_v4, %v1188_v50  ;;  %v1193_v62 = vrot.slane %v1138_v14, 1 }
 0x178   : > { %v1191_v9 = vsel %vm1176_vm7, %v1188_v50, %v1190_v57  ;;  %v1195_v10 = vrot.slane %v1139_v17, 1  ;;  %v1197_v11 = vrot.slane %v1140_v18, 1  ;;  %v1198_v12 = vrot.slane %v1141_v19, 1 }
 0x179   : > { %v1194_v13 = vsel %vm1176_vm7, %v1192_v5, %v1193_v62  ;;  %v1200_v7 = vrot.slane %v1142_v26, 1  ;;  %v1202_v3 = vrot.slane %v1143_v27, 1  ;;  %v1203_v39 = vrot.slane %v1144_v28, 1  ;;  %v1254_v28 = vld [vmem:[#allocation2 + $0x30] sm:$0xe] }
 0x17a   : > { %v1196_v51 = vsel %vm1176_vm7, %v1193_v62, %v1195_v10  ;;  %v1199_v44 = vsel %vm1176_vm7, %v1197_v11, %v1198_v12  ;;  %v1205_v34 = vrot.slane %v1145_v0, 1  ;;  %v1207_v8 = vrot.slane %v1146_v31, 1  ;;  %v1256_v31 = vld [vmem:[#allocation2 + $0x48] sm:$0xe] }
 0x17b   : > { %v1201_v25 = vsel %vm1176_vm7, %v1198_v12, %v1200_v7  ;;  %v1204_v56 = vsel %vm1176_vm7, %v1202_v3, %v1203_v39  ;;  %v1208_v4 = vrot.slane %v1147_v1, 1  ;;  %v1210_v50 = vrot.slane %v1148_v2, 1 }
 0x17c   : > { %v1206_v57 = vsel %vm1176_vm7, %v1203_v39, %v1205_v34  ;;  %v1212_v16 = vrot.slane %v1149_v63, 1  ;;  %v1213_v14 = vrot.slane %v1150_v6, 1  ;;  %v1215_v5 = vrot.slane %v1151_v21, 1  ;;  %v1250_v21 = vld [vmem:[#allocation2] sm:$0xe] }
 0x17d   : > { %v1209_v17 = vsel %vm1176_vm7, %v1207_v8, %v1208_v4  ;;  %v1211_v18 = vsel %vm1176_vm7, %v1208_v4, %v1210_v50  ;;  %v3336_v19 = vadd.f32 %v1179_v29, %v3224_v37  ;;  %v3339_v0 = vadd.f32 %v1181_v30, %v3227_v38  ;;  %v1251_v6 = vld [vmem:[#allocation2 + $0xc] sm:$0xe]  ;;  %v1252_v38 = vld [vmem:[#allocation2 + $0x18] sm:$0xe]  ;;  %v4078_v50 = vld [vmem:[#allocation10_spill] sm:$0xff] }
 0x17e   : > { %v1214_v26 = vsel %vm1176_vm7, %v1212_v16, %v1213_v14  ;;  %v1216_v1 = vsel %vm1176_vm7, %v1213_v14, %v1215_v5  ;;  %v3344_v2 = vadd.f32 %v1184_v35, %v3229_v40  ;;  %v3347_v63 = vadd.f32 %v1186_v36, %v3232_v41  ;;  %v1253_v40 = vld [vmem:[#allocation2 + $0x24] sm:$0xe]  ;;  %v4080_v16 = vld [vmem:[#allocation5_spill] sm:$0xff]  ;;  %v4081_v5 = vld [vmem:[#allocation11_spill] sm:$0xff] }
 0x17f   : > { %v3350_v27 = vadd.f32 %v1189_v23, %v3239_v45  ;;  %v3353_v29 = vadd.f32 %v1191_v9, %v3242_v46  ;;  %v3356_v30 = vadd.f32 %v1194_v13, %v3244_v47  ;;  %v3359_v37 = vadd.f32 %v1196_v51, %v3247_v48  ;;  %v1255_v47 = vld [vmem:[#allocation2 + $0x3c] sm:$0xe] }
 0x180   : > { %v3362_v36 = vadd.f32 %v1199_v44, %v3256_v52  ;;  %v3365_v41 = vadd.f32 %v1201_v25, %v3259_v53  ;;  %v3368_v45 = vadd.f32 %v1204_v56, %v3261_v54  ;;  %v3371_v46 = vadd.f32 %v1206_v57, %v3264_v55  ;;  %v2432_v54 = vld [vmem:[%s3996_s3 + $0x2] ss:$0 sm:$0xff] }
 0x181   : > { %v3374_v48 = vadd.f32 %v1209_v17, %v3273_v59  ;;  %v3377_v35 = vadd.f32 %v1211_v18, %v3276_v24  ;;  %v3380_v52 = vadd.f32 %v1214_v26, %v3278_v60  ;;  %v3383_v53 = vadd.f32 %v1216_v1, %v3281_v61  ;;  %v4083_v18 = vld [vmem:[#allocation8_spill] sm:$0xff] }
 0x182   : > { %v1258_v55 = vunpack.c.l.bf16 %v1250_v21  ;;  %v1259_v23 = vunpack.c.l.bf16 %v1251_v6  ;;  %v1260_v62 = vunpack.c.l.bf16 %v1252_v38  ;;  %v1261_v9 = vunpack.c.l.bf16 %v1253_v40  ;;  %v4084_v1 = vld [vmem:[#allocation12_spill] sm:$0xff]  ;;  %v4086_v38 = vld [vmem:[#allocation7_spill] sm:$0xff] }
 0x183   : > { %v1262_v59 = vunpack.c.l.bf16 %v1254_v28  ;;  %v1263_v10 = vunpack.c.l.bf16 %v1255_v47  ;;  %v1264_v11 = vunpack.c.l.bf16 %v1256_v31  ;;  %v1265_v24 = vunpack.c.l.bf16 %v1257_v33  ;;  %v4087_v28 = vld [vmem:[#allocation13_spill] sm:$0xff] }
 0x184   : > { %v1270_v12 = vmul.f32 %v2432_v54, %v1258_v55  ;;  %v1271_v60 = vmul.f32 %v3194_v15, %v2432_v54  ;;  %v4075_v13 = vunpack.c.l.bf16 %v3234_v42  ;;  %v1273_v7 = vmul.f32 %v2432_v54, %v1259_v23  ;;  %v4089_v33 = vld [vmem:[#allocation9_spill] sm:$0xff] }
 0x185   : > { %v1274_v3 = vmul.f32 %v2432_v54, %v3198_v20  ;;  %v4076_v39 = vunpack.c.l.bf16 %v3236_v43  ;;  %v1276_v44 = vmul.f32 %v2432_v54, %v1260_v62  ;;  %v1277_v34 = vmul.f32 %v3202_v22, %v2432_v54 }
 0x186   : > { %v1272_v61 = vmul.f32 %v2432_v54, %v4075_v13  ;;  %v4077_v8 = vunpack.c.l.bf16 %v3249_v49  ;;  %v1279_v56 = vmul.f32 %v2432_v54, %v1261_v9  ;;  %v1280_v4 = vmul.f32 %v2432_v54, %v3216_v32 }
 0x187   : > { %v1275_v51 = vmul.f32 %v2432_v54, %v4076_v39  ;;  %v4079_v15 = vunpack.c.l.bf16 %v4078_v50  ;;  %v1282_v42 = vmul.f32 %v2432_v54, %v1262_v59  ;;  %v1283_v14 = vmul.f32 %v4080_v16, %v2432_v54 }
 0x188   : > { %v1278_v25 = vmul.f32 %v2432_v54, %v4077_v8  ;;  %v4082_v20 = vunpack.c.l.bf16 %v4081_v5  ;;  %v1285_v43 = vmul.f32 %v2432_v54, %v1263_v10  ;;  %v1286_v26 = vmul.f32 %v2432_v54, %v4083_v18 }
 0x189   : > { %v1281_v57 = vmul.f32 %v2432_v54, %v4079_v15  ;;  %v4085_v21 = vunpack.c.l.bf16 %v4084_v1  ;;  %v1288_v49 = vmul.f32 %v2432_v54, %v1264_v11  ;;  %v1289_v40 = vmul.f32 %v4086_v38, %v2432_v54 }
 0x18a   : > { %v1284_v17 = vmul.f32 %v2432_v54, %v4082_v20  ;;  %v4088_v32 = vunpack.c.l.bf16 %v4087_v28  ;;  %v1291_v31 = vmul.f32 %v2432_v54, %v1265_v24  ;;  %v1292_v55 = vmul.f32 %v2432_v54, %v4089_v33 }
 0x18b   : > { %v1287_v6 = vmul.f32 %v2432_v54, %v4085_v21  ;;  %v4090_v23 = vunpack.c.l.bf16 %v3270_v58  ;;  %v1319_v9 = vrot.slane %v1270_v12, 2  ;;  %v1320_v59 = vrot.slane %v1271_v60, 2 }
 0x18c   : > { %v1290_v47 = vmul.f32 %v2432_v54, %v4088_v32  ;;  %v1322_v10 = vrot.slane %v1272_v61, 2  ;;  %v1324_v13 = vrot.slane %v1273_v7, 2  ;;  %v1325_v39 = vrot.slane %v1274_v3, 2 }
 0x18d   : > { %v1293_v62 = vmul.f32 %v2432_v54, %v4090_v23  ;;  %v1327_v8 = vrot.slane %v1275_v51, 2  ;;  %v1329_v50 = vrot.slane %v1276_v44, 2  ;;  %v1330_v15 = vrot.slane %v1277_v34, 2 }
 0x18e   : > { %v1321_v11 = vsel %vm1318_vm8, %v1319_v9, %v1320_v59  ;;  %v1323_v5 = vsel %vm1318_vm8, %v1320_v59, %v1322_v10  ;;  %v1332_v20 = vrot.slane %v1278_v25, 2  ;;  %v1334_v18 = vrot.slane %v1279_v56, 2 }
 0x18f   : > { %v1326_v24 = vsel %vm1318_vm8, %v1324_v13, %v1325_v39  ;;  %v1328_v1 = vsel %vm1318_vm8, %v1325_v39, %v1327_v8  ;;  %v1331_v58 = vsel %vm1318_vm8, %v1329_v50, %v1330_v15  ;;  %v1335_v54 = vrot.slane %v1280_v4, 2  ;;  %v3436_v13 = vld [vmem:[#allocation2 + $0xc] sm:$0xff]  }
 0x190   : > { %v1333_v12 = vsel %vm1318_vm8, %v1330_v15, %v1332_v20  ;;  %v1337_v60 = vrot.slane %v1281_v57, 2  ;;  %v1339_v61 = vrot.slane %v1282_v42, 2  ;;  %v1340_v7 = vrot.slane %v1283_v14, 2 }
 0x191   : > { %v1336_v3 = vsel %vm1318_vm8, %v1334_v18, %v1335_v54  ;;  %v1342_v51 = vrot.slane %v1284_v17, 2  ;;  %v1344_v44 = vrot.slane %v1285_v43, 2  ;;  %v1345_v34 = vrot.slane %v1286_v26, 2 }
 0x192   : > { %v1338_v25 = vsel %vm1318_vm8, %v1335_v54, %v1337_v60  ;;  %v1341_v56 = vsel %vm1318_vm8, %v1339_v61, %v1340_v7  ;;  %v1347_v21 = vrot.slane %v1287_v6, 2  ;;  %v1349_v28 = vrot.slane %v1288_v49, 2  ;;  %v4096_v61 = vld [vmem:[#allocation4_spill] sm:$0xff] }
 0x193   : > { %v1343_v32 = vsel %vm1318_vm8, %v1340_v7, %v1342_v51  ;;  %v1346_v4 = vsel %vm1318_vm8, %v1344_v44, %v1345_v34  ;;  %v1350_v33 = vrot.slane %v1289_v40, 2  ;;  %v1352_v23 = vrot.slane %v1290_v47, 2 }
 0x194   : > { %v1348_v57 = vsel %vm1318_vm8, %v1345_v34, %v1347_v21  ;;  %v1354_v42 = vrot.slane %v1291_v31, 2  ;;  %v1355_v14 = vrot.slane %v1292_v55, 2  ;;  %v1357_v9 = vrot.slane %v1293_v62, 2  ;;  %v4097_v34 = vld [vmem:[#allocation6_spill] sm:$0xff] }
 0x195   : > { %v1351_v17 = vsel %vm1318_vm8, %v1349_v28, %v1350_v33  ;;  %v1353_v43 = vsel %vm1318_vm8, %v1350_v33, %v1352_v23  ;;  %v1375_v26 = vadd.f32 %v1321_v11, %v3336_v19  ;;  %v1376_v6 = vadd.f32 %v1323_v5, %v3339_v0  ;;  %v2688_v19 = vld [vmem:[#allocation2 + $0x60] sm:$0xff]  }
 0x196   : > { %v1356_v49 = vsel %vm1318_vm8, %v1354_v42, %v1355_v14  ;;  %v1358_v59 = vsel %vm1318_vm8, %v1355_v14, %v1357_v9  ;;  %v1377_v40 = vadd.f32 %v1326_v24, %v3344_v2  ;;  %v1378_v47 = vadd.f32 %v1328_v1, %v3347_v63  ;;  %v3442_v63 = vld [vmem:[#allocation2 + $0x24] sm:$0xff]   ;;  %v4095_v1 = vld [vmem:[#allocation3_spill] sm:$0xff] }
 0x197   : > { %v1379_v31 = vadd.f32 %v1331_v58, %v3350_v27  ;;  %v1380_v55 = vadd.f32 %v1333_v12, %v3353_v29  ;;  %v1381_v62 = vadd.f32 %v1336_v3, %v3356_v30  ;;  %v1382_v10 = vadd.f32 %v1338_v25, %v3359_v37  ;;  %v3444_v27 = vld [vmem:[#allocation2 + $0x3c] sm:$0xff]  }
 0x198   : > { %v1383_v0 = vadd.f32 %v1341_v56, %v3362_v36  ;;  %v1384_v39 = vadd.f32 %v1343_v32, %v3365_v41  ;;  %v1385_v8 = vadd.f32 %v1346_v4, %v3368_v45  ;;  %v1386_v2 = vadd.f32 %v1348_v57, %v3371_v46  ;;  %v2433_v36 = vld [vmem:[%s3996_s3 + $0x3] ss:$0 sm:$0xff]  ;;  %v3453_v41 = vld [vmem:[#allocation2 + $0x54] sm:$0xff]  }
 0x199   : > { %v1387_v29 = vadd.f32 %v1351_v17, %v3374_v48  ;;  %v1388_v30 = vadd.f32 %v1353_v43, %v3377_v35  ;;  %v1389_v37 = vadd.f32 %v1356_v49, %v3380_v52  ;;  %v1390_v50 = vadd.f32 %v1358_v59, %v3383_v53  ;;  %v3503_v17 = vld [vmem:[#allocation2 + $0x14] sm:$0x1]  ;;  %v3505_v43 = vld [vmem:[#allocation2 + $0x20] sm:$0x1]  ;;  %v3507_v49 = vld [vmem:[#allocation2 + $0x2c] sm:$0x1] }
 0x19a   : > { %v3455_v45 = vunpack.c.l.bf16 %v2688_v19  ;;  %v3457_v46 = vunpack.c.h.bf16 %v2688_v19  ;;  %v1409_v15 = vunpack.c.l.bf16 %v3436_v13  ;;  %v3461_v48 = vunpack.c.h.bf16 %v3436_v13 }
 0x19b   : > { %v1413_v35 = vunpack.c.l.bf16 %v3442_v63  ;;  %v3465_v52 = vunpack.c.h.bf16 %v3442_v63  ;;  %v1417_v53 = vunpack.c.l.bf16 %v3444_v27  ;;  %v3469_v11 = vunpack.c.h.bf16 %v3444_v27 }
 0x19c   : > { %4091 = vst [vmem:[#allocation10_spill] sm:$0xff] %v3455_v45  ;;  %4092 = vst [vmem:[#allocation5_spill] sm:$0xff] %v3457_v46  ;;  %v1421_v5 = vunpack.c.l.bf16 %v3453_v41  ;;  %v3473_v20 = vunpack.c.h.bf16 %v3453_v41  ;;  %v1429_v18 = vmul.f32 %v2433_v36, %v1409_v15  ;;  %v1430_v24 = vmul.f32 %v2433_v36, %v3461_v48 }
 0x19d   : > { %4093 = vst [vmem:[#allocation11_spill] sm:$0xff] %v3469_v11  ;;  %v1431_v58 = vmul.f32 %v4095_v1, %v2433_v36  ;;  %v1432_v54 = vmul.f32 %v3202_v22, %v2433_v36  ;;  %v1433_v12 = vmul.f32 %v2433_v36, %v1413_v35  ;;  %v1434_v60 = vmul.f32 %v2433_v36, %v3465_v52 }
 0x19e   : > { %4094 = vst [vmem:[#allocation8_spill] sm:$0xff] %v3473_v20  ;;  %v1435_v7 = vmul.f32 %v4096_v61, %v2433_v36  ;;  %v1436_v3 = vmul.f32 %v4080_v16, %v2433_v36  ;;  %v1437_v51 = vmul.f32 %v2433_v36, %v1417_v53  ;;  %v1438_v44 = vmul.f32 %v2433_v36, %v3469_v11 }
 0x19f   : > { %v1439_v25 = vmul.f32 %v4097_v34, %v2433_v36  ;;  %v1440_v56 = vmul.f32 %v4086_v38, %v2433_v36  ;;  %v1441_v21 = vmul.f32 %v2433_v36, %v1421_v5  ;;  %v1442_v28 = vmul.f32 %v2433_v36, %v3473_v20 }
 0x1a0   : > { %v1443_v32 = vmul.f32 %v3455_v45, %v2433_v36  ;;  %v1444_v4 = vmul.f32 %v3457_v46, %v2433_v36  ;;  %v3491_v33 = vadd.f32 %v1429_v18, %v1375_v26  ;;  %v3493_v23 = vadd.f32 %v1430_v24, %v1376_v6 }
 0x1a1   : > { %v3495_v57 = vadd.f32 %v1431_v58, %v1377_v40  ;;  %v3497_v42 = vadd.f32 %v1432_v54, %v1378_v47  ;;  %v3499_v14 = vadd.f32 %v1433_v12, %v1379_v31  ;;  %v3501_v9 = vadd.f32 %v1434_v60, %v1380_v55  ;;  %v3517_v47 = vld [vmem:[#allocation2 + $0x38] sm:$0x1]  ;;  %v3519_v31 = vld [vmem:[#allocation2 + $0x44] sm:$0x1]  ;;  %v3521_v55 = vld [vmem:[#allocation2 + $0x50] sm:$0x1] }
 0x1a2   : > { %v3509_v59 = vadd.f32 %v1435_v7, %v1381_v62  ;;  %v3511_v26 = vadd.f32 %v1436_v3, %v1382_v10  ;;  %v3513_v6 = vadd.f32 %v1437_v51, %v1383_v0  ;;  %v3515_v40 = vadd.f32 %v1438_v44, %v1384_v39  ;;  %4098 = vst [vmem:[#allocation12_spill] sm:$0xff] %v3517_v47  ;;  %v2434_v10 = vld [vmem:[%s3996_s3 + $0x4] ss:$0 sm:$0xff]  ;;  %v3534_v0 = vld [vmem:[#allocation2 + $0x5c] sm:$0x1] }
 0x1a3   : > { %4099 = vst [vmem:[#allocation13_spill] sm:$0xff] %v3519_v31  ;;  %4100 = vst [vmem:[#allocation9_spill] sm:$0xff] %v3521_v55  ;;  %v3523_v13 = vadd.f32 %v1439_v25, %v1385_v8  ;;  %v3525_v19 = vadd.f32 %v1440_v56, %v1386_v2  ;;  %v3527_v63 = vadd.f32 %v1441_v21, %v1387_v29  ;;  %v3536_v39 = vld [vmem:[#allocation2 + $0x68] sm:$0x1]  ;;  %v4024_v8 = vunpack.c.l.bf16 %v3503_v17 }
 0x1a4   : > { %v3529_v62 = vadd.f32 %v1442_v28, %v1388_v30  ;;  %4101 = vst [vmem:[#allocation14_spill] sm:$0xff] %v3534_v0  ;;  %v3538_v36 = vadd.f32 %v1443_v32, %v1389_v37  ;;  %v3540_v18 = vadd.f32 %v1444_v4, %v1390_v50  ;;  %v4023_v2 = vunpack.c.l.bf16 %v3505_v43 }
 0x1a5   : > { %v4025_v29 = vunpack.c.l.bf16 %v3507_v49  ;;  %v4026_v30 = vunpack.c.l.bf16 %v3517_v47  ;;  %v4028_v24 = vunpack.c.l.bf16 %v3519_v31  ;;  %v4034_v58 = vunpack.c.l.bf16 %v3521_v55 }
 0x1a6   : > { %v4038_v54 = vunpack.c.l.bf16 %v3534_v0  ;;  %v1482_v37 = vmul.f32 %v2434_v10, %v1409_v15  ;;  %v1483_v50 = vmul.f32 %v2434_v10, %v3461_v48  ;;  %v1484_v60 = vmul.f32 %v2434_v10, %v4024_v8 }
 0x1a7   : > { %v1485_v7 = vmul.f32 %v4095_v1, %v2434_v10  ;;  %v1486_v3 = vmul.f32 %v3202_v22, %v2434_v10  ;;  %v1487_v51 = vmul.f32 %v2434_v10, %v4023_v2  ;;  %v1488_v44 = vmul.f32 %v2434_v10, %v1413_v35 }
 0x1a8   : > { %v1489_v25 = vmul.f32 %v2434_v10, %v3465_v52  ;;  %v1490_v56 = vmul.f32 %v2434_v10, %v4025_v29  ;;  %v1491_v15 = vmul.f32 %v4096_v61, %v2434_v10  ;;  %v1492_v21 = vmul.f32 %v4080_v16, %v2434_v10 }
 0x1a9   : > { %v1493_v28 = vmul.f32 %v2434_v10, %v4026_v30  ;;  %v1494_v32 = vmul.f32 %v2434_v10, %v1417_v53  ;;  %v1495_v4 = vmul.f32 %v2434_v10, %v3469_v11  ;;  %v1496_v35 = vmul.f32 %v2434_v10, %v4028_v24 }
 0x1aa   : > { %v1497_v2 = vmul.f32 %v4097_v34, %v2434_v10  ;;  %v1498_v8 = vmul.f32 %v4086_v38, %v2434_v10  ;;  %v1499_v29 = vmul.f32 %v2434_v10, %v4034_v58  ;;  %v1500_v12 = vmul.f32 %v2434_v10, %v1421_v5 }
 0x1ab   : > { %v1501_v30 = vmul.f32 %v2434_v10, %v3473_v20  ;;  %v1502_v27 = vmul.f32 %v2434_v10, %v4038_v54  ;;  %v1503_v53 = vmul.f32 %v3455_v45, %v2434_v10  ;;  %v1504_v61 = vmul.f32 %v3457_v46, %v2434_v10 }
 0x1ac   : > { %v4102_v24 = vunpack.c.l.bf16 %v3536_v39  ;;  %v1530_v1 = vrot.slane %v1482_v37, 1  ;;  %v1531_v38 = vrot.slane %v1483_v50, 1  ;;  %v1533_v31 = vrot.slane %v1484_v60, 1 }
 0x1ad   : > { %v1535_v55 = vrot.slane %v1485_v7, 1  ;;  %v1536_v58 = vrot.slane %v1486_v3, 1  ;;  %v1538_v11 = vrot.slane %v1487_v51, 1  ;;  %v1540_v5 = vrot.slane %v1488_v44, 1 }
 0x1ae   : > { %v1505_v34 = vmul.f32 %v2434_v10, %v4102_v24  ;;  %v1532_v41 = vsel %vm1176_vm7, %v1530_v1, %v1531_v38  ;;  %v1541_v20 = vrot.slane %v1489_v25, 1  ;;  %v1543_v47 = vrot.slane %v1490_v56, 1 }
 0x1af   : > { %v1534_v54 = vsel %vm1176_vm7, %v1531_v38, %v1533_v31  ;;  %v1537_v45 = vsel %vm1176_vm7, %v1535_v55, %v1536_v58  ;;  %v1539_v46 = vsel %vm1176_vm7, %v1536_v58, %v1538_v11  ;;  %v1545_v0 = vrot.slane %v1491_v15, 1 }
 0x1b0   : > { %v1542_v10 = vsel %vm1176_vm7, %v1540_v5, %v1541_v20  ;;  %v1544_v24 = vsel %vm1176_vm7, %v1541_v20, %v1543_v47  ;;  %v1546_v37 = vrot.slane %v1492_v21, 1  ;;  %v1548_v50 = vrot.slane %v1493_v28, 1 }
 0x1b1   : > { %v1550_v60 = vrot.slane %v1494_v32, 1  ;;  %v1551_v7 = vrot.slane %v1495_v4, 1  ;;  %v1553_v3 = vrot.slane %v1496_v35, 1  ;;  %v1555_v1 = vrot.slane %v1497_v2, 1  ;;  %v1604_v35 = vld [vmem:[#allocation2 + $0x18] sm:$0xe] }
 0x1b2   : > { %v1547_v51 = vsel %vm1176_vm7, %v1545_v0, %v1546_v37  ;;  %v1549_v44 = vsel %vm1176_vm7, %v1546_v37, %v1548_v50  ;;  %v1556_v38 = vrot.slane %v1498_v8, 1  ;;  %v1558_v31 = vrot.slane %v1499_v29, 1 }
 0x1b3   : > { %v1552_v55 = vsel %vm1176_vm7, %v1550_v60, %v1551_v7  ;;  %v1554_v11 = vsel %vm1176_vm7, %v1551_v7, %v1553_v3  ;;  %v1560_v58 = vrot.slane %v1500_v12, 1  ;;  %v1561_v25 = vrot.slane %v1501_v30, 1 }
 0x1b4   : > { %v1557_v20 = vsel %vm1176_vm7, %v1555_v1, %v1556_v38  ;;  %v1559_v47 = vsel %vm1176_vm7, %v1556_v38, %v1558_v31  ;;  %v1563_v56 = vrot.slane %v1502_v27, 1  ;;  %v1565_v15 = vrot.slane %v1503_v53, 1  ;;  %v1608_v27 = vld [vmem:[#allocation2 + $0x48] sm:$0xe] }
 0x1b5   : > { %v1562_v2 = vsel %vm1176_vm7, %v1560_v58, %v1561_v25  ;;  %v1566_v21 = vrot.slane %v1504_v61, 1  ;;  %v1568_v0 = vrot.slane %v1505_v34, 1  ;;  %v3596_v28 = vadd.f32 %v1532_v41, %v3491_v33  ;;  %v1603_v33 = vld [vmem:[#allocation2 + $0xc] sm:$0xe]  ;;  %v1610_v41 = vld [vmem:[#allocation2 + $0x60] sm:$0xe] }
 0x1b6   : > { %v1564_v8 = vsel %vm1176_vm7, %v1561_v25, %v1563_v56  ;;  %v3600_v29 = vadd.f32 %v1534_v54, %v3493_v23  ;;  %v3603_v30 = vadd.f32 %v1537_v45, %v3495_v57  ;;  %v3606_v12 = vadd.f32 %v1539_v46, %v3497_v42  ;;  %v1605_v23 = vld [vmem:[#allocation2 + $0x24] sm:$0xe]  ;;  %v1606_v42 = vld [vmem:[#allocation2 + $0x30] sm:$0xe] }
 0x1b7   : > { %v1567_v32 = vsel %vm1176_vm7, %v1565_v15, %v1566_v21  ;;  %v1569_v4 = vsel %vm1176_vm7, %v1566_v21, %v1568_v0  ;;  %v3611_v61 = vadd.f32 %v1542_v10, %v3499_v14  ;;  %v3614_v34 = vadd.f32 %v1544_v24, %v3501_v9  ;;  %v1607_v14 = vld [vmem:[#allocation2 + $0x3c] sm:$0xe]  ;;  %v4109_v21 = vld [vmem:[#allocation13_spill] sm:$0xff] }
 0x1b8   : > { %v3617_v54 = vadd.f32 %v1547_v51, %v3509_v59  ;;  %v3620_v45 = vadd.f32 %v1549_v44, %v3511_v26  ;;  %v3623_v46 = vadd.f32 %v1552_v55, %v3513_v6  ;;  %v3626_v57 = vadd.f32 %v1554_v11, %v3515_v40  ;;  %v2435_v6 = vld [vmem:[%s3996_s3 + $0x5] ss:$0 sm:$0xff]  ;;  %v1609_v40 = vld [vmem:[#allocation2 + $0x54] sm:$0xe]  ;;  %v4108_v15 = vld [vmem:[#allocation11_spill] sm:$0xff] }
 0x1b9   : > { %v3629_v9 = vadd.f32 %v1557_v20, %v3523_v13  ;;  %v3632_v53 = vadd.f32 %v1559_v47, %v3525_v19  ;;  %v3635_v59 = vadd.f32 %v1562_v2, %v3527_v63  ;;  %v3638_v26 = vadd.f32 %v1564_v8, %v3529_v62  ;;  %v4106_v47 = vld [vmem:[#allocation12_spill] sm:$0xff] }
 0x1ba   : > { %v3644_v5 = vadd.f32 %v1567_v32, %v3538_v36  ;;  %v3647_v13 = vadd.f32 %v1569_v4, %v3540_v18  ;;  %v1611_v19 = vunpack.c.l.bf16 %v1603_v33  ;;  %v1612_v10 = vunpack.c.l.bf16 %v1604_v35  ;;  %v4111_v32 = vld [vmem:[#allocation7_spill] sm:$0xff]  ;;  %v4112_v33 = vld [vmem:[#allocation9_spill] sm:$0xff] }
 0x1bb   : > { %v1613_v24 = vunpack.c.l.bf16 %v1605_v23  ;;  %v1614_v63 = vunpack.c.l.bf16 %v1606_v42  ;;  %v1615_v37 = vunpack.c.l.bf16 %v1607_v14  ;;  %v1616_v50 = vunpack.c.l.bf16 %v1608_v27  ;;  %v4114_v23 = vld [vmem:[#allocation8_spill] sm:$0xff]  ;;  %v4115_v14 = vld [vmem:[#allocation14_spill] sm:$0xff] }
 0x1bc   : > { %v1617_v62 = vunpack.c.l.bf16 %v1609_v40  ;;  %v1618_v60 = vunpack.c.l.bf16 %v1610_v41  ;;  %v1623_v7 = vmul.f32 %v2435_v6, %v1611_v19  ;;  %v1624_v3 = vmul.f32 %v2435_v6, %v3461_v48  ;;  %v4117_v19 = vld [vmem:[#allocation5_spill] sm:$0xff] }
 0x1bd   : > { %v4103_v1 = vunpack.c.l.bf16 %v3503_v17  ;;  %v1626_v44 = vmul.f32 %v2435_v6, %v1612_v10  ;;  %v1627_v36 = vmul.f32 %v3202_v22, %v2435_v6  ;;  %v4104_v18 = vunpack.c.l.bf16 %v3505_v43 }
 0x1be   : > { %v1629_v31 = vmul.f32 %v2435_v6, %v1613_v24  ;;  %v1630_v55 = vmul.f32 %v2435_v6, %v3465_v52  ;;  %v4105_v11 = vunpack.c.l.bf16 %v3507_v49  ;;  %v1632_v25 = vmul.f32 %v2435_v6, %v1614_v63 }
 0x1bf   : > { %v1625_v51 = vmul.f32 %v2435_v6, %v4103_v1  ;;  %v1628_v38 = vmul.f32 %v2435_v6, %v4104_v18  ;;  %v1633_v20 = vmul.f32 %v4080_v16, %v2435_v6  ;;  %v4107_v48 = vunpack.c.l.bf16 %v4106_v47 }
 0x1c0   : > { %v1631_v58 = vmul.f32 %v2435_v6, %v4105_v11  ;;  %v1635_v17 = vmul.f32 %v2435_v6, %v1615_v37  ;;  %v1636_v2 = vmul.f32 %v2435_v6, %v4108_v15  ;;  %v4110_v0 = vunpack.c.l.bf16 %v4109_v21 }
 0x1c1   : > { %v1634_v56 = vmul.f32 %v2435_v6, %v4107_v48  ;;  %v1638_v43 = vmul.f32 %v2435_v6, %v1616_v50  ;;  %v1639_v4 = vmul.f32 %v4111_v32, %v2435_v6  ;;  %v4113_v52 = vunpack.c.l.bf16 %v4112_v33 }
 0x1c2   : > { %v1637_v8 = vmul.f32 %v2435_v6, %v4110_v0  ;;  %v1641_v49 = vmul.f32 %v2435_v6, %v1617_v62  ;;  %v1642_v42 = vmul.f32 %v2435_v6, %v4114_v23  ;;  %v4116_v27 = vunpack.c.l.bf16 %v4115_v14 }
 0x1c3   : > { %v1640_v35 = vmul.f32 %v2435_v6, %v4113_v52  ;;  %v1644_v41 = vmul.f32 %v2435_v6, %v1618_v60  ;;  %v1645_v10 = vmul.f32 %v4117_v19, %v2435_v6  ;;  %v4118_v24 = vunpack.c.l.bf16 %v3536_v39 }
 0x1c4   : > { %v1643_v40 = vmul.f32 %v2435_v6, %v4116_v27  ;;  %v1671_v37 = vrot.slane %v1623_v7, 2  ;;  %v1672_v1 = vrot.slane %v1624_v3, 2  ;;  %v1674_v50 = vrot.slane %v1625_v51, 2 }
 0x1c5   : > { %v1646_v63 = vmul.f32 %v2435_v6, %v4118_v24  ;;  %v1676_v18 = vrot.slane %v1626_v44, 2  ;;  %v1677_v11 = vrot.slane %v1627_v36, 2  ;;  %v1679_v47 = vrot.slane %v1628_v38, 2 }
 0x1c6   : > { %v1673_v48 = vsel %vm1318_vm8, %v1671_v37, %v1672_v1  ;;  %v1681_v62 = vrot.slane %v1629_v31, 2  ;;  %v1682_v15 = vrot.slane %v1630_v55, 2  ;;  %v1684_v21 = vrot.slane %v1631_v58, 2 }
 0x1c7   : > { %v1675_v0 = vsel %vm1318_vm8, %v1672_v1, %v1674_v50  ;;  %v1678_v60 = vsel %vm1318_vm8, %v1676_v18, %v1677_v11  ;;  %v1680_v33 = vsel %vm1318_vm8, %v1677_v11, %v1679_v47  ;;  %v1686_v52 = vrot.slane %v1632_v25, 2  ;;  %v3701_v11 = vld [vmem:[#allocation2 + $0x3c] sm:$0xff]  }
 0x1c8   : > { %v1683_v39 = vsel %vm1318_vm8, %v1681_v62, %v1682_v15  ;;  %v1685_v6 = vsel %vm1318_vm8, %v1682_v15, %v1684_v21  ;;  %v1687_v7 = vrot.slane %v1633_v20, 2  ;;  %v1689_v3 = vrot.slane %v1634_v56, 2 }
 0x1c9   : > { %v1691_v51 = vrot.slane %v1635_v17, 2  ;;  %v1692_v44 = vrot.slane %v1636_v2, 2  ;;  %v1694_v36 = vrot.slane %v1637_v8, 2  ;;  %v1696_v38 = vrot.slane %v1638_v43, 2 }
 0x1ca   : > { %v1688_v31 = vsel %vm1318_vm8, %v1686_v52, %v1687_v7  ;;  %v1690_v55 = vsel %vm1318_vm8, %v1687_v7, %v1689_v3  ;;  %v1697_v58 = vrot.slane %v1639_v4, 2  ;;  %v1699_v23 = vrot.slane %v1640_v35, 2 }
 0x1cb   : > { %v1693_v14 = vsel %vm1318_vm8, %v1691_v51, %v1692_v44  ;;  %v1695_v25 = vsel %vm1318_vm8, %v1692_v44, %v1694_v36  ;;  %v1701_v27 = vrot.slane %v1641_v49, 2  ;;  %v1702_v24 = vrot.slane %v1642_v42, 2  ;;  %v4123_v44 = vld [vmem:[#allocation6_spill] sm:$0xff] }
 0x1cc   : > { %v1698_v37 = vsel %vm1318_vm8, %v1696_v38, %v1697_v58  ;;  %v1700_v20 = vsel %vm1318_vm8, %v1697_v58, %v1699_v23  ;;  %v1704_v56 = vrot.slane %v1643_v40, 2  ;;  %v1706_v17 = vrot.slane %v1644_v41, 2  ;;  %v4124_v58 = vld [vmem:[#allocation10_spill] sm:$0xff] }
 0x1cd   : > { %v1703_v2 = vsel %vm1318_vm8, %v1701_v27, %v1702_v24  ;;  %v1707_v8 = vrot.slane %v1645_v10, 2  ;;  %v1709_v43 = vrot.slane %v1646_v63, 2  ;;  %v1727_v1 = vadd.f32 %v1673_v48, %v3596_v28  ;;  %v3695_v10 = vld [vmem:[#allocation2 + $0x24] sm:$0xff]  }
 0x1ce   : > { %v1705_v4 = vsel %vm1318_vm8, %v1702_v24, %v1704_v56  ;;  %v1728_v35 = vadd.f32 %v1675_v0, %v3600_v29  ;;  %v1729_v50 = vadd.f32 %v1678_v60, %v3603_v30  ;;  %v1730_v49 = vadd.f32 %v1680_v33, %v3606_v12  ;;  %v3703_v12 = vld [vmem:[#allocation2 + $0x54] sm:$0xff]  }
 0x1cf   : > { %v1708_v42 = vsel %vm1318_vm8, %v1706_v17, %v1707_v8  ;;  %v1710_v18 = vsel %vm1318_vm8, %v1707_v8, %v1709_v43  ;;  %v1731_v40 = vadd.f32 %v1683_v39, %v3611_v61  ;;  %v1732_v41 = vadd.f32 %v1685_v6, %v3614_v34  ;;  %v4122_v39 = vld [vmem:[#allocation4_spill] sm:$0xff]  ;;  %v3764_v43 = vld [vmem:[#allocation2 + $0x2c] sm:$0x1] }
 0x1d0   : > { %v1733_v28 = vadd.f32 %v1688_v31, %v3617_v54  ;;  %v1734_v63 = vadd.f32 %v1690_v55, %v3620_v45  ;;  %v1735_v29 = vadd.f32 %v1693_v14, %v3623_v46  ;;  %v1736_v30 = vadd.f32 %v1695_v25, %v3626_v57  ;;  %v2436_v54 = vld [vmem:[%s3996_s3 + $0x6] ss:$0 sm:$0xff]  ;;  %v3712_v45 = vld [vmem:[#allocation2 + $0x6c] sm:$0xff]   ;;  %v3762_v8 = vld [vmem:[#allocation2 + $0x20] sm:$0x1] }
 0x1d1   : > { %v1737_v47 = vadd.f32 %v1698_v37, %v3629_v9  ;;  %v1738_v61 = vadd.f32 %v1700_v20, %v3632_v53  ;;  %v1739_v34 = vadd.f32 %v1703_v2, %v3635_v59  ;;  %v1740_v48 = vadd.f32 %v1705_v4, %v3638_v26  ;;  %v3766_v4 = vld [vmem:[#allocation2 + $0x38] sm:$0x1] }
 0x1d2   : > { %v1741_v46 = vadd.f32 %v1708_v42, %v3644_v5  ;;  %v1742_v57 = vadd.f32 %v1710_v18, %v3647_v13  ;;  %v1763_v62 = vunpack.c.l.bf16 %v3695_v10  ;;  %v3718_v9 = vunpack.c.h.bf16 %v3695_v10  ;;  %v4121_v13 = vld [vmem:[#allocation3_spill] sm:$0xff]  ;;  %v3778_v18 = vld [vmem:[#allocation2 + $0x50] sm:$0x1] }
 0x1d3   : > { %v1767_v53 = vunpack.c.l.bf16 %v3701_v11  ;;  %v3722_v59 = vunpack.c.h.bf16 %v3701_v11  ;;  %v1771_v26 = vunpack.c.l.bf16 %v3703_v12  ;;  %v3726_v15 = vunpack.c.h.bf16 %v3703_v12  ;;  %4126 = vst [vmem:[#allocation9_spill] sm:$0xff] %v3778_v18 }
 0x1d4   : > { %v1775_v21 = vunpack.c.l.bf16 %v3712_v45  ;;  %v3730_v5 = vunpack.c.h.bf16 %v3712_v45  ;;  %v1781_v0 = vmul.f32 %v4121_v13, %v2436_v54  ;;  %v1782_v60 = vmul.f32 %v3202_v22, %v2436_v54 }
 0x1d5   : > { %4119 = vst [vmem:[#allocation12_spill] sm:$0xff] %v3726_v15  ;;  %v1783_v33 = vmul.f32 %v2436_v54, %v1763_v62  ;;  %v1784_v52 = vmul.f32 %v2436_v54, %v3718_v9  ;;  %v1785_v6 = vmul.f32 %v4122_v39, %v2436_v54  ;;  %v1786_v7 = vmul.f32 %v4080_v16, %v2436_v54 }
 0x1d6   : > { %4120 = vst [vmem:[#allocation11_spill] sm:$0xff] %v3730_v5  ;;  %v1787_v3 = vmul.f32 %v2436_v54, %v1767_v53  ;;  %v1788_v51 = vmul.f32 %v2436_v54, %v3722_v59  ;;  %v1789_v36 = vmul.f32 %v4123_v44, %v2436_v54  ;;  %v1790_v38 = vmul.f32 %v4111_v32, %v2436_v54 }
 0x1d7   : > { %v1791_v31 = vmul.f32 %v2436_v54, %v1771_v26  ;;  %v1792_v55 = vmul.f32 %v2436_v54, %v3726_v15  ;;  %v1793_v23 = vmul.f32 %v4124_v58, %v2436_v54  ;;  %v1794_v14 = vmul.f32 %v4117_v19, %v2436_v54 }
 0x1d8   : > { %v1795_v25 = vmul.f32 %v2436_v54, %v1775_v21  ;;  %v1796_v27 = vmul.f32 %v2436_v54, %v3730_v5  ;;  %v3750_v24 = vadd.f32 %v1781_v0, %v1727_v1  ;;  %v3752_v37 = vadd.f32 %v1782_v60, %v1728_v35 }
 0x1d9   : > { %v3754_v20 = vadd.f32 %v1783_v33, %v1729_v50  ;;  %v3756_v56 = vadd.f32 %v1784_v52, %v1730_v49  ;;  %v3758_v17 = vadd.f32 %v1785_v6, %v1731_v40  ;;  %v3760_v2 = vadd.f32 %v1786_v7, %v1732_v41  ;;  %v3776_v49 = vld [vmem:[#allocation2 + $0x44] sm:$0x1]  ;;  %v3780_v40 = vld [vmem:[#allocation2 + $0x5c] sm:$0x1] }
 0x1da   : > { %v3768_v42 = vadd.f32 %v1787_v3, %v1733_v28  ;;  %v3770_v1 = vadd.f32 %v1788_v51, %v1734_v63  ;;  %v3772_v35 = vadd.f32 %v1789_v36, %v1735_v29  ;;  %v3774_v50 = vadd.f32 %v1790_v38, %v1736_v30  ;;  %4125 = vst [vmem:[#allocation13_spill] sm:$0xff] %v3776_v49  ;;  %v2437_v63 = vld [vmem:[%s3996_s3 + $0x7] ss:$0 sm:$0xff]  ;;  %v3793_v29 = vld [vmem:[#allocation2 + $0x68] sm:$0x1] }
 0x1db   : > { %4127 = vst [vmem:[#allocation8_spill] sm:$0xff] %v3780_v40  ;;  %v3782_v41 = vadd.f32 %v1791_v31, %v1737_v47  ;;  %v3784_v10 = vadd.f32 %v1792_v55, %v1738_v61  ;;  %v3786_v54 = vadd.f32 %v1793_v23, %v1739_v34  ;;  %v3788_v28 = vadd.f32 %v1794_v14, %v1740_v48  ;;  %v3795_v30 = vld [vmem:[#allocation2 + $0x74] sm:$0x1] }
 0x1dc   : > { %4128 = vst [vmem:[#allocation14_spill] sm:$0xff] %v3793_v29  ;;  %v3797_v0 = vadd.f32 %v1795_v25, %v1741_v46  ;;  %v3799_v60 = vadd.f32 %v1796_v27, %v1742_v57  ;;  %v4046_v47 = vunpack.c.l.bf16 %v3762_v8  ;;  %v4044_v61 = vunpack.c.l.bf16 %v3764_v43 }
 0x1dd   : > { %v4045_v34 = vunpack.c.l.bf16 %v3766_v4  ;;  %v4047_v48 = vunpack.c.l.bf16 %v3776_v49  ;;  %v4048_v33 = vunpack.c.l.bf16 %v3778_v18  ;;  %v4052_v52 = vunpack.c.l.bf16 %v3780_v40 }
 0x1de   : > { %v4057_v6 = vunpack.c.l.bf16 %v3793_v29  ;;  %v1829_v7 = vunpack.c.l.bf16 %v3795_v30  ;;  %v1834_v46 = vmul.f32 %v4121_v13, %v2437_v63  ;;  %v1835_v57 = vmul.f32 %v3202_v22, %v2437_v63 }
 0x1df   : > { %v1836_v3 = vmul.f32 %v2437_v63, %v4046_v47  ;;  %v1837_v51 = vmul.f32 %v2437_v63, %v1763_v62  ;;  %v1838_v36 = vmul.f32 %v2437_v63, %v3718_v9  ;;  %v1839_v38 = vmul.f32 %v2437_v63, %v4044_v61 }
 0x1e0   : > { %v1840_v31 = vmul.f32 %v4122_v39, %v2437_v63  ;;  %v1841_v55 = vmul.f32 %v4080_v16, %v2437_v63  ;;  %v1842_v23 = vmul.f32 %v2437_v63, %v4045_v34  ;;  %v1843_v13 = vmul.f32 %v2437_v63, %v1767_v53 }
 0x1e1   : > { %v1844_v14 = vmul.f32 %v2437_v63, %v3722_v59  ;;  %v1845_v62 = vmul.f32 %v2437_v63, %v4047_v48  ;;  %v1846_v25 = vmul.f32 %v4123_v44, %v2437_v63  ;;  %v1847_v27 = vmul.f32 %v4111_v32, %v2437_v63 }
 0x1e2   : > { %v1848_v39 = vmul.f32 %v2437_v63, %v4048_v33  ;;  %v1849_v61 = vmul.f32 %v2437_v63, %v1771_v26  ;;  %v1850_v34 = vmul.f32 %v2437_v63, %v3726_v15  ;;  %v1851_v11 = vmul.f32 %v2437_v63, %v4052_v52 }
 0x1e3   : > { %v1852_v53 = vmul.f32 %v4124_v58, %v2437_v63  ;;  %v1853_v47 = vmul.f32 %v4117_v19, %v2437_v63  ;;  %v1854_v44 = vmul.f32 %v2437_v63, %v4057_v6  ;;  %v1855_v48 = vmul.f32 %v2437_v63, %v1775_v21 }
 0x1e4   : > { %v1856_v33 = vmul.f32 %v2437_v63, %v3730_v5  ;;  %v1857_v12 = vmul.f32 %v2437_v63, %v1829_v7  ;;  %v1882_v26 = vrot.slane %v1834_v46, 1  ;;  %v1883_v15 = vrot.slane %v1835_v57, 1 }
 0x1e5   : > { %v1885_v18 = vrot.slane %v1836_v3, 1  ;;  %v1887_v40 = vrot.slane %v1837_v51, 1  ;;  %v1888_v52 = vrot.slane %v1838_v36, 1  ;;  %v1890_v32 = vrot.slane %v1839_v38, 1 }
 0x1e6   : > { %v1884_v58 = vsel %vm1176_vm7, %v1882_v26, %v1883_v15  ;;  %v1892_v19 = vrot.slane %v1840_v31, 1  ;;  %v1893_v49 = vrot.slane %v1841_v55, 1  ;;  %v1895_v29 = vrot.slane %v1842_v23, 1 }
 0x1e7   : > { %v1886_v6 = vsel %vm1176_vm7, %v1883_v15, %v1885_v18  ;;  %v1889_v45 = vsel %vm1176_vm7, %v1887_v40, %v1888_v52  ;;  %v1891_v21 = vsel %vm1176_vm7, %v1888_v52, %v1890_v32  ;;  %v1897_v5 = vrot.slane %v1843_v13, 1 }
 0x1e8   : > { %v1894_v63 = vsel %vm1176_vm7, %v1892_v19, %v1893_v49  ;;  %v1896_v46 = vsel %vm1176_vm7, %v1893_v49, %v1895_v29  ;;  %v1898_v57 = vrot.slane %v1844_v14, 1  ;;  %v1900_v3 = vrot.slane %v1845_v62, 1 }
 0x1e9   : > { %v1902_v51 = vrot.slane %v1846_v25, 1  ;;  %v1903_v36 = vrot.slane %v1847_v27, 1  ;;  %v1905_v38 = vrot.slane %v1848_v39, 1  ;;  %v1907_v26 = vrot.slane %v1849_v61, 1 }
 0x1ea   : > { %v1899_v31 = vsel %vm1176_vm7, %v1897_v5, %v1898_v57  ;;  %v1901_v55 = vsel %vm1176_vm7, %v1898_v57, %v1900_v3  ;;  %v1908_v15 = vrot.slane %v1850_v34, 1  ;;  %v1910_v18 = vrot.slane %v1851_v11, 1  ;;  %v1955_v11 = vld [vmem:[#allocation2 + $0x18] sm:$0xe] }
 0x1eb   : > { %v1904_v40 = vsel %vm1176_vm7, %v1902_v51, %v1903_v36  ;;  %v1906_v32 = vsel %vm1176_vm7, %v1903_v36, %v1905_v38  ;;  %v1912_v52 = vrot.slane %v1852_v53, 1  ;;  %v1913_v19 = vrot.slane %v1853_v47, 1  ;;  %v1956_v53 = vld [vmem:[#allocation2 + $0x24] sm:$0xe] }
 0x1ec   : > { %v1909_v49 = vsel %vm1176_vm7, %v1907_v26, %v1908_v15  ;;  %v1911_v29 = vsel %vm1176_vm7, %v1908_v15, %v1910_v18  ;;  %v1915_v23 = vrot.slane %v1854_v44, 1  ;;  %v1917_v13 = vrot.slane %v1855_v48, 1 }
 0x1ed   : > { %v1914_v61 = vsel %vm1176_vm7, %v1912_v52, %v1913_v19  ;;  %v1918_v14 = vrot.slane %v1856_v33, 1  ;;  %v1920_v5 = vrot.slane %v1857_v12, 1  ;;  %v3857_v62 = vadd.f32 %v1884_v58, %v3750_v24  ;;  %v1959_v12 = vld [vmem:[#allocation2 + $0x48] sm:$0xe]  ;;  %v1960_v58 = vld [vmem:[#allocation2 + $0x54] sm:$0xe] }
 0x1ee   : > { %v1916_v34 = vsel %vm1176_vm7, %v1913_v19, %v1915_v23  ;;  %v3861_v25 = vadd.f32 %v1886_v6, %v3752_v37  ;;  %v3864_v47 = vadd.f32 %v1889_v45, %v3754_v20  ;;  %v3867_v27 = vadd.f32 %v1891_v21, %v3756_v56  ;;  %v1957_v37 = vld [vmem:[#allocation2 + $0x30] sm:$0xe]  ;;  %v1962_v21 = vld [vmem:[#allocation2 + $0x6c] sm:$0xe] }
 0x1ef   : > { %v1919_v48 = vsel %vm1176_vm7, %v1917_v13, %v1918_v14  ;;  %v1921_v39 = vsel %vm1176_vm7, %v1918_v14, %v1920_v5  ;;  %v3872_v33 = vadd.f32 %v1894_v63, %v3758_v17  ;;  %v3875_v24 = vadd.f32 %v1896_v46, %v3760_v2  ;;  %v1958_v17 = vld [vmem:[#allocation2 + $0x3c] sm:$0xe]  ;;  %v4132_v23 = vld [vmem:[#allocation13_spill] sm:$0xff] }
 0x1f0   : > { %v3878_v6 = vadd.f32 %v1899_v31, %v3768_v42  ;;  %v3881_v20 = vadd.f32 %v1901_v55, %v3770_v1  ;;  %v3884_v56 = vadd.f32 %v1904_v40, %v3772_v35  ;;  %v3887_v44 = vadd.f32 %v1906_v32, %v3774_v50  ;;  %v2438_v35 = vld [vmem:[%s3996_s3 + $0x8] ss:$0 sm:$0xff]  ;;  %v1961_v50 = vld [vmem:[#allocation2 + $0x60] sm:$0xe] }
 0x1f1   : > { %v3890_v2 = vadd.f32 %v1909_v49, %v3782_v41  ;;  %v3893_v45 = vadd.f32 %v1911_v29, %v3784_v10  ;;  %v3896_v42 = vadd.f32 %v1914_v61, %v3786_v54  ;;  %v3899_v1 = vadd.f32 %v1916_v34, %v3788_v28  ;;  %v4134_v61 = vld [vmem:[#allocation7_spill] sm:$0xff]  ;;  %v4135_v5 = vld [vmem:[#allocation9_spill] sm:$0xff] }
 0x1f2   : > { %v3905_v63 = vadd.f32 %v1919_v48, %v3797_v0  ;;  %v3908_v41 = vadd.f32 %v1921_v39, %v3799_v60  ;;  %v1963_v10 = vunpack.c.l.bf16 %v1955_v11  ;;  %v1964_v46 = vunpack.c.l.bf16 %v1956_v53  ;;  %v4137_v48 = vld [vmem:[#allocation12_spill] sm:$0xff] }
 0x1f3   : > { %v1965_v57 = vunpack.c.l.bf16 %v1957_v37  ;;  %v1966_v54 = vunpack.c.l.bf16 %v1958_v17  ;;  %v1967_v3 = vunpack.c.l.bf16 %v1959_v12  ;;  %v1968_v51 = vunpack.c.l.bf16 %v1960_v58  ;;  %v4138_v11 = vld [vmem:[#allocation8_spill] sm:$0xff]  ;;  %v4140_v37 = vld [vmem:[#allocation5_spill] sm:$0xff]  ;;  %v4141_v12 = vld [vmem:[#allocation14_spill] sm:$0xff] }
 0x1f4   : > { %v1969_v28 = vunpack.c.l.bf16 %v1961_v50  ;;  %v1970_v36 = vunpack.c.l.bf16 %v1962_v21  ;;  %v1975_v38 = vmul.f32 %v2438_v35, %v1963_v10  ;;  %v1976_v26 = vmul.f32 %v3202_v22, %v2438_v35  ;;  %v4143_v21 = vld [vmem:[#allocation11_spill] sm:$0xff] }
 0x1f5   : > { %v4129_v31 = vunpack.c.l.bf16 %v3762_v8  ;;  %v1978_v15 = vmul.f32 %v2438_v35, %v1964_v46  ;;  %v1979_v0 = vmul.f32 %v2438_v35, %v3718_v9  ;;  %v4130_v60 = vunpack.c.l.bf16 %v3764_v43 }
 0x1f6   : > { %v1981_v40 = vmul.f32 %v2438_v35, %v1965_v57  ;;  %v1982_v32 = vmul.f32 %v4080_v16, %v2438_v35  ;;  %v4131_v52 = vunpack.c.l.bf16 %v3766_v4  ;;  %v1984_v49 = vmul.f32 %v2438_v35, %v1966_v54 }
 0x1f7   : > { %v1977_v55 = vmul.f32 %v2438_v35, %v4129_v31  ;;  %v1980_v18 = vmul.f32 %v2438_v35, %v4130_v60  ;;  %v1985_v29 = vmul.f32 %v2438_v35, %v3722_v59  ;;  %v4133_v22 = vunpack.c.l.bf16 %v4132_v23 }
 0x1f8   : > { %v1983_v19 = vmul.f32 %v2438_v35, %v4131_v52  ;;  %v1987_v8 = vmul.f32 %v2438_v35, %v1967_v3  ;;  %v1988_v14 = vmul.f32 %v4134_v61, %v2438_v35  ;;  %v4136_v9 = vunpack.c.l.bf16 %v4135_v5 }
 0x1f9   : > { %v1986_v13 = vmul.f32 %v2438_v35, %v4133_v22  ;;  %v1990_v43 = vmul.f32 %v2438_v35, %v1968_v51  ;;  %v1991_v39 = vmul.f32 %v2438_v35, %v4137_v48  ;;  %v4139_v16 = vunpack.c.l.bf16 %v4138_v11 }
 0x1fa   : > { %v1989_v34 = vmul.f32 %v2438_v35, %v4136_v9  ;;  %v1993_v4 = vmul.f32 %v2438_v35, %v1969_v28  ;;  %v1994_v17 = vmul.f32 %v4140_v37, %v2438_v35  ;;  %v4142_v59 = vunpack.c.l.bf16 %v4141_v12 }
 0x1fb   : > { %v1992_v53 = vmul.f32 %v2438_v35, %v4139_v16  ;;  %v1996_v50 = vmul.f32 %v2438_v35, %v1970_v36  ;;  %v1997_v10 = vmul.f32 %v2438_v35, %v4143_v21  ;;  %v1998_v46 = vmul.f32 %v2438_v35, %v1829_v7 }
 0x1fc   : > { %v1995_v58 = vmul.f32 %v2438_v35, %v4142_v59  ;;  %v2023_v57 = vrot.slane %v1975_v38, 2  ;;  %v2024_v54 = vrot.slane %v1976_v26, 2  ;;  %v2026_v3 = vrot.slane %v1977_v55, 2 }
 0x1fd   : > { %v2028_v51 = vrot.slane %v1978_v15, 2  ;;  %v2029_v31 = vrot.slane %v1979_v0, 2  ;;  %v2031_v60 = vrot.slane %v1980_v18, 2  ;;  %v2033_v28 = vrot.slane %v1981_v40, 2 }
 0x1fe   : > { %v2025_v52 = vsel %vm1318_vm8, %v2023_v57, %v2024_v54  ;;  %v2034_v23 = vrot.slane %v1982_v32, 2  ;;  %v2036_v22 = vrot.slane %v1983_v19, 2  ;;  %v2027_v61 = vsel %vm1318_vm8, %v2024_v54, %v2026_v3 }
 0x1ff   : > { %v2030_v36 = vsel %vm1318_vm8, %v2028_v51, %v2029_v31  ;;  %v2032_v5 = vsel %vm1318_vm8, %v2029_v31, %v2031_v60  ;;  %v2038_v9 = vrot.slane %v1984_v49, 2  ;;  %v2039_v35 = vrot.slane %v1985_v29, 2 }
 0x200   : > { %v2035_v30 = vsel %vm1318_vm8, %v2033_v28, %v2034_v23  ;;  %v2037_v7 = vsel %vm1318_vm8, %v2034_v23, %v2036_v22  ;;  %v2041_v38 = vrot.slane %v1986_v13, 2  ;;  %v2043_v26 = vrot.slane %v1987_v8, 2 }
 0x201   : > { %v2044_v55 = vrot.slane %v1988_v14, 2  ;;  %v2046_v15 = vrot.slane %v1989_v34, 2  ;;  %v2048_v0 = vrot.slane %v1990_v43, 2  ;;  %v2040_v18 = vsel %vm1318_vm8, %v2038_v9, %v2039_v35 }
 0x202   : > { %v2042_v40 = vsel %vm1318_vm8, %v2039_v35, %v2041_v38  ;;  %v2049_v32 = vrot.slane %v1991_v39, 2  ;;  %v2051_v19 = vrot.slane %v1992_v53, 2  ;;  %v2053_v11 = vrot.slane %v1993_v4, 2 }
 0x203   : > { %v2045_v48 = vsel %vm1318_vm8, %v2043_v26, %v2044_v55  ;;  %v2047_v49 = vsel %vm1318_vm8, %v2044_v55, %v2046_v15  ;;  %v2054_v16 = vrot.slane %v1994_v17, 2  ;;  %v2056_v13 = vrot.slane %v1995_v58, 2 }
 0x204   : > { %v2050_v37 = vsel %vm1318_vm8, %v2048_v0, %v2049_v32  ;;  %v2052_v29 = vsel %vm1318_vm8, %v2049_v32, %v2051_v19  ;;  %v2058_v8 = vrot.slane %v1996_v50, 2  ;;  %v2059_v34 = vrot.slane %v1997_v10, 2 }
 0x205   : > { %v2055_v14 = vsel %vm1318_vm8, %v2053_v11, %v2054_v16  ;;  %v2061_v43 = vrot.slane %v1998_v46, 2  ;;  %v2079_v12 = vadd.f32 %v2025_v52, %v3857_v62  ;;  %v2057_v39 = vsel %vm1318_vm8, %v2054_v16, %v2056_v13  ;;  %v2439_v62 = vld [vmem:[%s3997_s4] ss:$0 sm:$0xff] }
 0x206   : > { %v2080_v53 = vadd.f32 %v2027_v61, %v3861_v25  ;;  %v2081_v59 = vadd.f32 %v2030_v36, %v3864_v47  ;;  %v2082_v4 = vadd.f32 %v2032_v5, %v3867_v27  ;;  %v2060_v17 = vsel %vm1318_vm8, %v2058_v8, %v2059_v34 }
 0x207   : > { %v2062_v21 = vsel %vm1318_vm8, %v2059_v34, %v2061_v43  ;;  %v2083_v58 = vadd.f32 %v2035_v30, %v3872_v33  ;;  %v2084_v50 = vadd.f32 %v2037_v7, %v3875_v24  ;;  %v2085_v10 = vadd.f32 %v2040_v18, %v3878_v6 }
 0x208   : > { %v2086_v25 = vadd.f32 %v2042_v40, %v3881_v20  ;;  %v2087_v47 = vadd.f32 %v2045_v48, %v3884_v56  ;;  %v2088_v27 = vadd.f32 %v2047_v49, %v3887_v44  ;;  %v2089_v46 = vadd.f32 %v2050_v37, %v3890_v2 }
 0x209   : > { %v2090_v57 = vadd.f32 %v2052_v29, %v3893_v45  ;;  %v2091_v33 = vadd.f32 %v2055_v14, %v3896_v42  ;;  %v2092_v24 = vadd.f32 %v2057_v39, %v3899_v1  ;;  %v2093_v54 = vadd.f32 %v2060_v17, %v3905_v63 }
 0x20a   : > { %v2094_v3 = vadd.f32 %v2062_v21, %v3908_v41  ;;  %v2102_v51 = vadd.f32 %v2439_v62, %v2079_v12  ;;  %v2103_v6 = vadd.f32 %v2439_v62, %v2080_v53  ;;  %v2104_v31 = vadd.f32 %v2439_v62, %v2081_v59 }
 0x20b   : > { %v2105_v20 = vadd.f32 %v2439_v62, %v2082_v4  ;;  %v2106_v60 = vadd.f32 %v2439_v62, %v2083_v58  ;;  %v2107_v56 = vadd.f32 %v2439_v62, %v2084_v50  ;;  %v2108_v52 = vadd.f32 %v2439_v62, %v2085_v10 }
 0x20c   : > { %v2109_v44 = vadd.f32 %v2439_v62, %v2086_v25  ;;  %v2110_v2 = vadd.f32 %v2439_v62, %v2087_v47  ;;  %v2111_v45 = vadd.f32 %v2439_v62, %v2088_v27  ;;  %v2112_v28 = vadd.f32 %v2439_v62, %v2089_v46 }
 0x20d   : > { %v2113_v42 = vadd.f32 %v2439_v62, %v2090_v57  ;;  %v2114_v23 = vadd.f32 %v2439_v62, %v2091_v33  ;;  %v2115_v1 = vadd.f32 %v2439_v62, %v2092_v24  ;;  %v2116_v63 = vadd.f32 %v2439_v62, %v2093_v54 }
 0x20e   : > { %v2117_v41 = vadd.f32 %v2439_v62, %v2094_v3  ;;  %v2631_v22 = vpack.c.bf16 %v2103_v6, %v2102_v51  ;;  %v2636_v61 = vpack.c.bf16 %v2105_v20, %v2104_v31  ;;  %v2641_v36 = vpack.c.bf16 %v2107_v56, %v2106_v60 }
 0x20f   : > { %v2646_v5 = vpack.c.bf16 %v2109_v44, %v2108_v52  ;;  %v2651_v9 = vpack.c.bf16 %v2111_v45, %v2110_v2  ;;  %v2656_v30 = vpack.c.bf16 %v2113_v42, %v2112_v28  ;;  %v2661_v7 = vpack.c.bf16 %v2115_v1, %v2114_v23 }
 0x210   : > { %2632 = vst [vmem:[%s3030_s7] sm:$0xff] %v2631_v22   ;;  %2692 = vst [vmem:[%s3030_s7 + $0x8] sm:$0xff] %v2636_v61   ;;  %v2666_v35 = vpack.c.bf16 %v2117_v41, %v2116_v63  ;;  %v2198_v38 = vadd.f32 %v2104_v31, %v2102_v51  ;;  %v2205_v26 = vadd.f32 %v2105_v20, %v2103_v6 }
 0x211   : > { %2693 = vst [vmem:[%s3030_s7 + $0x10] sm:$0xff] %v2641_v36   ;;  %2694 = vst [vmem:[%s3030_s7 + $0x18] sm:$0xff] %v2646_v5  }
 0x212   : > { %2695 = vst [vmem:[%s3030_s7 + $0x20] sm:$0xff] %v2651_v9   ;;  %2696 = vst [vmem:[%s3030_s7 + $0x28] sm:$0xff] %v2656_v30   ;;  %v2199_v55 = vadd.f32 %v2198_v38, %v2106_v60  ;;  %v2206_v15 = vadd.f32 %v2205_v26, %v2107_v56 }
 0x213   : > { %2697 = vst [vmem:[%s3030_s7 + $0x30] sm:$0xff] %v2661_v7   ;;  %2698 = vst [vmem:[%s3030_s7 + $0x38] sm:$0xff] %v2666_v35  }
 0x214   : > { %v2200_v0 = vadd.f32 %v2199_v55, %v2108_v52  ;;  %v2207_v18 = vadd.f32 %v2206_v15, %v2109_v44 }
 0x216   : > { %v2201_v40 = vadd.f32 %v2200_v0, %v2110_v2  ;;  %v2208_v32 = vadd.f32 %v2207_v18, %v2111_v45 }
 0x218   : > { %v2202_v19 = vadd.f32 %v2201_v40, %v2112_v28  ;;  %v2209_v48 = vadd.f32 %v2208_v32, %v2113_v42 }
 0x21a   : > { %v2203_v49 = vadd.f32 %v2202_v19, %v2114_v23  ;;  %v2210_v11 = vadd.f32 %v2209_v48, %v2115_v1 }
 0x21c   : > { %v2204_v16 = vadd.f32 %v2203_v49, %v2116_v63  ;;  %v2211_v37 = vadd.f32 %v2210_v11, %v2117_v41 }
 0x21e   : > { %v2212_v29 = vadd.f32 %v2211_v37, %v2204_v16 }
 0x220   : > { %v2213_v13 = vrot.slane %v2212_v29, 4 }
 0x222   : > { %v2214_v8 = vadd.f32 %v2213_v13, %v2212_v29 }
 0x224   : > { %v2215_v14 = vrot.slane %v2214_v8, 2 }
 0x226   : > { %v2216_v34 = vadd.f32 %v2215_v14, %v2214_v8 }
 0x228   : > { %v2217_v43 = vrot.slane %v2216_v34, 1 }
 0x22a   : > { %v2218_v12 = vadd.f32 %v2217_v43, %v2216_v34 }
 0x22c   : > { %2219 = vst [vmem:[%s3044_s17] sm:$0xff] %v2218_v12 }
 0x22d PF: > { %s17_s25 = sadd.s32 1, %s2920_s25   ;;  %s4144_s21 = smov %s2912_s23 }
 0x22e   : > { %p14_p10 = scmp.ge.s32.totalorder %s17_s25, 6   ;;  %s4145_s22 = smov %s2916_s24 }
 0x22f   : > { %s4146_s23 = smov %s4149_s26  ;;  %s4147_s24 = smov %s4153_s27 }
 0x230   :  { %16 = sbr.rel (!%p14_p10) target bundleno = 3 (0x3), region = 94 }

</bundles_post_ra>
